<compile_context>
chip_gen: v7x
topology: tpu7x:2x2x1
jax: 0.10.0
libtpu: 0.0.40
codegen_flags: <defaults>
</compile_context>

<pallas_src>
import jax
import jax.numpy as jnp
from jax import lax
from jax.experimental import pallas as pl
from jax.experimental.pallas import tpu as pltpu

_GUARD = 8  # sublane-aligned guard rows on each end of the a2 scratch buffer


def _bottleneck_kernel(xm_ref, xt_ref, xb_ref, s1_ref, b1_ref, w1_ref, b2_ref,
                       w2_ref, lm_ref, rm_ref, o_ref, a2_ref):
    """One grid step = one (image, row-tile) pair.

    xm_ref: (1, THW, Cin)          bf16  flattened channels-last row tile (TH rows * W_pad)
    xt_ref: (1, W_pad, Cin)        bf16  image row just above the tile (clamped at top)
    xb_ref: (1, W_pad, Cin)        bf16  image row just below the tile (clamped at bottom)
    s1/b1 : (1, Cin)               f32   folded bn1 scale / shift
    w1_ref: (Cin, Cinter)          bf16  1x1 conv weight with bn2 scale folded in
    b2_ref: (1, Cinter)            f32   folded bn2 shift
    w2_ref: (3, 3*Cinter, Cout_pad) bf16 3x3 weights laid out [kh][kw*Cinter + ci, co]
    lm/rm : (L, 1)                 bf16  column-boundary masks over the padded-row buffer
    o_ref : (1, THW, Cout_pad)     bf16  output tile (lane dense)
    a2_ref: (L + 2*GUARD, Cinter)  bf16  VMEM scratch: row-padded a2 buffer
    """
    THW = xm_ref.shape[1]
    W_pad = xt_ref.shape[1]
    Cinter = w1_ref.shape[1]
    L = THW + 2 * W_pad
    G = (a2_ref.shape[0] - L) // 2
    cd = a2_ref.dtype

    t = pl.program_id(1)
    n_tiles = pl.num_programs(1)

    def stage1(xv):
        # relu(bn1(x)) in f32, 1x1 conv (bn2 scale folded) on the MXU, bn2 shift, relu.
        h = jnp.maximum(xv.astype(jnp.float32) * s1_ref[...] + b1_ref[...], 0.0)
        y = jnp.dot(h.astype(cd), w1_ref[...], preferred_element_type=jnp.float32)
        return jnp.maximum(y + b2_ref[...], 0.0)          # f32 (M, Cinter)

    # Zero the guard rows every step (scratch is uninitialized VMEM; the masked-out
    # +/-1 taps must read exact zeros — NaN * 0 would not be zero).
    zg = jnp.zeros((G, Cinter), cd)
    a2_ref[0:G, :] = zg
    a2_ref[G + L:, :] = zg

    # Stage-1 for the halo rows is recomputed here (one row each).  At the image
    # boundaries (first/last row tile) the halo row is the 3x3 conv's zero padding.
    top_keep = jnp.where(t > 0, 1.0, 0.0)
    bot_keep = jnp.where(t < n_tiles - 1, 1.0, 0.0)
    a2_ref[G:G + W_pad, :] = (stage1(xt_ref[0]) * top_keep).astype(cd)
    a2_ref[G + W_pad:G + W_pad + THW, :] = stage1(xm_ref[0]).astype(cd)
    a2_ref[G + W_pad + THW:G + L, :] = (stage1(xb_ref[0]) * bot_keep).astype(cd)

    # Three column variants of the padded a2 buffer: 2 shifted reads + 2 mask multiplies
    # replace 6 per-tap shifts + 6 masks.  The +/-1 reads at the buffer ends land in the
    # zeroed guard rows and are additionally killed by the column masks.
    vC = a2_ref[G:G + L, :]
    vL = a2_ref[G - 1:G - 1 + L, :] * lm_ref[...]   # column j-1 taps (kw=0)
    vR = a2_ref[G + 1:G + 1 + L, :] * rm_ref[...]   # column j+1 taps (kw=2)
    taps = (vL, vC, vR)

    acc = None
    if Cinter % 128 == 0:
        # Pack the 3 column variants along K so each MXU pass sees K = 3*Cinter
        # (fills the 256-deep v6e/v7x MXU better); 3 matmuls instead of 9.
        V = jnp.concatenate(taps, axis=1)                 # (L, 3*Cinter) bf16
        for kh in range(3):
            off = kh * W_pad                              # sublane-aligned (W_pad % 8 == 0)
            part = jnp.dot(V[off:off + THW, :], w2_ref[kh],
                           preferred_element_type=jnp.float32)
            acc = part if acc is None else acc + part
    else:
        # Small-Cinter path (avoids a lane-misaligned concat): 9 matmuls with K = Cinter.
        for kh in range(3):
            w_kh = w2_ref[kh]                             # (3*Cinter, Cout_pad)
            off = kh * W_pad
            for kw in range(3):
                part = jnp.dot(taps[kw][off:off + THW, :],
                               w_kh[kw * Cinter:(kw + 1) * Cinter, :],
                               preferred_element_type=jnp.float32)
                acc = part if acc is None else acc + part

    o_ref[0] = acc.astype(o_ref.dtype)                    # lane-dense bf16 store


def _round_up(v, m):
    return ((v + m - 1) // m) * m


def _vmem_limit_bytes():
    """~40 MiB on 64-MiB/TC parts (v7x-class); 100 MiB on 128-MiB parts (v5e/v6e)."""
    try:
        cap = int(pltpu.get_tpu_info().vmem_capacity_bytes)
    except Exception:
        return 40 * 1024 * 1024
    if cap >= 100 * 1024 * 1024:
        return 100 * 1024 * 1024
    return 40 * 1024 * 1024


def _pick_tile_rows(H, W_pad, Cin, Cinter, Cout_pad, N, budget_bytes, tile_rows=None):
    """Pick TH (image rows per tile) as a divisor of H fitting the VMEM budget."""
    if tile_rows is None:
        bytes_per_row = (
            2 * 2 * Cin            # x tile, bf16, double-buffered
            + 4 * Cin              # f32 bn1 temp
            + 2 * Cinter           # a2 scratch row (bf16)
            + 8 * 2 * Cinter       # vL/vC/vR (+ packed V) bf16 temps
            + 4 * Cout_pad         # f32 accumulator
            + 2 * 2 * Cout_pad)    # bf16 output tile, double-buffered
        tile_rows = max(budget_bytes // (bytes_per_row * W_pad), 1)
    th = 1
    for cand in range(1, H + 1):
        if H % cand == 0 and cand <= tile_rows:
            th = cand
    # Ensure >= 2 grid steps when cheaply possible (pipelining + v7x megacore sharding).
    if N * (H // th) < 2 and th > 1:
        for cand in range(th - 1, 0, -1):
            if H % cand == 0:
                th = cand
                break
    return th


def bottleneck_block_nhwc(x_nhwc, params, *, compute_dtype=jnp.bfloat16, tile_rows=None):
    """Channels-last core: x (N, H, W, Cin) -> conv branch output (N, H, W, Cout)."""
    N, H, W, Cin = x_nhwc.shape
    Cinter = params["w1"].shape[0]     # torch conv1 weight: (Cinter, Cin, 1, 1)
    Cout = params["w2"].shape[0]       # torch conv2 weight: (Cout, Cinter, 3, 3)
    eps = 1e-5

    # Fold BatchNorm (inference form) into per-channel scale/shift.
    s1 = params["g1"] / jnp.sqrt(params["v1"] + eps)
    b1f = params["b1"] - params["m1"] * s1
    s2 = params["g2"] / jnp.sqrt(params["v2"] + eps)
    b2f = params["b2"] - params["m2"] * s2

    # Fold bn2 scale into the 1x1 conv weight; matmul operands in bf16.
    w1f = (params["w1"][:, :, 0, 0].T * s2[None, :]).astype(compute_dtype)  # (Cin, Cinter)

    # 3x3 weights as (kh, [kw-stacked K], Cout_pad): rows [kw*Cinter + ci] match the
    # in-kernel [vL | vC | vR] channel packing; Cout zero-padded to a full lane group.
    Cout_pad = _round_up(Cout, 128)
    w2t = jnp.transpose(params["w2"], (2, 3, 1, 0)).reshape(3, 3 * Cinter, Cout)
    w2k = jnp.pad(w2t, ((0, 0), (0, 0), (0, Cout_pad - Cout))).astype(compute_dtype)

    # Pad W to a sublane multiple; pad-column garbage never leaks into real outputs
    # because rmask uses the true W.
    W_pad = _round_up(W, 8)
    vmem_limit = _vmem_limit_bytes()
    TH = _pick_tile_rows(H, W_pad, Cin, Cinter, Cout_pad, N,
                         budget_bytes=int(0.35 * vmem_limit), tile_rows=tile_rows)
    n_tiles = H // TH
    THW = TH * W_pad
    L = THW + 2 * W_pad

    # Column-boundary masks over the padded-row buffer (precomputed: no in-kernel iota).
    col = jnp.arange(L, dtype=jnp.int32) % W_pad
    lmask = (col > 0).astype(compute_dtype).reshape(L, 1)
    rmask = (col < (W - 1)).astype(compute_dtype).reshape(L, 1)

    if W_pad != W:
        x_nhwc = jnp.pad(x_nhwc, ((0, 0), (0, 0), (0, W_pad - W), (0, 0)))
    # bf16 x: halves the dominant HBM read (BN math is done in f32 inside the kernel).
    x_flat = x_nhwc.reshape(N, H * W_pad, Cin).astype(compute_dtype)

    out_flat = pl.pallas_call(
        _bottleneck_kernel,
        out_shape=jax.ShapeDtypeStruct((N, H * W_pad, Cout_pad), compute_dtype),
        grid_spec=pltpu.PrefetchScalarGridSpec(
            num_scalar_prefetch=0,
            grid=(N, n_tiles),
            in_specs=[
                # main row tile
                pl.BlockSpec((1, THW, Cin), lambda n, t: (n, t, 0)),
                # 1-row halo above (block units of W_pad rows; clamped at the top)
                pl.BlockSpec((1, W_pad, Cin),
                             lambda n, t: (n, jnp.maximum(t * TH - 1, 0), 0)),
                # 1-row halo below (clamped at the bottom)
                pl.BlockSpec((1, W_pad, Cin),
                             lambda n, t: (n, jnp.minimum((t + 1) * TH, H - 1), 0)),
                # grid-invariant operands
                pl.BlockSpec((1, Cin), lambda n, t: (0, 0)),
                pl.BlockSpec((1, Cin), lambda n, t: (0, 0)),
                pl.BlockSpec((Cin, Cinter), lambda n, t: (0, 0)),
                pl.BlockSpec((1, Cinter), lambda n, t: (0, 0)),
                pl.BlockSpec((3, 3 * Cinter, Cout_pad), lambda n, t: (0, 0, 0)),
                pl.BlockSpec((L, 1), lambda n, t: (0, 0)),
                pl.BlockSpec((L, 1), lambda n, t: (0, 0)),
            ],
            out_specs=pl.BlockSpec((1, THW, Cout_pad), lambda n, t: (n, t, 0)),
            scratch_shapes=[pltpu.VMEM((L + 2 * _GUARD, Cinter), compute_dtype)],
        ),
        compiler_params=pltpu.CompilerParams(
            dimension_semantics=("parallel", "parallel"),
            vmem_limit_bytes=vmem_limit,
        ),
    )(x_flat, x_flat, x_flat,
      s1.reshape(1, Cin).astype(jnp.float32),
      b1f.reshape(1, Cin).astype(jnp.float32),
      w1f,
      b2f.reshape(1, Cinter).astype(jnp.float32),
      w2k, lmask, rmask)

    return out_flat.reshape(N, H, W_pad, Cout_pad)[:, :, :W, :Cout]


def bottleneck_block_forward(x_nchw, params, *, tile_rows=None):
    """NCHW interface matching the PyTorch module: returns cat([x, conv_branch(x)], 1)."""
    x_nhwc = jnp.transpose(x_nchw, (0, 2, 3, 1))
    out_nhwc = bottleneck_block_nhwc(x_nhwc, params, tile_rows=tile_rows)
    out_nchw = jnp.transpose(out_nhwc, (0, 3, 1, 2)).astype(x_nchw.dtype)
    return jnp.concatenate([x_nchw, out_nchw], axis=1)


def _ref_forward(x, params):
    """Pure-JAX f32 reference mirroring the PyTorch forward (eval mode, droprate=0)."""
    eps = 1e-5
    s1 = params["g1"] / jnp.sqrt(params["v1"] + eps)
    b1 = params["b1"] - params["m1"] * s1
    s2 = params["g2"] / jnp.sqrt(params["v2"] + eps)
    b2 = params["b2"] - params["m2"] * s2
    h = jnp.maximum(x * s1[None, :, None, None] + b1[None, :, None, None], 0.0)
    y = lax.conv_general_dilated(h, params["w1"], (1, 1), "VALID",
                                 dimension_numbers=("NCHW", "OIHW", "NCHW"))
    h2 = jnp.maximum(y * s2[None, :, None, None] + b2[None, :, None, None], 0.0)
    y2 = lax.conv_general_dilated(h2, params["w2"], (1, 1), ((1, 1), (1, 1)),
                                  dimension_numbers=("NCHW", "OIHW", "NCHW"))
    return jnp.concatenate([x, y2], axis=1)


if __name__ == "__main__":
    key = jax.random.PRNGKey(0)
    N, Cin, H, W = 2, 4, 16, 16
    out_planes = 8
    Cinter = out_planes * 4

    ks = jax.random.split(key, 11)
    x = jax.random.normal(ks[0], (N, Cin, H, W), jnp.float32)
    params = dict(
        g1=1.0 + 0.1 * jax.random.normal(ks[1], (Cin,), jnp.float32),
        b1=0.1 * jax.random.normal(ks[2], (Cin,), jnp.float32),
        m1=0.1 * jax.random.normal(ks[3], (Cin,), jnp.float32),
        v1=jax.random.uniform(ks[4], (Cin,), jnp.float32, 0.5, 1.5),
        w1=0.1 * jax.random.normal(ks[5], (Cinter, Cin, 1, 1), jnp.float32),
        g2=1.0 + 0.1 * jax.random.normal(ks[6], (Cinter,), jnp.float32),
        b2=0.1 * jax.random.normal(ks[7], (Cinter,), jnp.float32),
        m2=0.1 * jax.random.normal(ks[8], (Cinter,), jnp.float32),
        v2=jax.random.uniform(ks[9], (Cinter,), jnp.float32, 0.5, 1.5),
        w2=0.1 * jax.random.normal(ks[10], (out_planes, Cinter, 3, 3), jnp.float32),
    )

    fwd = jax.jit(bottleneck_block_forward, static_argnames=("tile_rows",))
    ref = _ref_forward(x, params)

    # Default tiling (whole image fits in one row tile at this size).
    out = jax.block_until_ready(fwd(x, params))
    assert out.shape == (N, Cin + out_planes, H, W), out.shape
    # bf16 x / matmul operands / output with f32 accumulation -> relaxed tolerance.
    assert jnp.allclose(out, ref, atol=3e-2, rtol=3e-2), \
        float(jnp.max(jnp.abs(out - ref)))

    # Forced 2-tile path: exercises the row-halo exchange between adjacent row tiles.
    out2 = jax.block_until_ready(fwd(x, params, tile_rows=8))
    assert jnp.allclose(out2, ref, atol=3e-2, rtol=3e-2), \
        float(jnp.max(jnp.abs(out2 - ref)))

    print("KERNEL_OK")
</pallas_src>

<mosaic_0001>
module attributes {stable_mosaic.version = 11 : i64} {
  func.func @_bottleneck_kernel(%arg0: i32, %arg1: i32, %arg2: memref<1x256x4xbf16, #tpu.memory_space<vmem>>, %arg3: memref<1x16x4xbf16, #tpu.memory_space<vmem>>, %arg4: memref<1x16x4xbf16, #tpu.memory_space<vmem>>, %arg5: memref<1x4xf32, #tpu.memory_space<vmem>>, %arg6: memref<1x4xf32, #tpu.memory_space<vmem>>, %arg7: memref<4x32xbf16, #tpu.memory_space<vmem>>, %arg8: memref<1x32xf32, #tpu.memory_space<vmem>>, %arg9: memref<3x96x128xbf16, #tpu.memory_space<vmem>>, %arg10: memref<288x1xbf16, #tpu.memory_space<vmem>>, %arg11: memref<288x1xbf16, #tpu.memory_space<vmem>>, %arg12: memref<1x256x128xbf16, #tpu.memory_space<vmem>>, %arg13: memref<304x32xbf16, #tpu.memory_space<vmem>>) attributes {dimension_semantics = [#tpu.dimension_semantics<parallel>, #tpu.dimension_semantics<parallel>], iteration_bounds = array<i64: 2, 1>, scalar_prefetch = 0 : i64, scratch_operands = 1 : i64, tpu.core_type = #tpu.core_type<tc>, window_params = [{transform_indices = @transform_0, window_bounds = array<i64: 1, 256, 4>}, {transform_indices = @transform_1, window_bounds = array<i64: 1, 16, 4>}, {transform_indices = @transform_2, window_bounds = array<i64: 1, 16, 4>}, {pipeline_mode = #tpu.pipeline_mode<synchronous>, transform_indices = @transform_3, window_bounds = array<i64: 1, 4>}, {pipeline_mode = #tpu.pipeline_mode<synchronous>, transform_indices = @transform_4, window_bounds = array<i64: 1, 4>}, {pipeline_mode = #tpu.pipeline_mode<synchronous>, transform_indices = @transform_5, window_bounds = array<i64: 4, 32>}, {pipeline_mode = #tpu.pipeline_mode<synchronous>, transform_indices = @transform_6, window_bounds = array<i64: 1, 32>}, {pipeline_mode = #tpu.pipeline_mode<synchronous>, transform_indices = @transform_7, window_bounds = array<i64: 3, 96, 128>}, {pipeline_mode = #tpu.pipeline_mode<synchronous>, transform_indices = @transform_8, window_bounds = array<i64: 288, 1>}, {pipeline_mode = #tpu.pipeline_mode<synchronous>, transform_indices = @transform_9, window_bounds = array<i64: 288, 1>}, {transform_indices = @transform_10, window_bounds = array<i64: 1, 256, 128>}]} {
    %cst = arith.constant 0.000000e+00 : bf16
    %0 = vector.broadcast %cst : bf16 to vector<8x32xbf16>
    %c0 = arith.constant 0 : index
    %c0_0 = arith.constant 0 : index
    %1 = vector.load %arg13[%c0, %c0_0] : memref<304x32xbf16, #tpu.memory_space<vmem>>, vector<8x32xbf16>
    tpu.vector_store %arg13[%c0, %c0_0], %0 {strides = array<i32>} : memref<304x32xbf16, #tpu.memory_space<vmem>>, vector<8x32xbf16>,
    %c296 = arith.constant 296 : index
    %c0_1 = arith.constant 0 : index
    %2 = vector.load %arg13[%c296, %c0_1] : memref<304x32xbf16, #tpu.memory_space<vmem>>, vector<8x32xbf16>
    tpu.vector_store %arg13[%c296, %c0_1], %0 {strides = array<i32>} : memref<304x32xbf16, #tpu.memory_space<vmem>>, vector<8x32xbf16>,
    %c0_i32 = arith.constant 0 : i32
    %3 = arith.cmpi sgt, %arg1, %c0_i32 : i32
    %cst_2 = arith.constant 1.000000e+00 : f32
    %cst_3 = arith.constant 0.000000e+00 : f32
    %4 = arith.select %3, %cst_2, %cst_3 : f32
    %c0_i32_4 = arith.constant 0 : i32
    %5 = arith.cmpi slt, %arg1, %c0_i32_4 : i32
    %cst_5 = arith.constant 1.000000e+00 : f32
    %cst_6 = arith.constant 0.000000e+00 : f32
    %6 = arith.select %5, %cst_5, %cst_6 : f32
    %c0_7 = arith.constant 0 : index
    %c0_8 = arith.constant 0 : index
    %c0_9 = arith.constant 0 : index
    %7 = vector.load %arg3[%c0_7, %c0_8, %c0_9] : memref<1x16x4xbf16, #tpu.memory_space<vmem>>, vector<1x16x4xbf16>
    %8 = vector.shape_cast %7 : vector<1x16x4xbf16> to vector<16x4xbf16>
    %9 = arith.extf %8 : vector<16x4xbf16> to vector<16x4xf32>
    %c0_10 = arith.constant 0 : index
    %c0_11 = arith.constant 0 : index
    %10 = vector.load %arg5[%c0_10, %c0_11] : memref<1x4xf32, #tpu.memory_space<vmem>>, vector<1x4xf32>
    %11 = vector.broadcast %10 : vector<1x4xf32> to vector<16x4xf32>
    %12 = arith.mulf %9, %11 : vector<16x4xf32>
    %c0_12 = arith.constant 0 : index
    %c0_13 = arith.constant 0 : index
    %13 = vector.load %arg6[%c0_12, %c0_13] : memref<1x4xf32, #tpu.memory_space<vmem>>, vector<1x4xf32>
    %14 = vector.broadcast %13 : vector<1x4xf32> to vector<16x4xf32>
    %15 = arith.addf %12, %14 : vector<16x4xf32>
    %cst_14 = arith.constant 0.000000e+00 : f32
    %16 = vector.broadcast %cst_14 : f32 to vector<16x4xf32>
    %17 = arith.maximumf %15, %16 : vector<16x4xf32>
    %18 = arith.truncf %17 : vector<16x4xf32> to vector<16x4xbf16>
    %c0_15 = arith.constant 0 : index
    %c0_16 = arith.constant 0 : index
    %19 = vector.load %arg7[%c0_15, %c0_16] : memref<4x32xbf16, #tpu.memory_space<vmem>>, vector<4x32xbf16>
    %cst_17 = arith.constant dense<0.000000e+00> : vector<16x32xf32>
    %20 = tpu.matmul %18, %19, %cst_17 {dimension_numbers = #tpu.dot_dimension_numbers<[1], [0], [0], [1], [0, 0, 1, 1], [], []>} : vector<16x4xbf16>, vector<4x32xbf16>, vector<16x32xf32> -> vector<16x32xf32>
    %c0_18 = arith.constant 0 : index
    %c0_19 = arith.constant 0 : index
    %21 = vector.load %arg8[%c0_18, %c0_19] : memref<1x32xf32, #tpu.memory_space<vmem>>, vector<1x32xf32>
    %22 = vector.broadcast %21 : vector<1x32xf32> to vector<16x32xf32>
    %23 = arith.addf %20, %22 : vector<16x32xf32>
    %cst_20 = arith.constant 0.000000e+00 : f32
    %24 = vector.broadcast %cst_20 : f32 to vector<16x32xf32>
    %25 = arith.maximumf %23, %24 : vector<16x32xf32>
    %26 = vector.broadcast %4 : f32 to vector<16x32xf32>
    %27 = arith.mulf %25, %26 : vector<16x32xf32>
    %28 = arith.truncf %27 : vector<16x32xf32> to vector<16x32xbf16>
    %c8 = arith.constant 8 : index
    %c0_21 = arith.constant 0 : index
    %29 = vector.load %arg13[%c8, %c0_21] : memref<304x32xbf16, #tpu.memory_space<vmem>>, vector<16x32xbf16>
    tpu.vector_store %arg13[%c8, %c0_21], %28 {strides = array<i32>} : memref<304x32xbf16, #tpu.memory_space<vmem>>, vector<16x32xbf16>,
    %c0_22 = arith.constant 0 : index
    %c0_23 = arith.constant 0 : index
    %c0_24 = arith.constant 0 : index
    %30 = vector.load %arg2[%c0_22, %c0_23, %c0_24] : memref<1x256x4xbf16, #tpu.memory_space<vmem>>, vector<1x256x4xbf16>
    %31 = vector.shape_cast %30 : vector<1x256x4xbf16> to vector<256x4xbf16>
    %32 = arith.extf %31 : vector<256x4xbf16> to vector<256x4xf32>
    %c0_25 = arith.constant 0 : index
    %c0_26 = arith.constant 0 : index
    %33 = vector.load %arg5[%c0_25, %c0_26] : memref<1x4xf32, #tpu.memory_space<vmem>>, vector<1x4xf32>
    %34 = vector.broadcast %33 : vector<1x4xf32> to vector<256x4xf32>
    %35 = arith.mulf %32, %34 : vector<256x4xf32>
    %c0_27 = arith.constant 0 : index
    %c0_28 = arith.constant 0 : index
    %36 = vector.load %arg6[%c0_27, %c0_28] : memref<1x4xf32, #tpu.memory_space<vmem>>, vector<1x4xf32>
    %37 = vector.broadcast %36 : vector<1x4xf32> to vector<256x4xf32>
    %38 = arith.addf %35, %37 : vector<256x4xf32>
    %cst_29 = arith.constant 0.000000e+00 : f32
    %39 = vector.broadcast %cst_29 : f32 to vector<256x4xf32>
    %40 = arith.maximumf %38, %39 : vector<256x4xf32>
    %41 = arith.truncf %40 : vector<256x4xf32> to vector<256x4xbf16>
    %c0_30 = arith.constant 0 : index
    %c0_31 = arith.constant 0 : index
    %42 = vector.load %arg7[%c0_30, %c0_31] : memref<4x32xbf16, #tpu.memory_space<vmem>>, vector<4x32xbf16>
    %cst_32 = arith.constant dense<0.000000e+00> : vector<256x32xf32>
    %43 = tpu.matmul %41, %42, %cst_32 {dimension_numbers = #tpu.dot_dimension_numbers<[1], [0], [0], [1], [0, 0, 1, 1], [], []>} : vector<256x4xbf16>, vector<4x32xbf16>, vector<256x32xf32> -> vector<256x32xf32>
    %c0_33 = arith.constant 0 : index
    %c0_34 = arith.constant 0 : index
    %44 = vector.load %arg8[%c0_33, %c0_34] : memref<1x32xf32, #tpu.memory_space<vmem>>, vector<1x32xf32>
    %45 = vector.broadcast %44 : vector<1x32xf32> to vector<256x32xf32>
    %46 = arith.addf %43, %45 : vector<256x32xf32>
    %cst_35 = arith.constant 0.000000e+00 : f32
    %47 = vector.broadcast %cst_35 : f32 to vector<256x32xf32>
    %48 = arith.maximumf %46, %47 : vector<256x32xf32>
    %49 = arith.truncf %48 : vector<256x32xf32> to vector<256x32xbf16>
    %c24 = arith.constant 24 : index
    %c0_36 = arith.constant 0 : index
    %50 = vector.load %arg13[%c24, %c0_36] : memref<304x32xbf16, #tpu.memory_space<vmem>>, vector<256x32xbf16>
    tpu.vector_store %arg13[%c24, %c0_36], %49 {strides = array<i32>} : memref<304x32xbf16, #tpu.memory_space<vmem>>, vector<256x32xbf16>,
    %c0_37 = arith.constant 0 : index
    %c0_38 = arith.constant 0 : index
    %c0_39 = arith.constant 0 : index
    %51 = vector.load %arg4[%c0_37, %c0_38, %c0_39] : memref<1x16x4xbf16, #tpu.memory_space<vmem>>, vector<1x16x4xbf16>
    %52 = vector.shape_cast %51 : vector<1x16x4xbf16> to vector<16x4xbf16>
    %53 = arith.extf %52 : vector<16x4xbf16> to vector<16x4xf32>
    %c0_40 = arith.constant 0 : index
    %c0_41 = arith.constant 0 : index
    %54 = vector.load %arg5[%c0_40, %c0_41] : memref<1x4xf32, #tpu.memory_space<vmem>>, vector<1x4xf32>
    %55 = vector.broadcast %54 : vector<1x4xf32> to vector<16x4xf32>
    %56 = arith.mulf %53, %55 : vector<16x4xf32>
    %c0_42 = arith.constant 0 : index
    %c0_43 = arith.constant 0 : index
    %57 = vector.load %arg6[%c0_42, %c0_43] : memref<1x4xf32, #tpu.memory_space<vmem>>, vector<1x4xf32>
    %58 = vector.broadcast %57 : vector<1x4xf32> to vector<16x4xf32>
    %59 = arith.addf %56, %58 : vector<16x4xf32>
    %cst_44 = arith.constant 0.000000e+00 : f32
    %60 = vector.broadcast %cst_44 : f32 to vector<16x4xf32>
    %61 = arith.maximumf %59, %60 : vector<16x4xf32>
    %62 = arith.truncf %61 : vector<16x4xf32> to vector<16x4xbf16>
    %c0_45 = arith.constant 0 : index
    %c0_46 = arith.constant 0 : index
    %63 = vector.load %arg7[%c0_45, %c0_46] : memref<4x32xbf16, #tpu.memory_space<vmem>>, vector<4x32xbf16>
    %cst_47 = arith.constant dense<0.000000e+00> : vector<16x32xf32>
    %64 = tpu.matmul %62, %63, %cst_47 {dimension_numbers = #tpu.dot_dimension_numbers<[1], [0], [0], [1], [0, 0, 1, 1], [], []>} : vector<16x4xbf16>, vector<4x32xbf16>, vector<16x32xf32> -> vector<16x32xf32>
    %c0_48 = arith.constant 0 : index
    %c0_49 = arith.constant 0 : index
    %65 = vector.load %arg8[%c0_48, %c0_49] : memref<1x32xf32, #tpu.memory_space<vmem>>, vector<1x32xf32>
    %66 = vector.broadcast %65 : vector<1x32xf32> to vector<16x32xf32>
    %67 = arith.addf %64, %66 : vector<16x32xf32>
    %cst_50 = arith.constant 0.000000e+00 : f32
    %68 = vector.broadcast %cst_50 : f32 to vector<16x32xf32>
    %69 = arith.maximumf %67, %68 : vector<16x32xf32>
    %70 = vector.broadcast %6 : f32 to vector<16x32xf32>
    %71 = arith.mulf %69, %70 : vector<16x32xf32>
    %72 = arith.truncf %71 : vector<16x32xf32> to vector<16x32xbf16>
    %c280 = arith.constant 280 : index
    %c0_51 = arith.constant 0 : index
    %73 = vector.load %arg13[%c280, %c0_51] : memref<304x32xbf16, #tpu.memory_space<vmem>>, vector<16x32xbf16>
    tpu.vector_store %arg13[%c280, %c0_51], %72 {strides = array<i32>} : memref<304x32xbf16, #tpu.memory_space<vmem>>, vector<16x32xbf16>,
    %c8_52 = arith.constant 8 : index
    %c0_53 = arith.constant 0 : index
    %74 = vector.load %arg13[%c8_52, %c0_53] : memref<304x32xbf16, #tpu.memory_space<vmem>>, vector<288x32xbf16>
    %c7 = arith.constant 7 : index
    %c0_54 = arith.constant 0 : index
    %75 = vector.load %arg13[%c7, %c0_54] : memref<304x32xbf16, #tpu.memory_space<vmem>>, vector<288x32xbf16>
    %c0_55 = arith.constant 0 : index
    %c0_56 = arith.constant 0 : index
    %76 = vector.load %arg10[%c0_55, %c0_56] : memref<288x1xbf16, #tpu.memory_space<vmem>>, vector<288x1xbf16>
    %77 = vector.broadcast %76 : vector<288x1xbf16> to vector<288x32xbf16>
    %78 = arith.mulf %75, %77 : vector<288x32xbf16>
    %c9 = arith.constant 9 : index
    %c0_57 = arith.constant 0 : index
    %79 = vector.load %arg13[%c9, %c0_57] : memref<304x32xbf16, #tpu.memory_space<vmem>>, vector<288x32xbf16>
    %c0_58 = arith.constant 0 : index
    %c0_59 = arith.constant 0 : index
    %80 = vector.load %arg11[%c0_58, %c0_59] : memref<288x1xbf16, #tpu.memory_space<vmem>>, vector<288x1xbf16>
    %81 = vector.broadcast %80 : vector<288x1xbf16> to vector<288x32xbf16>
    %82 = arith.mulf %79, %81 : vector<288x32xbf16>
    %c0_60 = arith.constant 0 : index
    %c0_61 = arith.constant 0 : index
    %c0_62 = arith.constant 0 : index
    %83 = vector.load %arg9[%c0_60, %c0_61, %c0_62] : memref<3x96x128xbf16, #tpu.memory_space<vmem>>, vector<1x96x128xbf16>
    %84 = vector.shape_cast %83 : vector<1x96x128xbf16> to vector<96x128xbf16>
    %85 = vector.extract_strided_slice %78 {offsets = [0, 0], sizes = [256, 32], strides = [1, 1]} : vector<288x32xbf16> to vector<256x32xbf16>
    %86 = vector.extract_strided_slice %84 {offsets = [0, 0], sizes = [32, 128], strides = [1, 1]} : vector<96x128xbf16> to vector<32x128xbf16>
    %cst_63 = arith.constant dense<0.000000e+00> : vector<256x128xf32>
    %87 = tpu.matmul %85, %86, %cst_63 {dimension_numbers = #tpu.dot_dimension_numbers<[1], [0], [0], [1], [0, 0, 1, 1], [], []>} : vector<256x32xbf16>, vector<32x128xbf16>, vector<256x128xf32> -> vector<256x128xf32>
    %88 = vector.extract_strided_slice %74 {offsets = [0, 0], sizes = [256, 32], strides = [1, 1]} : vector<288x32xbf16> to vector<256x32xbf16>
    %89 = vector.extract_strided_slice %84 {offsets = [32, 0], sizes = [32, 128], strides = [1, 1]} : vector<96x128xbf16> to vector<32x128xbf16>
    %cst_64 = arith.constant dense<0.000000e+00> : vector<256x128xf32>
    %90 = tpu.matmul %88, %89, %cst_64 {dimension_numbers = #tpu.dot_dimension_numbers<[1], [0], [0], [1], [0, 0, 1, 1], [], []>} : vector<256x32xbf16>, vector<32x128xbf16>, vector<256x128xf32> -> vector<256x128xf32>
    %91 = arith.addf %87, %90 : vector<256x128xf32>
    %92 = vector.extract_strided_slice %82 {offsets = [0, 0], sizes = [256, 32], strides = [1, 1]} : vector<288x32xbf16> to vector<256x32xbf16>
    %93 = vector.extract_strided_slice %84 {offsets = [64, 0], sizes = [32, 128], strides = [1, 1]} : vector<96x128xbf16> to vector<32x128xbf16>
    %cst_65 = arith.constant dense<0.000000e+00> : vector<256x128xf32>
    %94 = tpu.matmul %92, %93, %cst_65 {dimension_numbers = #tpu.dot_dimension_numbers<[1], [0], [0], [1], [0, 0, 1, 1], [], []>} : vector<256x32xbf16>, vector<32x128xbf16>, vector<256x128xf32> -> vector<256x128xf32>
    %95 = arith.addf %91, %94 : vector<256x128xf32>
    %c1 = arith.constant 1 : index
    %c0_66 = arith.constant 0 : index
    %c0_67 = arith.constant 0 : index
    %96 = vector.load %arg9[%c1, %c0_66, %c0_67] : memref<3x96x128xbf16, #tpu.memory_space<vmem>>, vector<1x96x128xbf16>
    %97 = vector.shape_cast %96 : vector<1x96x128xbf16> to vector<96x128xbf16>
    %98 = vector.extract_strided_slice %78 {offsets = [16, 0], sizes = [256, 32], strides = [1, 1]} : vector<288x32xbf16> to vector<256x32xbf16>
    %99 = vector.extract_strided_slice %97 {offsets = [0, 0], sizes = [32, 128], strides = [1, 1]} : vector<96x128xbf16> to vector<32x128xbf16>
    %cst_68 = arith.constant dense<0.000000e+00> : vector<256x128xf32>
    %100 = tpu.matmul %98, %99, %cst_68 {dimension_numbers = #tpu.dot_dimension_numbers<[1], [0], [0], [1], [0, 0, 1, 1], [], []>} : vector<256x32xbf16>, vector<32x128xbf16>, vector<256x128xf32> -> vector<256x128xf32>
    %101 = arith.addf %95, %100 : vector<256x128xf32>
    %102 = vector.extract_strided_slice %74 {offsets = [16, 0], sizes = [256, 32], strides = [1, 1]} : vector<288x32xbf16> to vector<256x32xbf16>
    %103 = vector.extract_strided_slice %97 {offsets = [32, 0], sizes = [32, 128], strides = [1, 1]} : vector<96x128xbf16> to vector<32x128xbf16>
    %cst_69 = arith.constant dense<0.000000e+00> : vector<256x128xf32>
    %104 = tpu.matmul %102, %103, %cst_69 {dimension_numbers = #tpu.dot_dimension_numbers<[1], [0], [0], [1], [0, 0, 1, 1], [], []>} : vector<256x32xbf16>, vector<32x128xbf16>, vector<256x128xf32> -> vector<256x128xf32>
    %105 = arith.addf %101, %104 : vector<256x128xf32>
    %106 = vector.extract_strided_slice %82 {offsets = [16, 0], sizes = [256, 32], strides = [1, 1]} : vector<288x32xbf16> to vector<256x32xbf16>
    %107 = vector.extract_strided_slice %97 {offsets = [64, 0], sizes = [32, 128], strides = [1, 1]} : vector<96x128xbf16> to vector<32x128xbf16>
    %cst_70 = arith.constant dense<0.000000e+00> : vector<256x128xf32>
    %108 = tpu.matmul %106, %107, %cst_70 {dimension_numbers = #tpu.dot_dimension_numbers<[1], [0], [0], [1], [0, 0, 1, 1], [], []>} : vector<256x32xbf16>, vector<32x128xbf16>, vector<256x128xf32> -> vector<256x128xf32>
    %109 = arith.addf %105, %108 : vector<256x128xf32>
    %c2 = arith.constant 2 : index
    %c0_71 = arith.constant 0 : index
    %c0_72 = arith.constant 0 : index
    %110 = vector.load %arg9[%c2, %c0_71, %c0_72] : memref<3x96x128xbf16, #tpu.memory_space<vmem>>, vector<1x96x128xbf16>
    %111 = vector.shape_cast %110 : vector<1x96x128xbf16> to vector<96x128xbf16>
    %112 = vector.extract_strided_slice %78 {offsets = [32, 0], sizes = [256, 32], strides = [1, 1]} : vector<288x32xbf16> to vector<256x32xbf16>
    %113 = vector.extract_strided_slice %111 {offsets = [0, 0], sizes = [32, 128], strides = [1, 1]} : vector<96x128xbf16> to vector<32x128xbf16>
    %cst_73 = arith.constant dense<0.000000e+00> : vector<256x128xf32>
    %114 = tpu.matmul %112, %113, %cst_73 {dimension_numbers = #tpu.dot_dimension_numbers<[1], [0], [0], [1], [0, 0, 1, 1], [], []>} : vector<256x32xbf16>, vector<32x128xbf16>, vector<256x128xf32> -> vector<256x128xf32>
    %115 = arith.addf %109, %114 : vector<256x128xf32>
    %116 = vector.extract_strided_slice %74 {offsets = [32, 0], sizes = [256, 32], strides = [1, 1]} : vector<288x32xbf16> to vector<256x32xbf16>
    %117 = vector.extract_strided_slice %111 {offsets = [32, 0], sizes = [32, 128], strides = [1, 1]} : vector<96x128xbf16> to vector<32x128xbf16>
    %cst_74 = arith.constant dense<0.000000e+00> : vector<256x128xf32>
    %118 = tpu.matmul %116, %117, %cst_74 {dimension_numbers = #tpu.dot_dimension_numbers<[1], [0], [0], [1], [0, 0, 1, 1], [], []>} : vector<256x32xbf16>, vector<32x128xbf16>, vector<256x128xf32> -> vector<256x128xf32>
    %119 = arith.addf %115, %118 : vector<256x128xf32>
    %120 = vector.extract_strided_slice %82 {offsets = [32, 0], sizes = [256, 32], strides = [1, 1]} : vector<288x32xbf16> to vector<256x32xbf16>
    %121 = vector.extract_strided_slice %111 {offsets = [64, 0], sizes = [32, 128], strides = [1, 1]} : vector<96x128xbf16> to vector<32x128xbf16>
    %cst_75 = arith.constant dense<0.000000e+00> : vector<256x128xf32>
    %122 = tpu.matmul %120, %121, %cst_75 {dimension_numbers = #tpu.dot_dimension_numbers<[1], [0], [0], [1], [0, 0, 1, 1], [], []>} : vector<256x32xbf16>, vector<32x128xbf16>, vector<256x128xf32> -> vector<256x128xf32>
    %123 = arith.addf %119, %122 : vector<256x128xf32>
    %124 = arith.truncf %123 : vector<256x128xf32> to vector<256x128xbf16>
    %c0_76 = arith.constant 0 : index
    %c0_77 = arith.constant 0 : index
    %c0_78 = arith.constant 0 : index
    %125 = vector.load %arg12[%c0_76, %c0_77, %c0_78] : memref<1x256x128xbf16, #tpu.memory_space<vmem>>, vector<1x256x128xbf16>
    %126 = vector.shape_cast %125 : vector<1x256x128xbf16> to vector<256x128xbf16>
    %127 = vector.shape_cast %124 : vector<256x128xbf16> to vector<1x256x128xbf16>
    tpu.vector_store %arg12[%c0_76, %c0_77, %c0_78], %127 {strides = array<i32>} : memref<1x256x128xbf16, #tpu.memory_space<vmem>>, vector<1x256x128xbf16>,
    return
  }
  func.func @transform_0(%arg0: i32, %arg1: i32) -> (i32, i32, i32) {
    %c0_i32 = arith.constant 0 : i32
    %c0_i32_0 = arith.constant 0 : i32
    return %arg0, %arg1, %c0_i32 : i32, i32, i32
  }
  func.func @transform_1(%arg0: i32, %arg1: i32) -> (i32, i32, i32) {
    %c16_i32 = arith.constant 16 : i32
    %0 = arith.muli %arg1, %c16_i32 : i32
    %c1_i32 = arith.constant 1 : i32
    %1 = arith.subi %0, %c1_i32 : i32
    %c0_i32 = arith.constant 0 : i32
    %2 = arith.maxsi %1, %c0_i32 : i32
    %c0_i32_0 = arith.constant 0 : i32
    %c0_i32_1 = arith.constant 0 : i32
    return %arg0, %2, %c0_i32_0 : i32, i32, i32
  }
  func.func @transform_2(%arg0: i32, %arg1: i32) -> (i32, i32, i32) {
    %c1_i32 = arith.constant 1 : i32
    %0 = arith.addi %arg1, %c1_i32 : i32
    %c16_i32 = arith.constant 16 : i32
    %1 = arith.muli %0, %c16_i32 : i32
    %c15_i32 = arith.constant 15 : i32
    %2 = arith.minsi %1, %c15_i32 : i32
    %c0_i32 = arith.constant 0 : i32
    %c0_i32_0 = arith.constant 0 : i32
    return %arg0, %2, %c0_i32 : i32, i32, i32
  }
  func.func @transform_3(%arg0: i32, %arg1: i32) -> (i32, i32) {
    %c0_i32 = arith.constant 0 : i32
    %c0_i32_0 = arith.constant 0 : i32
    %c0_i32_1 = arith.constant 0 : i32
    return %c0_i32, %c0_i32_0 : i32, i32
  }
  func.func @transform_4(%arg0: i32, %arg1: i32) -> (i32, i32) {
    %c0_i32 = arith.constant 0 : i32
    %c0_i32_0 = arith.constant 0 : i32
    %c0_i32_1 = arith.constant 0 : i32
    return %c0_i32, %c0_i32_0 : i32, i32
  }
  func.func @transform_5(%arg0: i32, %arg1: i32) -> (i32, i32) {
    %c0_i32 = arith.constant 0 : i32
    %c0_i32_0 = arith.constant 0 : i32
    %c0_i32_1 = arith.constant 0 : i32
    return %c0_i32, %c0_i32_0 : i32, i32
  }
  func.func @transform_6(%arg0: i32, %arg1: i32) -> (i32, i32) {
    %c0_i32 = arith.constant 0 : i32
    %c0_i32_0 = arith.constant 0 : i32
    %c0_i32_1 = arith.constant 0 : i32
    return %c0_i32, %c0_i32_0 : i32, i32
  }
  func.func @transform_7(%arg0: i32, %arg1: i32) -> (i32, i32, i32) {
    %c0_i32 = arith.constant 0 : i32
    %c0_i32_0 = arith.constant 0 : i32
    %c0_i32_1 = arith.constant 0 : i32
    %c0_i32_2 = arith.constant 0 : i32
    return %c0_i32, %c0_i32_0, %c0_i32_1 : i32, i32, i32
  }
  func.func @transform_8(%arg0: i32, %arg1: i32) -> (i32, i32) {
    %c0_i32 = arith.constant 0 : i32
    %c0_i32_0 = arith.constant 0 : i32
    %c0_i32_1 = arith.constant 0 : i32
    return %c0_i32, %c0_i32_0 : i32, i32
  }
  func.func @transform_9(%arg0: i32, %arg1: i32) -> (i32, i32) {
    %c0_i32 = arith.constant 0 : i32
    %c0_i32_0 = arith.constant 0 : i32
    %c0_i32_1 = arith.constant 0 : i32
    return %c0_i32, %c0_i32_0 : i32, i32
  }
  func.func @transform_10(%arg0: i32, %arg1: i32) -> (i32, i32, i32) {
    %c0_i32 = arith.constant 0 : i32
    %c0_i32_0 = arith.constant 0 : i32
    return %arg0, %arg1, %c0_i32 : i32, i32, i32
  }
}

</mosaic_0001>

<bundles_post_ra>
// kernel: bottleneck_block_forward.1
= control target key start
LH: loop header
LB: loop body
LE: loop exit
PB: predicated region body
PF: predicated region fallthrough
CT: control target
= control target key end

     0   :  { %s6915_s13 = smov 0   ;;  %s6917_s14 = smov 0   ;;  %s8436_s0 = inlined_call_operand.vmem [shape: bf16[2,256,4], index: 0, kind: input, shape index: {}, may-alias: {0,1,2}]   ;;  %s8437_s1 = inlined_call_operand.vmem [shape: bf16[2,256,4], index: 1, kind: input, shape index: {}, may-alias: {0,1,2}]   ;;  %s8438_s2 = inlined_call_operand.vmem [shape: bf16[2,256,4], index: 2, kind: input, shape index: {}, may-alias: {0,1,2}]   ;;  %s8439_s3 = inlined_call_operand.vmem [shape: f32[1,4], index: 3, kind: input, shape index: {}]   ;;  %s8440_s4 = inlined_call_operand.vmem [shape: f32[1,4], index: 4, kind: input, shape index: {}]   ;;  %s8441_s5 = inlined_call_operand.vmem [shape: bf16[4,32], index: 5, kind: input, shape index: {}]   ;;  %s8442_s6 = inlined_call_operand.vmem [shape: f32[1,32], index: 6, kind: input, shape index: {}]   ;;  %s8443_s7 = inlined_call_operand.vmem [shape: bf16[3,96,128], index: 7, kind: input, shape index: {}]   ;;  %s8444_s8 = inlined_call_operand.vmem [shape: bf16[288,1], index: 8, kind: input, shape index: {}]   ;;  %s8445_s9 = inlined_call_operand.vmem [shape: bf16[288,1], index: 9, kind: input, shape index: {}]   ;;  %s8446_s10 = inlined_call_operand.vmem [shape: bf16[2,256,128], index: 10, kind: output, shape index: {}]  }
   0x1   :  { %s6919_s15 = smov 0  }
   0x2 LB: > { %s32_s16 = sadd.s32 1, %s6850_s14  ;;  %p5462_p0 = scmp.ge.s32.totalorder %s6854_s15, 1  ;;  %s6854_s15 = sphi %s6919_s15, %s20_s15   ;;  %s6850_s14 = sphi %s6917_s14, %s8526_s14   ;;  %s6846_s13 = sphi %s6915_s13, %s8525_s13  }
   0x3   : > { %p34_p1 = scmp.ge.s32.totalorder %s32_s16, 2  ;;  %p399_p2 = scmp.lt.s32.totalorder %s6854_s15, 3 }
   0x5   : > { %s8528_s16 = smov (%p34_p1, %s32_s16), 0  ;;  %p400_p3 = pnand %p5462_p0, %p399_p2 }
   0x7   : > { %403 = sbr.rel (%p400_p3) target bundleno = 816 (0x330), region = 60 }
   0xe   : > { %v561_v0 = vld [vmem:[%s8441_s5] sm:$0x3]  ;;  %vm573_vm0 = vcmask 1041408   ;;  %p472_p4 = scmp.lt.s32.totalorder %s6846_s13, 1  ;;  %v6856_v1 = vmov 0.0   ;;  %vm6857_vm1 = vmmov 0  }
   0xf   : > { %6157 = vmatprep.subr.bf16.mxu1 %v6856_v1  ;;  %v575_v2 = vsel %vm573_vm0, %v561_v0, 0  ;;  %6159 = vmatprep.mubr.msk.bf16.mxu1 %vm6857_vm1, %v6856_v1  ;;  %v6941_v3 = vld [vmem:[%s8441_s5] sm:$0x3]  ;;  %vm530_vm2 = vcmask 261124   ;;  %v6858_v4 = vmov 0   ;;  %vm528_vm3 = vcmask 257024  }
  0x10   : > { %6158 = vmatpush3.bf16.msra.mxu1 %v575_v2  ;;  %s8530_s13 = smov (!%p472_p4, %s6846_s13), 1  ;;  %6197 = vmatprep.subr.bf16.mxu0 %v6856_v1  ;;  %531 = vst.msk [vmem:[#allocation2 + $0x90] sm:$0xf0] %vm530_vm2, %v6858_v4  ;;  %v2042_v5 = vld [vmem:[%s8445_s9 + $0x8] sm:$0xf]  ;;  %vm569_vm4 = vcmask 31744  }
  0x11   : > { %6783 = vmatprep.subr.msk.bf16.mxu1 %vm573_vm0, %v6941_v3  ;;  %6813 = vset.pattern.permute.xlu1 %v6858_v4  ;;  %v2040_v6 = vld [vmem:[%s8445_s9] sm:$0xf]  ;;  %s6952_s25 = sshll.u32 %s8530_s13, 7  ;;  %529 = vst.msk [vmem:[#allocation2] sm:$0xf] %vm528_vm3, %v6858_v4  ;;  %v876_v46 = vsel %vm573_vm0, %v6941_v3, 0 }
  0x12   : > { %6812 = vset.pattern.permute.xlu0 %v6858_v4  ;;  %2102 = vperm.xlu1 %6813, %v2042_v5   ;;  %s6959_s28 = scalar_lea.vmem %s8436_s0, %s6952_s25  ;;  %s493_s11 = scalar_lea.vmem %s8437_s1, %s6952_s25  ;;  %v6968_v7 = vld [vmem:[%s8439_s3] ss:$0 sm:$0xff]  ;;  %v2043_v8 = vld [vmem:[%s8445_s9 + $0xc] sm:$0xf]  ;;  %v2041_v9 = vld [vmem:[%s8445_s9 + $0x4] sm:$0xf] }
  0x13   : > { %2078 = vperm.xlu0 %6812, %v2040_v6   ;;  %6199 = vmatprep.mubr.msk.bf16.mxu0 %vm6857_vm1, %v6856_v1  ;;  %v5792_v10 = vld [vmem:[%s493_s11] sm:$0xff]   ;;  %v5944_v12 = vld [vmem:[%s6959_s28 + $0x8] sm:$0xff]   ;;  %v5945_v17 = vld [vmem:[%s6959_s28 + $0x10] sm:$0xff]   ;;  %s5757_s30 = sadd.s32 120, %s6952_s25  ;;  %vm2598_vm5 = vsmask.f32 4352  ;;  %s8393_s13 = scalar_lea.vmem %s8446_s10, %s6952_s25 }
  0x14   : > { %v5796_v11 = vld [vmem:[%s6959_s28] sm:$0xff]   ;;  %v5793_v13 = vunpack.c.l.bf16 %v5792_v10  ;;  %v5794_v14 = vunpack.c.h.bf16 %v5792_v10  ;;  %v5801_v19 = vunpack.c.l.bf16 %v5944_v12  ;;  %v5802_v20 = vunpack.c.h.bf16 %v5944_v12  ;;  %v2045_v27 = vld [vmem:[%s8445_s9 + $0x14] sm:$0xf]  ;;  %v2044_v30 = vld [vmem:[%s8445_s9 + $0x10] sm:$0xf]  ;;  %s511_s18 = scalar_lea.vmem %s8438_s2, %s5757_s30 }
  0x15   : > { %v5797_v15 = vunpack.c.l.bf16 %v5796_v11  ;;  %v5798_v16 = vunpack.c.h.bf16 %v5796_v11  ;;  %v6983_v18 = vld [vmem:[%s8440_s4] ss:$0 sm:$0xff]  ;;  %v5805_v21 = vunpack.c.l.bf16 %v5945_v17  ;;  %v5806_v22 = vunpack.c.h.bf16 %v5945_v17  ;;  %v2047_v39 = vld [vmem:[%s8445_s9 + $0x1c] sm:$0xf]  ;;  %v2046_v47 = vld [vmem:[%s8445_s9 + $0x18] sm:$0xf] }
  0x16   : > { %2114 = vperm.xlu1 %6813, %v2043_v8   ;;  %v547_v23 = vmul.f32 %v5793_v13, %v6968_v7  ;;  %v548_v24 = vmul.f32 %v5794_v14, %v6968_v7  ;;  %v702_v28 = vmul.f32 %v5801_v19, %v6968_v7  ;;  %v703_v29 = vmul.f32 %v5802_v20, %v6968_v7  ;;  %v5946_v40 = vld [vmem:[%s6959_s28 + $0x18] sm:$0xff]   ;;  %v5947_v45 = vld [vmem:[%s6959_s28 + $0x20] sm:$0xff]   ;;  %v5948_v61 = vld [vmem:[%s6959_s28 + $0x28] sm:$0xff]  }
  0x17   : > { %2090 = vperm.xlu0 %6812, %v2041_v9   ;;  %v700_v25 = vmul.f32 %v5797_v15, %v6968_v7  ;;  %v701_v26 = vmul.f32 %v5798_v16, %v6968_v7  ;;  %v704_v31 = vmul.f32 %v5805_v21, %v6968_v7  ;;  %v705_v32 = vmul.f32 %v5806_v22, %v6968_v7  ;;  %v2049_v60 = vld [vmem:[%s8445_s9 + $0x24] sm:$0xf]  ;;  %v2048_v0 = vld [vmem:[%s8445_s9 + $0x20] sm:$0xf]  ;;  %v5949_v3 = vld [vmem:[%s6959_s28 + $0x30] sm:$0xff]  }
  0x18   : > { %v556_v33 = vadd.f32 %v6983_v18, %v547_v23  ;;  %v557_v34 = vadd.f32 %v6983_v18, %v548_v24  ;;  %v741_v37 = vadd.f32 %v6983_v18, %v702_v28  ;;  %v742_v38 = vadd.f32 %v6983_v18, %v703_v29  ;;  %v2051_v10 = vld [vmem:[%s8445_s9 + $0x2c] sm:$0xf]  ;;  %v2050_v14 = vld [vmem:[%s8445_s9 + $0x28] sm:$0xf]  ;;  %v5950_v20 = vld [vmem:[%s6959_s28 + $0x38] sm:$0xff]  }
  0x19   : > { %v739_v35 = vadd.f32 %v6983_v18, %v700_v25  ;;  %v740_v36 = vadd.f32 %v6983_v18, %v701_v26  ;;  %v743_v48 = vadd.f32 %v6983_v18, %v704_v31  ;;  %v744_v49 = vadd.f32 %v6983_v18, %v705_v32  ;;  %v1195_v21 = vld [vmem:[%s8441_s5] sm:$0x3]  ;;  %v2053_v24 = vld [vmem:[%s8445_s9 + $0x34] sm:$0xf]  ;;  %v2052_v29 = vld [vmem:[%s8445_s9 + $0x30] sm:$0xf] }
  0x1a   : > { %2138 = vperm.xlu1 %6813, %v2045_v27   ;;  %v558_v41 = vmax.f32 %v556_v33, 0.0  ;;  %v559_v42 = vmax.f32 %v557_v34, 0.0  ;;  %v5809_v52 = vunpack.c.l.bf16 %v5946_v40  ;;  %v5810_v53 = vunpack.c.h.bf16 %v5946_v40  ;;  %v5951_v32 = vld [vmem:[%s6959_s28 + $0x40] sm:$0xff]  }
  0x1b   : > { %v771_v43 = vmax.f32 %v739_v35, 0.0  ;;  %v772_v44 = vmax.f32 %v740_v36, 0.0  ;;  %2126 = vperm.xlu0 %6812, %v2044_v30   ;;  %v773_v54 = vmax.f32 %v741_v37, 0.0  ;;  %v774_v55 = vmax.f32 %v742_v38, 0.0  ;;  %v2055_v37 = vld [vmem:[%s8445_s9 + $0x3c] sm:$0xf] }
  0x1c   : > { %v560_v50 = vpack.c.bf16 %v559_v42, %v558_v41  ;;  %v5813_v56 = vunpack.c.l.bf16 %v5947_v45  ;;  %v5814_v57 = vunpack.c.h.bf16 %v5947_v45  ;;  %v706_v58 = vmul.f32 %v5809_v52, %v6968_v7  ;;  %v2054_v41 = vld [vmem:[%s8445_s9 + $0x38] sm:$0xf] }
  0x1d   : > { %v803_v51 = vpack.c.bf16 %v772_v44, %v771_v43  ;;  %v707_v59 = vmul.f32 %v5810_v53, %v6968_v7  ;;  %v775_v62 = vmax.f32 %v743_v48, 0.0  ;;  %v776_v63 = vmax.f32 %v744_v49, 0.0  ;;  %v5952_v44 = vld [vmem:[%s6959_s28 + $0x48] sm:$0xff]   ;;  %v2057_v53 = vld [vmem:[%s8445_s9 + $0x44] sm:$0xf] }
  0x1e   : > { %2162 = vperm.xlu1 %6813, %v2047_v39   ;;  %6160 = vmatmul.mubr.msk.bf16.vlgmr.msra.gmra.mrb[0].mxu1 %vm569_vm4, %v560_v50  ;;  %v708_v1 = vmul.f32 %v5813_v56, %v6968_v7  ;;  %v709_v2 = vmul.f32 %v5814_v57, %v6968_v7  ;;  %v804_v4 = vpack.c.bf16 %v774_v55, %v773_v54  ;;  %v5817_v5 = vunpack.c.l.bf16 %v5948_v61  ;;  %v5953_v50 = vld [vmem:[%s6959_s28 + $0x50] sm:$0xff]   ;;  %v2056_v56 = vld [vmem:[%s8445_s9 + $0x40] sm:$0xf] }
  0x1f   : > { %2150 = vperm.xlu0 %6812, %v2046_v47   ;;  %6164 = vmatpush3.bf16.msra.mxu1 %v876_v46  ;;  %v5818_v6 = vunpack.c.h.bf16 %v5948_v61  ;;  %v745_v8 = vadd.f32 %v6983_v18, %v706_v58  ;;  %v746_v9 = vadd.f32 %v6983_v18, %v707_v59  ;;  %v5821_v11 = vunpack.c.l.bf16 %v5949_v3  ;;  %v5860_v47 = vld [vmem:[%s511_s18] sm:$0xff]  }
  0x20   : > { %6165 = vmatprep.mubr.msk.bf16.mxu1 %vm569_vm4, %v803_v51  ;;  %v5822_v12 = vunpack.c.h.bf16 %v5949_v3  ;;  %v805_v13 = vpack.c.bf16 %v776_v63, %v775_v62  ;;  %v747_v15 = vadd.f32 %v6983_v18, %v708_v1  ;;  %v748_v16 = vadd.f32 %v6983_v18, %v709_v2 }
  0x21   : > { %v710_v17 = vmul.f32 %v5817_v5, %v6968_v7  ;;  %v711_v19 = vmul.f32 %v5818_v6, %v6968_v7  ;;  %v777_v22 = vmax.f32 %v745_v8, 0.0  ;;  %v778_v23 = vmax.f32 %v746_v9, 0.0  ;;  %v2059_v5 = vld [vmem:[%s8445_s9 + $0x4c] sm:$0xf]  ;;  %v2058_v9 = vld [vmem:[%s8445_s9 + $0x48] sm:$0xf] }
  0x22   : > { %2186 = vperm.xlu1 %6813, %v2049_v60   ;;  %v712_v25 = vmul.f32 %v5821_v11, %v6968_v7  ;;  %v713_v26 = vmul.f32 %v5822_v12, %v6968_v7  ;;  %v779_v27 = vmax.f32 %v747_v15, 0.0  ;;  %v780_v28 = vmax.f32 %v748_v16, 0.0 }
  0x23   : > { %2174 = vperm.xlu0 %6812, %v2048_v0   ;;  %v5825_v30 = vunpack.c.l.bf16 %v5950_v20  ;;  %v5826_v31 = vunpack.c.h.bf16 %v5950_v20  ;;  %v1207_v33 = vsel %vm573_vm0, %v1195_v21, 0  ;;  %v749_v34 = vadd.f32 %v6983_v18, %v710_v17  ;;  %v2061_v17 = vld [vmem:[%s8445_s9 + $0x54] sm:$0xf]  ;;  %v2060_v21 = vld [vmem:[%s8445_s9 + $0x50] sm:$0xf] }
  0x24   : > { %v750_v35 = vadd.f32 %v6983_v18, %v711_v19  ;;  %6198 = vmatpush3.bf16.msra.mxu0 %v1207_v33  ;;  %v806_v36 = vpack.c.bf16 %v778_v23, %v777_v22  ;;  %v751_v38 = vadd.f32 %v6983_v18, %v712_v25  ;;  %v752_v39 = vadd.f32 %v6983_v18, %v713_v26  ;;  %v5954_v25 = vld [vmem:[%s6959_s28 + $0x58] sm:$0xff]   ;;  %v5955_v33 = vld [vmem:[%s6959_s28 + $0x60] sm:$0xff]  }
  0x25   : > { %v807_v40 = vpack.c.bf16 %v780_v28, %v779_v27  ;;  %v5829_v42 = vunpack.c.l.bf16 %v5951_v32  ;;  %v5830_v43 = vunpack.c.h.bf16 %v5951_v32  ;;  %v714_v45 = vmul.f32 %v5825_v30, %v6968_v7  ;;  %v2063_v30 = vld [vmem:[%s8445_s9 + $0x5c] sm:$0xf] }
  0x26   : > { %2210 = vperm.xlu1 %6813, %v2051_v10   ;;  %6166 = vmatmul.mubr.msk.bf16.vlgmr.msra.gmra.mrb[4].mxu1 %vm569_vm4, %v804_v4  ;;  %v715_v46 = vmul.f32 %v5826_v31, %v6968_v7  ;;  %v781_v48 = vmax.f32 %v749_v34, 0.0  ;;  %v782_v49 = vmax.f32 %v750_v35, 0.0  ;;  %v783_v51 = vmax.f32 %v751_v38, 0.0 }
  0x27   : > { %2198 = vperm.xlu0 %6812, %v2050_v14   ;;  %6169 = vmatprep.mubr.msk.bf16.mxu1 %vm569_vm4, %v805_v13  ;;  %v784_v52 = vmax.f32 %v752_v39, 0.0  ;;  %v5833_v54 = vunpack.c.l.bf16 %v5952_v44  ;;  %v5834_v55 = vunpack.c.h.bf16 %v5952_v44  ;;  %v716_v57 = vmul.f32 %v5829_v42, %v6968_v7  ;;  %v5958_v14 = vld [vmem:[%s6959_s28 + $0x78] sm:$0xff]  }
  0x28   : > { %v717_v58 = vmul.f32 %v5830_v43, %v6968_v7  ;;  %v5861_v59 = vunpack.c.l.bf16 %v5860_v47  ;;  %v5862_v60 = vunpack.c.h.bf16 %v5860_v47  ;;  %v753_v61 = vadd.f32 %v6983_v18, %v714_v45 }
  0x29   : > { %v754_v62 = vadd.f32 %v6983_v18, %v715_v46  ;;  %v5837_v63 = vunpack.c.l.bf16 %v5953_v50  ;;  %v5838_v0 = vunpack.c.h.bf16 %v5953_v50  ;;  %v808_v3 = vpack.c.bf16 %v782_v49, %v781_v48  ;;  %v2065_v49 = vld [vmem:[%s8445_s9 + $0x64] sm:$0xf] }
  0x2a   : > { %2234 = vperm.xlu1 %6813, %v2053_v24   ;;  %v1181_v1 = vmul.f32 %v5861_v59, %v6968_v7  ;;  %v1182_v2 = vmul.f32 %v5862_v60, %v6968_v7  ;;  %v809_v4 = vpack.c.bf16 %v784_v52, %v783_v51  ;;  %v718_v6 = vmul.f32 %v5833_v54, %v6968_v7  ;;  %v5956_v54 = vld [vmem:[%s6959_s28 + $0x68] sm:$0xff]  }
  0x2b   : > { %2222 = vperm.xlu0 %6812, %v2052_v29   ;;  %v719_v8 = vmul.f32 %v5834_v55, %v6968_v7  ;;  %v755_v10 = vadd.f32 %v6983_v18, %v716_v57  ;;  %v756_v11 = vadd.f32 %v6983_v18, %v717_v58  ;;  %v785_v15 = vmax.f32 %v753_v61, 0.0  ;;  %v2067_v61 = vld [vmem:[%s8445_s9 + $0x6c] sm:$0xf] }
  0x2c   : > { %v1190_v12 = vadd.f32 %v6983_v18, %v1181_v1  ;;  %v1191_v13 = vadd.f32 %v6983_v18, %v1182_v2  ;;  %v786_v16 = vmax.f32 %v754_v62, 0.0  ;;  %v720_v19 = vmul.f32 %v5837_v63, %v6968_v7 }
  0x2d   : > { %v721_v20 = vmul.f32 %v5838_v0, %v6968_v7  ;;  %v757_v24 = vadd.f32 %v6983_v18, %v718_v6  ;;  %v787_v26 = vmax.f32 %v755_v10, 0.0  ;;  %v788_v27 = vmax.f32 %v756_v11, 0.0 }
  0x2e   : > { %2258 = vperm.xlu1 %6813, %v2055_v37   ;;  %6170 = vmatmul.mubr.msk.bf16.gmra.mrb[8].mxu1 %vm569_vm4, %v806_v36  ;;  %v1192_v22 = vmax.f32 %v1190_v12, 0.0  ;;  %v1193_v23 = vmax.f32 %v1191_v13, 0.0  ;;  %v758_v28 = vadd.f32 %v6983_v18, %v719_v8  ;;  %v759_v31 = vadd.f32 %v6983_v18, %v720_v19  ;;  %v2062_v37 = vld [vmem:[%s8445_s9 + $0x58] sm:$0xf]  ;;  %v2068_v19 = vld [vmem:[%s8445_s9 + $0x70] sm:$0xf] }
  0x2f   : > { %2246 = vperm.xlu0 %6812, %v2054_v41   ;;  %6173 = vmatprep.mubr.msk.bf16.mxu1 %vm569_vm4, %v807_v40  ;;  %v760_v32 = vadd.f32 %v6983_v18, %v721_v20  ;;  %v5857_v34 = vunpack.c.l.bf16 %v5958_v14  ;;  %v5858_v35 = vunpack.c.h.bf16 %v5958_v14  ;;  %v810_v36 = vpack.c.bf16 %v786_v16, %v785_v15  ;;  %v2069_v15 = vld [vmem:[%s8445_s9 + $0x74] sm:$0xf] }
  0x30   : > { %v1194_v29 = vpack.c.bf16 %v1193_v23, %v1192_v22  ;;  %v5841_v38 = vunpack.c.l.bf16 %v5954_v25  ;;  %v789_v39 = vmax.f32 %v757_v24, 0.0  ;;  %v5842_v40 = vunpack.c.h.bf16 %v5954_v25  ;;  %v2071_v25 = vld [vmem:[%s8445_s9 + $0x7c] sm:$0xf] }
  0x31   : > { %v730_v41 = vmul.f32 %v5857_v34, %v6968_v7  ;;  %v731_v42 = vmul.f32 %v5858_v35, %v6968_v7  ;;  %v811_v43 = vpack.c.bf16 %v788_v27, %v787_v26  ;;  %v790_v44 = vmax.f32 %v758_v28, 0.0  ;;  %v2070_v27 = vld [vmem:[%s8445_s9 + $0x78] sm:$0xf]  ;;  %v2072_v34 = vld [vmem:[%s8445_s9 + $0x80] sm:$0xf] }
  0x32   : > { %2282 = vperm.xlu1 %6813, %v2057_v53   ;;  %6200 = vmatmul.mubr.msk.bf16.vlgmr.msra.gmra.mrb[0].mxu0 %vm569_vm4, %v1194_v29  ;;  %v5845_v45 = vunpack.c.l.bf16 %v5955_v33  ;;  %v5846_v46 = vunpack.c.h.bf16 %v5955_v33  ;;  %v791_v47 = vmax.f32 %v759_v31, 0.0  ;;  %v792_v48 = vmax.f32 %v760_v32, 0.0  ;;  %v2064_v53 = vld [vmem:[%s8445_s9 + $0x60] sm:$0xf]  ;;  %v2073_v31 = vld [vmem:[%s8445_s9 + $0x84] sm:$0xf] }
  0x33   : > { %2270 = vperm.xlu0 %6812, %v2056_v56   ;;  %v769_v50 = vadd.f32 %v6983_v18, %v730_v41  ;;  %v770_v51 = vadd.f32 %v6983_v18, %v731_v42  ;;  %v722_v52 = vmul.f32 %v5841_v38, %v6968_v7  ;;  %v723_v55 = vmul.f32 %v5842_v40, %v6968_v7  ;;  %v5957_v56 = vld [vmem:[%s6959_s28 + $0x70] sm:$0xff]   ;;  %v2075_v35 = vld [vmem:[%s8445_s9 + $0x8c] sm:$0xf]  ;;  %v1282_v38 = vld [vmem:[%s8444_s8 + $0x4] sm:$0xf] }
  0x34   : > { %v724_v59 = vmul.f32 %v5845_v45, %v6968_v7  ;;  %v725_v60 = vmul.f32 %v5846_v46, %v6968_v7  ;;  %v812_v63 = vpack.c.bf16 %v790_v44, %v789_v39  ;;  %v813_v1 = vpack.c.bf16 %v792_v48, %v791_v47  ;;  %v1281_v39 = vld [vmem:[%s8444_s8] sm:$0xf]  ;;  %v1284_v40 = vld [vmem:[%s8444_s8 + $0xc] sm:$0xf]  ;;  %v1283_v41 = vld [vmem:[%s8444_s8 + $0x8] sm:$0xf] }
  0x35   : > { %v801_v57 = vmax.f32 %v769_v50, 0.0  ;;  %v802_v58 = vmax.f32 %v770_v51, 0.0  ;;  %v761_v0 = vadd.f32 %v6983_v18, %v722_v52  ;;  %v762_v2 = vadd.f32 %v6983_v18, %v723_v55  ;;  %v1286_v42 = vld [vmem:[%s8444_s8 + $0x14] sm:$0xf]  ;;  %v1288_v44 = vld [vmem:[%s8444_s8 + $0x1c] sm:$0xf] }
  0x36   : > { %2306 = vperm.xlu1 %6813, %v2059_v5   ;;  %6174 = vmatmul.mubr.msk.bf16.gmra.mrb[12].mxu1 %vm569_vm4, %v808_v3  ;;  %v5849_v3 = vunpack.c.l.bf16 %v5956_v54  ;;  %v2066_v5 = vld [vmem:[%s8445_s9 + $0x68] sm:$0xf]  ;;  %v763_v6 = vadd.f32 %v6983_v18, %v724_v59  ;;  %v764_v8 = vadd.f32 %v6983_v18, %v725_v60  ;;  %v5854_v10 = vunpack.c.h.bf16 %v5957_v56  ;;  %v1287_v45 = vld [vmem:[%s8444_s8 + $0x18] sm:$0xf]  ;;  %v1290_v46 = vld [vmem:[%s8444_s8 + $0x24] sm:$0xf] }
  0x37   : > { %2294 = vperm.xlu0 %6812, %v2058_v9   ;;  %6177 = vmatprep.mubr.msk.bf16.mxu1 %vm569_vm4, %v809_v4  ;;  %v7148_v62 = vpack.c.bf16 %v802_v58, %v801_v57  ;;  %v5850_v4 = vunpack.c.h.bf16 %v5956_v54  ;;  %v5853_v9 = vunpack.c.l.bf16 %v5957_v56  ;;  %v793_v11 = vmax.f32 %v761_v0, 0.0  ;;  %v1289_v47 = vld [vmem:[%s8444_s8 + $0x20] sm:$0xf]  ;;  %v1292_v48 = vld [vmem:[%s8444_s8 + $0x2c] sm:$0xf]  ;;  %v6814_v0 = vld [vmem:[%s8443_s7 + $0x10] sm:$0xff]  }
  0x38   : > { %v794_v12 = vmax.f32 %v762_v2, 0.0  ;;  %v726_v13 = vmul.f32 %v5849_v3, %v6968_v7  ;;  %v795_v16 = vmax.f32 %v763_v6, 0.0  ;;  %v1294_v50 = vld [vmem:[%s8444_s8 + $0x34] sm:$0xf]  ;;  %v1293_v51 = vld [vmem:[%s8444_s8 + $0x30] sm:$0xf]  ;;  %v1325_v3 = vlaneseq  ;;  %6203 = vmatprep.subr.bf16.mxu1 %v6814_v0 }
  0x39   : > { %v727_v14 = vmul.f32 %v5850_v4, %v6968_v7  ;;  %v728_v20 = vmul.f32 %v5853_v9, %v6968_v7  ;;  %v1296_v52 = vld [vmem:[%s8444_s8 + $0x3c] sm:$0xf]  ;;  %v1298_v54 = vld [vmem:[%s8444_s8 + $0x44] sm:$0xf]  ;;  %v1297_v55 = vld [vmem:[%s8444_s8 + $0x40] sm:$0xf]  ;;  %6204 = vmatpush3.bf16.msra.mxu1 %v6814_v0 }
  0x3a   : > { %2330 = vperm.xlu1 %6813, %v2061_v17   ;;  %v796_v17 = vmax.f32 %v764_v8, 0.0  ;;  %v814_v22 = vpack.c.bf16 %v794_v12, %v793_v11  ;;  %v765_v23 = vadd.f32 %v6983_v18, %v726_v13  ;;  %v1300_v56 = vld [vmem:[%s8444_s8 + $0x4c] sm:$0xf]  ;;  %v1299_v57 = vld [vmem:[%s8444_s8 + $0x48] sm:$0xf]  ;;  %v6815_v6 = vld [vmem:[%s8443_s7 + $0x18] sm:$0xff]  }
  0x3b   : > { %2318 = vperm.xlu0 %6812, %v2060_v21   ;;  %v729_v21 = vmul.f32 %v5854_v10, %v6968_v7  ;;  %v766_v24 = vadd.f32 %v6983_v18, %v727_v14  ;;  %v767_v28 = vadd.f32 %v6983_v18, %v728_v20  ;;  %v1302_v58 = vld [vmem:[%s8444_s8 + $0x54] sm:$0xf]  ;;  %v1301_v59 = vld [vmem:[%s8444_s8 + $0x50] sm:$0xf]  ;;  %v1304_v60 = vld [vmem:[%s8444_s8 + $0x5c] sm:$0xf]  ;;  %6205 = vmatprep.subr.bf16.mxu1 %v6815_v6 }
  0x3c   : > { %v815_v26 = vpack.c.bf16 %v796_v17, %v795_v16  ;;  %v797_v29 = vmax.f32 %v765_v23, 0.0  ;;  %v1308_v4 = vld [vmem:[%s8444_s8 + $0x6c] sm:$0xf]  ;;  %v1326_v9 = vshrl.u32 %v1325_v3, 7  ;;  %v1310_v10 = vld [vmem:[%s8444_s8 + $0x74] sm:$0xf] }
  0x3d   : > { %v768_v7 = vadd.f32 %v6983_v18, %v729_v21  ;;  %v799_v32 = vmax.f32 %v767_v28, 0.0  ;;  %6206 = vmatpush3.bf16.msra.mxu1 %v6815_v6  ;;  %v1309_v11 = vld [vmem:[%s8444_s8 + $0x70] sm:$0xf]  ;;  %v6816_v12 = vld [vmem:[%s8443_s7 + $0x40] sm:$0xff]   ;;  %v1312_v16 = vld [vmem:[%s8444_s8 + $0x7c] sm:$0xf] }
  0x3e   : > { %2354 = vperm.xlu1 %6813, %v2063_v30   ;;  %6178 = vmatmul.mubr.msk.bf16.gmra.mrb[16].mxu1 %vm569_vm4, %v810_v36  ;;  %v798_v30 = vmax.f32 %v766_v24, 0.0  ;;  %v1313_v28 = vld [vmem:[%s8444_s8 + $0x80] sm:$0xf]  ;;  %vm1839_vm6 = vsmask.f32 3328  ;;  %vm1103_vm7 = vcmask 1043456  }
  0x3f   : > { %2342 = vperm.xlu0 %6812, %v2062_v37   ;;  %6181 = vmatprep.mubr.msk.bf16.mxu1 %vm569_vm4, %v811_v43  ;;  %v800_v33 = vmax.f32 %v768_v7, 0.0  ;;  %v2074_v37 = vld [vmem:[%s8445_s9 + $0x88] sm:$0xf]  ;;  %v1285_v43 = vld [vmem:[%s8444_s8 + $0x10] sm:$0xf]  ;;  %vm1153_vm8 = vcmask 261120  }
  0x40   : > { %v816_v18 = vpack.c.bf16 %v798_v30, %v797_v29  ;;  %6347 = vmatprep.subr.bf16.mxu0 %v6816_v12 }
  0x41   : > { %v817_v36 = vpack.c.bf16 %v800_v33, %v799_v32  ;;  %6348 = vmatpush3.bf16.msra.mxu0 %v6816_v12 }
  0x42   : > { %2378 = vperm.xlu1 %6813, %v2065_v49   ;;  %v1291_v49 = vld [vmem:[%s8444_s8 + $0x28] sm:$0xf] }
  0x43   : > { %2366 = vperm.xlu0 %6812, %v2064_v53   ;;  %v1295_v53 = vld [vmem:[%s8444_s8 + $0x38] sm:$0xf] }
  0x46   : > { %2402 = vperm.xlu1 %6813, %v2067_v61   ;;  %6182 = vmatmul.mubr.msk.bf16.gmra.mrb[20].mxu1 %vm569_vm4, %v812_v63  ;;  %v1303_v61 = vld [vmem:[%s8444_s8 + $0x58] sm:$0xf]  ;;  %v1305_v63 = vld [vmem:[%s8444_s8 + $0x60] sm:$0xf] }
  0x47   : > { %2390 = vperm.xlu0 %6812, %v2066_v5   ;;  %6185 = vmatprep.mubr.msk.bf16.mxu1 %vm569_vm4, %v813_v1  ;;  %v6859_v1 = vmov 839922192   ;;  %v1307_v5 = vld [vmem:[%s8444_s8 + $0x68] sm:$0xf] }
  0x48   : > { %v1323_v2 = vunpack.c.l.s4 %v6859_v1 }
  0x4a   : > { %2426 = vperm.xlu1 %6813, %v2069_v15   ;;  %v1324_v8 = vunpack.c.0.s8 %v1323_v2 }
  0x4b   : > { %2414 = vperm.xlu0 %6812, %v2068_v19   ;;  %v1311_v19 = vld [vmem:[%s8444_s8 + $0x78] sm:$0xf] }
  0x4c   : > { %v7296_v13 = vsub.s32 %v1324_v8, %v1326_v9 }
  0x4e   : > { %2450 = vperm.xlu1 %6813, %v2071_v25   ;;  %6186 = vmatmul.mubr.msk.bf16.gmra.mrb[24].mxu1 %vm569_vm4, %v814_v22  ;;  %v6817_v22 = vld [vmem:[%s8443_s7 + $0x48] sm:$0xff]  }
  0x4f   : > { %2438 = vperm.xlu0 %6812, %v2070_v27   ;;  %6189 = vmatprep.mubr.msk.bf16.mxu1 %vm569_vm4, %v815_v26  ;;  %v1314_v26 = vld [vmem:[%s8444_s8 + $0x84] sm:$0xf] }
  0x50   : > { %6349 = vmatprep.subr.bf16.mxu0 %v6817_v22 }
  0x51   : > { %6350 = vmatpush3.bf16.msra.mxu0 %v6817_v22 }
  0x52   : > { %2474 = vperm.xlu1 %6813, %v2073_v31  }
  0x53   : > { %2462 = vperm.xlu0 %6812, %v2072_v34  }
  0x56   : > { %2498 = vperm.xlu1 %6813, %v2075_v35   ;;  %6190 = vmatmul.mubr.msk.bf16.gmra.mrb[28].mxu1 %vm569_vm4, %v816_v18 }
  0x57   : > { %2486 = vperm.xlu0 %6812, %v2074_v37   ;;  %6193 = vmatprep.mubr.msk.bf16.mxu1 %vm569_vm4, %v817_v36  ;;  %v1316_v36 = vld [vmem:[%s8444_s8 + $0x8c] sm:$0xf] }
  0x5a   : > { %1331 = vperm.xlu1 %6813, %v1282_v38  }
  0x5b   : > { %1319 = vperm.xlu0 %6812, %v1281_v39   ;;  %v1315_v39 = vld [vmem:[%s8444_s8 + $0x88] sm:$0xf] }
  0x5e   : > { %1355 = vperm.xlu1 %6813, %v1284_v40   ;;  %6194 = vmatmul.mubr.msk.bf16.gmra.mrb[32].mxu1 %vm569_vm4, %v7148_v62  ;;  %v1306_v62 = vld [vmem:[%s8444_s8 + $0x64] sm:$0xf] }
  0x5f   : > { %1343 = vperm.xlu0 %6812, %v1283_v41  }
  0x62   : > { %1379 = vperm.xlu1 %6813, %v1286_v42  }
  0x63   : > { %1367 = vperm.xlu0 %6812, %v1285_v43  }
  0x66   : > { %1403 = vperm.xlu1 %6813, %v1288_v44  }
  0x67   : > { %1391 = vperm.xlu0 %6812, %v1287_v45  }
  0x6a   : > { %1427 = vperm.xlu1 %6813, %v1290_v46  }
  0x6b   : > { %1415 = vperm.xlu0 %6812, %v1289_v47  }
  0x6e   : > { %1451 = vperm.xlu1 %6813, %v1292_v48  }
  0x6f   : > { %1439 = vperm.xlu0 %6812, %v1291_v49  }
  0x72   : > { %1475 = vperm.xlu1 %6813, %v1294_v50  }
  0x73   : > { %1463 = vperm.xlu0 %6812, %v1293_v51   ;;  %v7332_v51 = vld [vmem:[%s8443_s7 + $0x50] sm:$0xff]  }
  0x74   : > { %6383 = vmatprep.subr.bf16.mxu0 %v7332_v51 }
  0x76   : > { %1499 = vperm.xlu1 %6813, %v1296_v52  }
  0x77   : > { %1487 = vperm.xlu0 %6812, %v1295_v53  }
  0x7a   : > { %1523 = vperm.xlu1 %6813, %v1298_v54  }
  0x7b   : > { %1511 = vperm.xlu0 %6812, %v1297_v55  }
  0x7e   : > { %1547 = vperm.xlu1 %6813, %v1300_v56  }
  0x7f   : > { %1535 = vperm.xlu0 %6812, %v1299_v57  }
  0x82   : > { %1571 = vperm.xlu1 %6813, %v1302_v58  }
  0x83   : > { %1559 = vperm.xlu0 %6812, %v1301_v59  }
  0x86   : > { %1595 = vperm.xlu1 %6813, %v1304_v60  }
  0x87   : > { %1583 = vperm.xlu0 %6812, %v1303_v61  }
  0x8a   : > { %1619 = vperm.xlu1 %6813, %v1306_v62  }
  0x8b   : > { %1607 = vperm.xlu0 %6812, %v1305_v63  }
  0x8e   : > { %1643 = vperm.xlu1 %6813, %v1308_v4  }
  0x8f   : > { %1631 = vperm.xlu0 %6812, %v1307_v5  }
  0x91   : > { %v2103_v14 = vpop.permute.xlu1 %2102 }
  0x92   : > { %v2079_v15 = vpop.permute.xlu0 %2078  ;;  %1667 = vperm.xlu1 %6813, %v1310_v10   ;;  %v2111_v17 = vrot.slane %v2103_v14, %v7296_v13 }
  0x93   : > { %1655 = vperm.xlu0 %6812, %v1309_v11   ;;  %v2087_v20 = vrot.slane %v2079_v15, %v7296_v13 }
  0x95   : > { %v2115_v21 = vpop.permute.xlu1 %2114 }
  0x96   : > { %v2123_v23 = vrot.slane %v2115_v21, %v7296_v13  ;;  %v2091_v24 = vpop.permute.xlu0 %2090  ;;  %1691 = vperm.xlu1 %6813, %v1312_v16  }
  0x97   : > { %v2099_v25 = vrot.slane %v2091_v24, %v7296_v13  ;;  %1679 = vperm.xlu0 %6812, %v1311_v19  }
  0x98   : > { %v5517_v27 = vcombine.low %v2111_v17, %v2123_v23 }
  0x99   : > { %v5516_v7 = vcombine.low %v2087_v20, %v2099_v25  ;;  %v2139_v29 = vpop.permute.xlu1 %2138 }
  0x9a   : > { %v2608_v30 = vshrl.u32 %v5517_v27, 16  ;;  %v2611_v31 = vshll.u32 %v5517_v27, 16  ;;  %v2147_v32 = vrot.slane %v2139_v29, %v7296_v13  ;;  %v2127_v33 = vpop.permute.xlu0 %2126  ;;  %1715 = vperm.xlu1 %6813, %v1314_v26  }
  0x9b   : > { %v2600_v34 = vshrl.u32 %v5516_v7, 16  ;;  %v2603_v18 = vshll.u32 %v5516_v7, 16  ;;  %v2135_v35 = vrot.slane %v2127_v33, %v7296_v13  ;;  %1703 = vperm.xlu0 %6812, %v1313_v28  }
  0x9c   : > { %v2610_v37 = vrot.slane %v2608_v30, 3  ;;  %v2613_v38 = vrot.slane %v2611_v31, 4 }
  0x9d   : > { %v2602_v40 = vrot.slane %v2600_v34, 3  ;;  %v2605_v41 = vrot.slane %v2603_v18, 4  ;;  %v5518_v42 = vcombine.low %v2135_v35, %v2147_v32  ;;  %v2163_v43 = vpop.permute.xlu1 %2162 }
  0x9e   : > { %v2614_v44 = vor.u32 %v2613_v38, %v2610_v37  ;;  %v2171_v45 = vrot.slane %v2163_v43, %v7296_v13  ;;  %v2151_v46 = vpop.permute.xlu0 %2150  ;;  %1739 = vperm.xlu1 %6813, %v1316_v36  }
  0x9f   : > { %v7326_v47 = vor.u32 %v2605_v41, %v2602_v40  ;;  %v2617_v48 = vshrl.u32 %v5518_v42, 16  ;;  %v2620_v49 = vshll.u32 %v5518_v42, 16  ;;  %v2159_v50 = vrot.slane %v2151_v46, %v7296_v13  ;;  %1727 = vperm.xlu0 %6812, %v1315_v39  }
  0xa1   : > { %v7336_v52 = vsel %vm2598_vm5, %v7326_v47, %v2614_v44  ;;  %v2619_v53 = vrot.slane %v2617_v48, 3  ;;  %v2622_v54 = vrot.slane %v2620_v49, 4  ;;  %v5519_v55 = vcombine.low %v2159_v50, %v2171_v45  ;;  %v2187_v56 = vpop.permute.xlu1 %2186 }
  0xa2   : > { %v2195_v57 = vrot.slane %v2187_v56, %v7296_v13  ;;  %v2175_v58 = vpop.permute.xlu0 %2174 }
  0xa3   : > { %v2623_v59 = vor.u32 %v2622_v54, %v2619_v53  ;;  %v2626_v60 = vshrl.u32 %v5519_v55, 16  ;;  %v2629_v61 = vshll.u32 %v5519_v55, 16  ;;  %v2183_v62 = vrot.slane %v2175_v58, %v7296_v13 }
  0xa5   : > { %v7342_v63 = vsel %vm2598_vm5, %v2614_v44, %v2623_v59  ;;  %v2628_v0 = vrot.slane %v2626_v60, 3  ;;  %v2631_v1 = vrot.slane %v2629_v61, 4  ;;  %v5520_v2 = vcombine.low %v2183_v62, %v2195_v57  ;;  %v2211_v3 = vpop.permute.xlu1 %2210 }
  0xa6   : > { %v2219_v4 = vrot.slane %v2211_v3, %v7296_v13  ;;  %v2199_v5 = vpop.permute.xlu0 %2198 }
  0xa7   : > { %v2632_v6 = vor.u32 %v2631_v1, %v2628_v0  ;;  %v2635_v8 = vshrl.u32 %v5520_v2, 16  ;;  %v2638_v9 = vshll.u32 %v5520_v2, 16  ;;  %v2207_v10 = vrot.slane %v2199_v5, %v7296_v13 }
  0xa9   : > { %v7347_v11 = vsel %vm2598_vm5, %v2623_v59, %v2632_v6  ;;  %v2637_v12 = vrot.slane %v2635_v8, 3  ;;  %v2640_v14 = vrot.slane %v2638_v9, 4  ;;  %v5521_v15 = vcombine.low %v2207_v10, %v2219_v4  ;;  %v2235_v16 = vpop.permute.xlu1 %2234 }
  0xaa   : > { %v2243_v17 = vrot.slane %v2235_v16, %v7296_v13  ;;  %v2223_v19 = vpop.permute.xlu0 %2222 }
  0xab   : > { %v2641_v20 = vor.u32 %v2640_v14, %v2637_v12  ;;  %v2644_v21 = vshrl.u32 %v5521_v15, 16  ;;  %v2647_v22 = vshll.u32 %v5521_v15, 16  ;;  %v2231_v23 = vrot.slane %v2223_v19, %v7296_v13 }
  0xad   : > { %v7352_v24 = vsel %vm2598_vm5, %v2632_v6, %v2641_v20  ;;  %v2646_v25 = vrot.slane %v2644_v21, 3  ;;  %v2649_v26 = vrot.slane %v2647_v22, 4  ;;  %v5522_v27 = vcombine.low %v2231_v23, %v2243_v17  ;;  %v2259_v28 = vpop.permute.xlu1 %2258 }
  0xae   : > { %v2267_v7 = vrot.slane %v2259_v28, %v7296_v13  ;;  %v2247_v29 = vpop.permute.xlu0 %2246 }
  0xaf   : > { %v2650_v30 = vor.u32 %v2649_v26, %v2646_v25  ;;  %v2653_v31 = vshrl.u32 %v5522_v27, 16  ;;  %v2656_v32 = vshll.u32 %v5522_v27, 16  ;;  %v2255_v33 = vrot.slane %v2247_v29, %v7296_v13 }
  0xb1   : > { %v7357_v34 = vsel %vm2598_vm5, %v2641_v20, %v2650_v30  ;;  %v2655_v18 = vrot.slane %v2653_v31, 3  ;;  %v2658_v35 = vrot.slane %v2656_v32, 4  ;;  %v5523_v36 = vcombine.low %v2255_v33, %v2267_v7  ;;  %v2283_v37 = vpop.permute.xlu1 %2282 }
  0xb2   : > { %v2291_v38 = vrot.slane %v2283_v37, %v7296_v13  ;;  %v2271_v39 = vpop.permute.xlu0 %2270 }
  0xb3   : > { %v2659_v40 = vor.u32 %v2658_v35, %v2655_v18  ;;  %v2662_v41 = vshrl.u32 %v5523_v36, 16  ;;  %v2665_v42 = vshll.u32 %v5523_v36, 16  ;;  %v2279_v43 = vrot.slane %v2271_v39, %v7296_v13 }
  0xb5   : > { %v7362_v44 = vsel %vm2598_vm5, %v2650_v30, %v2659_v40  ;;  %v2664_v45 = vrot.slane %v2662_v41, 3  ;;  %v2667_v46 = vrot.slane %v2665_v42, 4  ;;  %v5524_v48 = vcombine.low %v2279_v43, %v2291_v38  ;;  %v2307_v49 = vpop.permute.xlu1 %2306 }
  0xb6   : > { %v2315_v50 = vrot.slane %v2307_v49, %v7296_v13  ;;  %v2295_v53 = vpop.permute.xlu0 %2294 }
  0xb7   : > { %v2668_v54 = vor.u32 %v2667_v46, %v2664_v45  ;;  %v2671_v55 = vshrl.u32 %v5524_v48, 16  ;;  %v2674_v56 = vshll.u32 %v5524_v48, 16  ;;  %v2303_v57 = vrot.slane %v2295_v53, %v7296_v13 }
  0xb9   : > { %v7367_v58 = vsel %vm2598_vm5, %v2659_v40, %v2668_v54  ;;  %v2673_v59 = vrot.slane %v2671_v55, 3  ;;  %v2676_v60 = vrot.slane %v2674_v56, 4  ;;  %v5525_v61 = vcombine.low %v2303_v57, %v2315_v50  ;;  %v2331_v62 = vpop.permute.xlu1 %2330 }
  0xba   : > { %v2339_v0 = vrot.slane %v2331_v62, %v7296_v13  ;;  %v2319_v1 = vpop.permute.xlu0 %2318 }
  0xbb   : > { %v2677_v2 = vor.u32 %v2676_v60, %v2673_v59  ;;  %v2680_v3 = vshrl.u32 %v5525_v61, 16  ;;  %v2683_v4 = vshll.u32 %v5525_v61, 16  ;;  %v2327_v5 = vrot.slane %v2319_v1, %v7296_v13  ;;  %v7394_v59 = vld [vmem:[%s8443_s7] sm:$0xff]  }
  0xbc   : > { %6239 = vmatprep.subr.bf16.mxu1 %v7394_v59 }
  0xbd   : > { %v7372_v6 = vsel %vm2598_vm5, %v2668_v54, %v2677_v2  ;;  %v2682_v8 = vrot.slane %v2680_v3, 3  ;;  %v2685_v9 = vrot.slane %v2683_v4, 4  ;;  %v5526_v10 = vcombine.low %v2327_v5, %v2339_v0  ;;  %v2355_v12 = vpop.permute.xlu1 %2354 }
  0xbe   : > { %v2363_v14 = vrot.slane %v2355_v12, %v7296_v13  ;;  %v2343_v15 = vpop.permute.xlu0 %2342 }
  0xbf   : > { %v2686_v16 = vor.u32 %v2685_v9, %v2682_v8  ;;  %v2689_v17 = vshrl.u32 %v5526_v10, 16  ;;  %v2692_v19 = vshll.u32 %v5526_v10, 16  ;;  %v2351_v20 = vrot.slane %v2343_v15, %v7296_v13 }
  0xc1   : > { %v7377_v21 = vsel %vm2598_vm5, %v2677_v2, %v2686_v16  ;;  %v2691_v22 = vrot.slane %v2689_v17, 3  ;;  %v2694_v23 = vrot.slane %v2692_v19, 4  ;;  %v5527_v25 = vcombine.low %v2351_v20, %v2363_v14  ;;  %v2379_v26 = vpop.permute.xlu1 %2378 }
  0xc2   : > { %v2387_v27 = vrot.slane %v2379_v26, %v7296_v13  ;;  %v2367_v28 = vpop.permute.xlu0 %2366 }
  0xc3   : > { %v2695_v7 = vor.u32 %v2694_v23, %v2691_v22  ;;  %v2698_v29 = vshrl.u32 %v5527_v25, 16  ;;  %v2701_v30 = vshll.u32 %v5527_v25, 16  ;;  %v2375_v31 = vrot.slane %v2367_v28, %v7296_v13 }
  0xc5   : > { %v7382_v32 = vsel %vm2598_vm5, %v2686_v16, %v2695_v7  ;;  %v2700_v33 = vrot.slane %v2698_v29, 3  ;;  %v2703_v18 = vrot.slane %v2701_v30, 4  ;;  %v5528_v35 = vcombine.low %v2375_v31, %v2387_v27  ;;  %v2403_v36 = vpop.permute.xlu1 %2402 }
  0xc6   : > { %v2411_v37 = vrot.slane %v2403_v36, %v7296_v13  ;;  %v2391_v38 = vpop.permute.xlu0 %2390 }
  0xc7   : > { %v2704_v39 = vor.u32 %v2703_v18, %v2700_v33  ;;  %v2707_v40 = vshrl.u32 %v5528_v35, 16  ;;  %v2710_v41 = vshll.u32 %v5528_v35, 16  ;;  %v2399_v42 = vrot.slane %v2391_v38, %v7296_v13 }
  0xc9   : > { %v7387_v43 = vsel %vm2598_vm5, %v2695_v7, %v2704_v39  ;;  %v2709_v45 = vrot.slane %v2707_v40, 3  ;;  %v2712_v46 = vrot.slane %v2710_v41, 4  ;;  %v5529_v48 = vcombine.low %v2399_v42, %v2411_v37  ;;  %v2427_v49 = vpop.permute.xlu1 %2426 }
  0xca   : > { %v2435_v50 = vrot.slane %v2427_v49, %v7296_v13  ;;  %v2415_v53 = vpop.permute.xlu0 %2414 }
  0xcb   : > { %v2713_v54 = vor.u32 %v2712_v46, %v2709_v45  ;;  %v2716_v55 = vshrl.u32 %v5529_v48, 16  ;;  %v2719_v56 = vshll.u32 %v5529_v48, 16  ;;  %v2423_v57 = vrot.slane %v2415_v53, %v7296_v13 }
  0xcd   : > { %v7397_v60 = vsel %vm2598_vm5, %v2704_v39, %v2713_v54  ;;  %v2718_v61 = vrot.slane %v2716_v55, 3  ;;  %v2721_v62 = vrot.slane %v2719_v56, 4  ;;  %v5530_v0 = vcombine.low %v2423_v57, %v2435_v50  ;;  %v2451_v1 = vpop.permute.xlu1 %2450 }
  0xce   : > { %8468 = vst [vmem:[#allocation3_spill] sm:$0xff] %v7397_v60  ;;  %v2459_v2 = vrot.slane %v2451_v1, %v7296_v13  ;;  %v2439_v3 = vpop.permute.xlu0 %2438 }
  0xcf   : > { %v2722_v4 = vor.u32 %v2721_v62, %v2718_v61  ;;  %v2725_v5 = vshrl.u32 %v5530_v0, 16  ;;  %v2728_v8 = vshll.u32 %v5530_v0, 16  ;;  %v2447_v9 = vrot.slane %v2439_v3, %v7296_v13 }
  0xd1   : > { %v7403_v10 = vsel %vm2598_vm5, %v2713_v54, %v2722_v4  ;;  %v2727_v12 = vrot.slane %v2725_v5, 3  ;;  %v2730_v14 = vrot.slane %v2728_v8, 4  ;;  %v5531_v15 = vcombine.low %v2447_v9, %v2459_v2  ;;  %v2475_v16 = vpop.permute.xlu1 %2474 }
  0xd2   : > { %8469 = vst [vmem:[#allocation4_spill] sm:$0xff] %v7403_v10  ;;  %v2483_v17 = vrot.slane %v2475_v16, %v7296_v13  ;;  %v2463_v19 = vpop.permute.xlu0 %2462 }
  0xd3   : > { %v2731_v20 = vor.u32 %v2730_v14, %v2727_v12  ;;  %v2734_v22 = vshrl.u32 %v5531_v15, 16  ;;  %v2737_v23 = vshll.u32 %v5531_v15, 16  ;;  %v2471_v25 = vrot.slane %v2463_v19, %v7296_v13 }
  0xd5   : > { %v7408_v26 = vsel %vm2598_vm5, %v2722_v4, %v2731_v20  ;;  %v2736_v27 = vrot.slane %v2734_v22, 3  ;;  %v2739_v28 = vrot.slane %v2737_v23, 4  ;;  %v5532_v7 = vcombine.low %v2471_v25, %v2483_v17  ;;  %v2499_v29 = vpop.permute.xlu1 %2498 }
  0xd6   : > { %8470 = vst [vmem:[#allocation5_spill] sm:$0xff] %v7408_v26  ;;  %v2507_v30 = vrot.slane %v2499_v29, %v7296_v13  ;;  %v2487_v31 = vpop.permute.xlu0 %2486 }
  0xd7   : > { %v2740_v33 = vor.u32 %v2739_v28, %v2736_v27  ;;  %v2743_v18 = vshrl.u32 %v5532_v7, 16  ;;  %v2746_v35 = vshll.u32 %v5532_v7, 16  ;;  %v2495_v36 = vrot.slane %v2487_v31, %v7296_v13  ;;  %v7432_v31 = vld [vmem:[%s8442_s6] ss:$0 sm:$0xff] }
  0xd9   : > { %v7413_v37 = vsel %vm2598_vm5, %v2731_v20, %v2740_v33  ;;  %v2745_v38 = vrot.slane %v2743_v18, 3  ;;  %v2748_v39 = vrot.slane %v2746_v35, 4  ;;  %v5533_v40 = vcombine.low %v2495_v36, %v2507_v30  ;;  %v1332_v41 = vpop.permute.xlu1 %1331 }
  0xda   : > { %8471 = vst [vmem:[#allocation6_spill] sm:$0xff] %v7413_v37  ;;  %v1320_v42 = vpop.permute.xlu0 %1319  ;;  %v1340_v56 = vrot.slane %v1332_v41, %v7296_v13 }
  0xdb   : > { %v7415_v45 = vor.u32 %v2748_v39, %v2745_v38  ;;  %v1328_v57 = vrot.slane %v1320_v42, %v7296_v13  ;;  %v2752_v9 = vshrl.u32 %v5533_v40, 16  ;;  %v2755_v12 = vshll.u32 %v5533_v40, 16 }
  0xdd   : > { %v7419_v46 = vsel %vm2598_vm5, %v2740_v33, %v7415_v45  ;;  %v1356_v48 = vpop.permute.xlu1 %1355  ;;  %v5498_v3 = vcombine.low %v1328_v57, %v1340_v56  ;;  %v2754_v28 = vrot.slane %v2752_v9, 3  ;;  %v2757_v7 = vrot.slane %v2755_v12, 4 }
  0xde   : > { %8472 = vst [vmem:[#allocation7_spill] sm:$0xff] %v7419_v46  ;;  %v1344_v49 = vpop.permute.xlu0 %1343  ;;  %v1364_v54 = vrot.slane %v1356_v48, %v7296_v13 }
  0xdf   : > { %v1352_v55 = vrot.slane %v1344_v49, %v7296_v13  ;;  %v1841_v16 = vshrl.u32 %v5498_v3, 16  ;;  %v1844_v17 = vshll.u32 %v5498_v3, 16  ;;  %v7436_v49 = vor.u32 %v2757_v7, %v2754_v28 }
  0xe1   : > { %v1380_v50 = vpop.permute.xlu1 %1379  ;;  %v5499_v2 = vcombine.low %v1352_v55, %v1364_v54  ;;  %v1843_v33 = vrot.slane %v1841_v16, 4  ;;  %v1846_v18 = vrot.slane %v1844_v17, 5  ;;  %8473 = vst [vmem:[#allocation8_spill] sm:$0xff] %v7436_v49  ;;  %v7449_v9 = vsel %vm2598_vm5, %v7415_v45, %v7436_v49 }
  0xe2   : > { %v1368_v53 = vpop.permute.xlu0 %1367  ;;  %v1388_v61 = vrot.slane %v1380_v50, %v7296_v13  ;;  %8474 = vst [vmem:[#allocation9_spill] sm:$0xff] %v7449_v9 }
  0xe3   : > { %v1376_v62 = vrot.slane %v1368_v53, %v7296_v13  ;;  %v1849_v14 = vshrl.u32 %v5499_v2, 16  ;;  %v1852_v15 = vshll.u32 %v5499_v2, 16  ;;  %v7442_v2 = vor.u32 %v1846_v18, %v1843_v33 }
  0xe5   : > { %v1404_v0 = vpop.permute.xlu1 %1403  ;;  %v5500_v4 = vcombine.low %v1376_v62, %v1388_v61  ;;  %v1851_v29 = vrot.slane %v1849_v14, 4  ;;  %v1854_v30 = vrot.slane %v1852_v15, 5 }
  0xe6   : > { %v1392_v1 = vpop.permute.xlu0 %1391  ;;  %v1412_v23 = vrot.slane %v1404_v0, %v7296_v13 }
  0xe7   : > { %v1858_v19 = vshrl.u32 %v5500_v4, 16  ;;  %v1861_v22 = vshll.u32 %v5500_v4, 16  ;;  %v1400_v25 = vrot.slane %v1392_v1, %v7296_v13  ;;  %v1855_v54 = vor.u32 %v1854_v30, %v1851_v29 }
  0xe9   : > { %v1428_v5 = vpop.permute.xlu1 %1427  ;;  %v1860_v35 = vrot.slane %v1858_v19, 4  ;;  %v1863_v38 = vrot.slane %v1861_v22, 5  ;;  %v5501_v40 = vcombine.low %v1400_v25, %v1412_v23  ;;  %v7453_v15 = vsel %vm1839_vm6, %v7442_v2, %v1855_v54 }
  0xea   : > { %v1416_v8 = vpop.permute.xlu0 %1415  ;;  %v1436_v41 = vrot.slane %v1428_v5, %v7296_v13 }
  0xeb   : > { %v1424_v42 = vrot.slane %v1416_v8, %v7296_v13  ;;  %v7444_v3 = vor.u32 %v1863_v38, %v1860_v35  ;;  %v1867_v4 = vshrl.u32 %v5501_v40, 16  ;;  %v1870_v14 = vshll.u32 %v5501_v40, 16 }
  0xed   : > { %v1452_v20 = vpop.permute.xlu1 %1451  ;;  %v5502_v5 = vcombine.low %v1424_v42, %v1436_v41  ;;  %v7461_v45 = vsel %vm1839_vm6, %v1855_v54, %v7444_v3  ;;  %v1869_v28 = vrot.slane %v1867_v4, 4  ;;  %v1872_v35 = vrot.slane %v1870_v14, 5 }
  0xee   : > { %v1440_v27 = vpop.permute.xlu0 %1439  ;;  %v1460_v56 = vrot.slane %v1452_v20, %v7296_v13 }
  0xef   : > { %v1448_v57 = vrot.slane %v1440_v27, %v7296_v13  ;;  %v1876_v7 = vshrl.u32 %v5502_v5, 16  ;;  %v1879_v29 = vshll.u32 %v5502_v5, 16 }
  0xf1   : > { %v1476_v36 = vpop.permute.xlu1 %1475  ;;  %v611_v39 = vpop.f32.mrb[0].mxu1  ;;  %v5503_v16 = vcombine.low %v1448_v57, %v1460_v56 }
  0xf2   : > { %v1464_v48 = vpop.permute.xlu0 %1463  ;;  %v612_v50 = vadd.f32 %v7432_v31, %v611_v39  ;;  %v6161_v53 = vpop.f32.mrb[1].mxu1  ;;  %v1484_v17 = vrot.slane %v1476_v36, %v7296_v13 }
  0xf3   : > { %v614_v55 = vpop.f32.mrb[2].mxu1  ;;  %v1472_v19 = vrot.slane %v1464_v48, %v7296_v13  ;;  %v1885_v42 = vshrl.u32 %v5503_v16, 16  ;;  %v1888_v48 = vshll.u32 %v5503_v16, 16 }
  0xf4   : > { %v618_v61 = vmax.f32 %v612_v50, 0.0  ;;  %v615_v62 = vadd.f32 %v7432_v31, %v614_v55  ;;  %v6162_v0 = vpop.f32.mrb[3].mxu1 }
  0xf5   : > { %v1500_v1 = vpop.permute.xlu1 %1499  ;;  %v5504_v56 = vcombine.low %v1472_v19, %v1484_v17  ;;  %v1881_v0 = vrot.slane %v1879_v29, 5  ;;  %v1887_v17 = vrot.slane %v1885_v42, 4  ;;  %v1890_v19 = vrot.slane %v1888_v48, 5 }
  0xf6   : > { %v1488_v8 = vpop.permute.xlu0 %1487  ;;  %v619_v12 = vmax.f32 %v615_v62, 0.0  ;;  %v621_v20 = vmul.f32 0.0, %v618_v61  ;;  %v1508_v23 = vrot.slane %v1500_v1, %v7296_v13  ;;  %v1878_v62 = vrot.slane %v1876_v7, 4 }
  0xf7   : > { %v1496_v25 = vrot.slane %v1488_v8, %v7296_v13  ;;  %v1873_v29 = vor.u32 %v1872_v35, %v1869_v28 }
  0xf8   : > { %v622_v22 = vmul.f32 0.0, %v619_v12 }
  0xf9   : > { %v1524_v27 = vpop.permute.xlu1 %1523  ;;  %v6167_v30 = vpop.f32.mrb[4].mxu1  ;;  %v5505_v57 = vcombine.low %v1496_v25, %v1508_v23  ;;  %v1894_v25 = vshrl.u32 %v5504_v56, 16 }
  0xfa   : > { %v1512_v33 = vpop.permute.xlu0 %1511  ;;  %v623_v18 = vpack.c.bf16 %v622_v22, %v621_v20  ;;  %v921_v36 = vadd.f32 %v6167_v30, %v7432_v31  ;;  %v912_v38 = vpop.f32.mrb[5].mxu1  ;;  %v1532_v39 = vrot.slane %v1524_v27, %v7296_v13  ;;  %v1897_v27 = vshll.u32 %v5504_v56, 16 }
  0xfb   : > { %v913_v40 = vadd.f32 %v7432_v31, %v912_v38  ;;  %v6168_v41 = vpop.f32.mrb[6].mxu1  ;;  %v1520_v50 = vrot.slane %v1512_v33, %v7296_v13  ;;  %v1903_v7 = vshrl.u32 %v5505_v57, 16  ;;  %v1896_v35 = vrot.slane %v1894_v25, 4 }
  0xfc   : > { %v625_v53 = vrot.slane %v623_v18, 4  ;;  %v924_v54 = vadd.f32 %v6168_v41, %v7432_v31  ;;  %v915_v55 = vpop.f32.mrb[7].mxu1  ;;  %v1041_v1 = vmax.f32 %v921_v36, 0.0  ;;  %v1906_v18 = vshll.u32 %v5505_v57, 16 }
  0xfd   : > { %v1548_v61 = vpop.permute.xlu1 %1547  ;;  %v916_v4 = vadd.f32 %v7432_v31, %v915_v55  ;;  %v5506_v12 = vcombine.low %v1520_v50, %v1532_v39  ;;  %v1039_v20 = vmax.f32 %v913_v40, 0.0 }
  0xfe   : > { %v1536_v5 = vpop.permute.xlu0 %1535  ;;  %627 = vst.msk [vmem:[#allocation2] sm:$0xf0] %vm530_vm2, %v625_v53  ;;  %v1042_v8 = vmax.f32 %v924_v54, 0.0  ;;  %v1556_v14 = vrot.slane %v1548_v61, %v7296_v13  ;;  %v7477_v54 = vor.u32 %v1890_v19, %v1887_v17  ;;  %v1899_v61 = vrot.slane %v1897_v27, 5 }
  0xff   : > { %628 = vst.msk [vmem:[#allocation2 + $0x8] sm:$0xf] %vm528_vm3, %v625_v53  ;;  %v1544_v16 = vrot.slane %v1536_v5, %v7296_v13  ;;  %v1040_v22 = vmax.f32 %v916_v4, 0.0  ;;  %v1912_v36 = vshrl.u32 %v5506_v12, 16  ;;  %v1915_v40 = vshll.u32 %v5506_v12, 16 }
 0x100   : > { %v7473_v23 = vpack.c.bf16 %v1042_v8, %v1041_v1  ;;  %v1882_v53 = vor.u32 %v1881_v0, %v1878_v62  ;;  %v1905_v1 = vrot.slane %v1903_v7, 4  ;;  %v1908_v8 = vrot.slane %v1906_v18, 5 }
 0x101   : > { %v1071_v30 = vpack.c.bf16 %v1040_v22, %v1039_v20  ;;  %v6171_v33 = vpop.f32.mrb[8].mxu1  ;;  %v1572_v38 = vpop.permute.xlu1 %1571  ;;  %v5507_v42 = vcombine.low %v1544_v16, %v1556_v14  ;;  %v1914_v62 = vrot.slane %v1912_v36, 4  ;;  %v1917_v20 = vrot.slane %v1915_v40, 5 }
 0x102   : > { %v1105_v39 = vrot.slane %v7473_v23, 4  ;;  %v937_v41 = vadd.f32 %v6171_v33, %v7432_v31  ;;  %v928_v50 = vpop.f32.mrb[9].mxu1  ;;  %v1560_v48 = vpop.permute.xlu0 %1559  ;;  %v7490_v7 = vsel %vm1839_vm6, %v7444_v3, %v1873_v29  ;;  %v1580_v33 = vrot.slane %v1572_v38, %v7296_v13 }
 0x103   : > { %v1104_v55 = vrot.slane %v1071_v30, 4  ;;  %v929_v56 = vadd.f32 %v7432_v31, %v928_v50  ;;  %v6172_v28 = vpop.f32.mrb[10].mxu1  ;;  %v1921_v17 = vshrl.u32 %v5507_v42, 16  ;;  %v1924_v23 = vshll.u32 %v5507_v42, 16 }
 0x104   : > { %v940_v57 = vadd.f32 %v6172_v28, %v7432_v31  ;;  %v931_v4 = vpop.f32.mrb[11].mxu1  ;;  %v1045_v14 = vmax.f32 %v937_v41, 0.0  ;;  %v1568_v18 = vrot.slane %v1560_v48, %v7296_v13  ;;  %v7497_v41 = vsel %vm1839_vm6, %v1873_v29, %v1882_v53 }
 0x105   : > { %v1106_v5 = vsel %vm1103_vm7, %v1104_v55, %v1105_v39  ;;  %1152 = vst.msk [vmem:[#allocation2 + $0x8] sm:$0xf0] %vm530_vm2, %v1104_v55  ;;  %v932_v12 = vadd.f32 %v7432_v31, %v931_v4  ;;  %v1261_v0 = vld [vmem:[#allocation2] sm:$0xf0]  ;;  %v1043_v19 = vmax.f32 %v929_v56, 0.0  ;;  %v1596_v27 = vpop.permute.xlu1 %1595  ;;  %v7501_v50 = vsel %vm1839_vm6, %v1882_v53, %v7477_v54 }
 0x106   : > { %1154 = vst.msk [vmem:[#allocation2 + $0x10] sm:$0xff] %vm1153_vm8, %v1106_v5  ;;  %v1046_v16 = vmax.f32 %v940_v57, 0.0  ;;  %v7486_v25 = vmul.bf16 %v7326_v47, %v1261_v0  ;;  %v1584_v36 = vpop.permute.xlu0 %1583  ;;  %v1900_v47 = vor.u32 %v1899_v61, %v1896_v35  ;;  %v1909_v55 = vor.u32 %v1908_v8, %v1905_v1 }
 0x107   : > { %v1044_v22 = vmax.f32 %v932_v12, 0.0  ;;  %v1918_v56 = vor.u32 %v1917_v20, %v1914_v62  ;;  %v1923_v29 = vrot.slane %v1921_v17, 4  ;;  %v1926_v5 = vrot.slane %v1924_v23, 5 }
 0x108   : > { %8475 = vst [vmem:[#allocation10_spill] sm:$0xff] %v7486_v25  ;;  %v7492_v30 = vpack.c.bf16 %v1046_v16, %v1045_v14  ;;  %v7507_v14 = vcombine.low %v1568_v18, %v1580_v33  ;;  %v1604_v61 = vrot.slane %v1596_v27, %v7296_v13  ;;  %v1592_v1 = vrot.slane %v1584_v36, %v7296_v13 }
 0x109   : > { %v1073_v40 = vpack.c.bf16 %v1044_v22, %v1043_v19  ;;  %v6175_v42 = vpop.f32.mrb[12].mxu1  ;;  %v2827_v20 = vrot.slane %v1261_v0, 4  ;;  %v7520_v19 = vpop.permute.xlu1 %1619  ;;  %v7530_v0 = vsel %vm1839_vm6, %v7477_v54, %v1900_v47  ;;  %v6821_v54 = vld [vmem:[%s8443_s7 + $0x8] sm:$0xff]  }
 0x10a   : > { %v1109_v3 = vrot.slane %v7492_v30, 4  ;;  %v953_v28 = vadd.f32 %v6175_v42, %v7432_v31  ;;  %v944_v38 = vpop.f32.mrb[13].mxu1  ;;  %v7522_v22 = vpop.f32.mrb[0].mxu0  ;;  %v7532_v42 = vor.u32 %v1926_v5, %v1923_v29  ;;  %v7549_v29 = vsel %vm1839_vm6, %v1909_v55, %v1918_v56 }
 0x10b   : > { %v1107_v57 = vrot.slane %v1073_v40, 4  ;;  %v945_v48 = vadd.f32 %v7432_v31, %v944_v38  ;;  %v6176_v4 = vpop.f32.mrb[14].mxu1  ;;  %v1608_v18 = vpop.permute.xlu0 %1607 }
 0x10c   : > { %v956_v12 = vadd.f32 %v6176_v4, %v7432_v31  ;;  %v947_v53 = vpop.f32.mrb[15].mxu1  ;;  %v7509_v35 = vld [vmem:[#allocation2 + $0x8] sm:$0xff]  ;;  %v1049_v23 = vmax.f32 %v953_v28, 0.0  ;;  %v6201_v36 = vpop.f32.mrb[1].mxu0 }
 0x10d   : > { %v1108_v8 = vsel %vm1103_vm7, %v1105_v39, %v1107_v57  ;;  %v1110_v62 = vsel %vm1103_vm7, %v1107_v57, %v1109_v3  ;;  %v948_v16 = vadd.f32 %v7432_v31, %v947_v53  ;;  %v7518_v17 = vld [vmem:[#allocation2 + $0x10] sm:$0xff]  ;;  %v2828_v39 = vrot.slane %v7509_v35, 4  ;;  %v7534_v57 = vpop.f32.mrb[2].mxu0 }
 0x10e   : > { %1155 = vst.msk [vmem:[#allocation2 + $0x18] sm:$0xff] %vm1153_vm8, %v1108_v8  ;;  %1156 = vst.msk [vmem:[#allocation2 + $0x20] sm:$0xff] %vm1153_vm8, %v1110_v62  ;;  %v1050_v27 = vmax.f32 %v956_v12, 0.0  ;;  %v8447_v33 = vrot.slane %v7518_v17, 4  ;;  %v1047_v40 = vmax.f32 %v945_v48, 0.0  ;;  %v5509_v53 = vcombine.low %v1592_v1, %v1604_v61  ;;  %v6202_v8 = vpop.f32.mrb[3].mxu0 }
 0x10f   : > { %v1048_v38 = vmax.f32 %v948_v16, 0.0  ;;  %v2829_v28 = vsel %vm1103_vm7, %v2827_v20, %v2828_v39  ;;  %v1280_v62 = vld [vmem:[#allocation2] sm:$0xf8]  ;;  %v7546_v48 = vsel %vm1839_vm6, %v1900_v47, %v1909_v55  ;;  %v1930_v16 = vshrl.u32 %v7507_v14, 16 }
 0x110   : > { %v7536_v4 = vpack.c.bf16 %v1050_v27, %v1049_v23  ;;  %v2831_v12 = vsel %vm1103_vm7, %v2828_v39, %v8447_v33  ;;  %6207 = vmatprep.mubr.msk.bf16.mxu1 %vm1153_vm8, %v2829_v28  ;;  %v1933_v1 = vshll.u32 %v7507_v14, 16  ;;  %v1628_v55 = vrot.slane %v7520_v19, %v7296_v13  ;;  %v1632_v33 = vpop.permute.xlu0 %1631 }
 0x111   : > { %v1075_v5 = vpack.c.bf16 %v1048_v38, %v1047_v40  ;;  %v6179_v20 = vpop.f32.mrb[16].mxu1  ;;  %6351 = vmatprep.mubr.msk.bf16.mxu0 %vm1153_vm8, %v2831_v12  ;;  %6208 = vmatmul.mubr.msk.bf16.vlgmr.msra.gmra.mrb[36].mxu1 %vm1153_vm8, %v2831_v12  ;;  %v7562_v27 = vsel %vm1839_vm6, %v1918_v56, %v7532_v42  ;;  %v1616_v40 = vrot.slane %v1608_v18, %v7296_v13  ;;  %v1644_v38 = vpop.permute.xlu1 %1643  ;;  %v1939_v8 = vshrl.u32 %v5509_v53, 16  ;;  %v7574_v56 = vld [vmem:[%s8443_s7 + $0x20] sm:$0xff]  }
 0x112   : > { %v8449_v61 = vrot.slane %v7536_v4, 4  ;;  %v969_v23 = vadd.f32 %v6179_v20, %v7432_v31  ;;  %v960_v47 = vpop.f32.mrb[17].mxu1  ;;  %6240 = vmatpush3.bf16.msra.mxu1 %v7394_v59  ;;  %v7567_v14 = vmul.bf16 %v7442_v2, %v1280_v62  ;;  %v1942_v19 = vshll.u32 %v5509_v53, 16 }
 0x113   : > { %v1111_v39 = vrot.slane %v1075_v5, 4  ;;  %v6180_v36 = vpop.f32.mrb[18].mxu1  ;;  %v961_v28 = vadd.f32 %v7432_v31, %v960_v47  ;;  %6241 = vmatprep.subr.bf16.mxu1 %v6821_v54  ;;  %v1652_v53 = vrot.slane %v1644_v38, %v7296_v13  ;;  %v1640_v5 = vrot.slane %v1632_v33, %v7296_v13 }
 0x114   : > { %v972_v12 = vadd.f32 %v6180_v36, %v7432_v31  ;;  %v963_v20 = vpop.f32.mrb[19].mxu1  ;;  %v1932_v47 = vrot.slane %v1930_v16, 4  ;;  %v1053_v30 = vmax.f32 %v969_v23, 0.0  ;;  %v1935_v49 = vrot.slane %v1933_v1, 5  ;;  %v6819_v16 = vld [vmem:[%s8443_s7 + $0x58] sm:$0xff]  }
 0x115   : > { %v1112_v59 = vsel %vm1103_vm7, %v1109_v3, %v1111_v39  ;;  %v1114_v2 = vsel %vm1103_vm7, %v1111_v39, %v8449_v61  ;;  %v7582_v18 = vld [vmem:[#allocation2 + $0x18] sm:$0xff]  ;;  %v7584_v62 = vld [vmem:[#allocation2 + $0x20] sm:$0xff]  ;;  %v964_v3 = vadd.f32 %v7432_v31, %v963_v20  ;;  %v5510_v9 = vcombine.low %v1616_v40, %v1628_v55 }
 0x116   : > { %1157 = vst.msk [vmem:[#allocation2 + $0x28] sm:$0xff] %vm1153_vm8, %v1112_v59  ;;  %1158 = vst.msk [vmem:[#allocation2 + $0x30] sm:$0xff] %vm1153_vm8, %v1114_v2  ;;  %v1054_v36 = vmax.f32 %v972_v12, 0.0  ;;  %v2832_v39 = vrot.slane %v7582_v18, 4  ;;  %v8451_v61 = vrot.slane %v7584_v62, 4  ;;  %6242 = vmatpush3.bf16.msra.mxu1 %v6821_v54  ;;  %v1051_v25 = vmax.f32 %v961_v28, 0.0  ;;  %v1668_v59 = vpop.permute.xlu1 %1667 }
 0x117   : > { %v1941_v33 = vrot.slane %v1939_v8, 4  ;;  %v1052_v46 = vmax.f32 %v964_v3, 0.0  ;;  %6275 = vmatprep.subr.bf16.mxu1 %v7574_v56  ;;  %v1944_v23 = vrot.slane %v1942_v19, 5  ;;  %v8476_v1 = vrot.slane %v7518_v17, 4 }
 0x118   : > { %v7593_v38 = vpack.c.bf16 %v1054_v36, %v1053_v30  ;;  %v7607_v54 = vsel %vm1103_vm7, %v2832_v39, %v8451_v61  ;;  %v5511_v40 = vcombine.low %v1640_v5, %v1652_v53  ;;  %v1936_v30 = vor.u32 %v1935_v49, %v1932_v47 }
 0x119   : > { %v6183_v12 = vpop.f32.mrb[20].mxu1  ;;  %v7602_v55 = vsel %vm1103_vm7, %v8476_v1, %v2832_v39  ;;  %8478 = vst [vmem:[#allocation12_spill] sm:$0xff] %v7607_v54  ;;  %v1077_v8 = vpack.c.bf16 %v1052_v46, %v1051_v25  ;;  %v1948_v36 = vshrl.u32 %v5510_v9, 16  ;;  %v1951_v3 = vshll.u32 %v5510_v9, 16  ;;  %v1656_v25 = vpop.permute.xlu0 %1655 }
 0x11a   : > { %8477 = vst [vmem:[#allocation11_spill] sm:$0xff] %v7602_v55  ;;  %v8454_v28 = vrot.slane %v7593_v38, 4  ;;  %v985_v20 = vadd.f32 %v6183_v12, %v7432_v31  ;;  %6211 = vmatprep.mubr.msk.bf16.mxu1 %vm1153_vm8, %v7602_v55  ;;  %6352 = vmatmul.mubr.msk.bf16.vlgmr.msra.gmra.mrb[4].mxu0 %vm1153_vm8, %v7602_v55  ;;  %v976_v19 = vpop.f32.mrb[21].mxu1  ;;  %v1676_v49 = vrot.slane %v1668_v59, %v7296_v13  ;;  %v1957_v1 = vshrl.u32 %v5511_v40, 16 }
 0x11b   : > { %6384 = vmatpush3.bf16.msra.mxu0 %v7332_v51  ;;  %v977_v53 = vadd.f32 %v7432_v31, %v976_v19  ;;  %6212 = vmatmul.mubr.msk.bf16.gmra.mrb[40].mxu1 %vm1153_vm8, %v7607_v54  ;;  %v6184_v46 = vpop.f32.mrb[22].mxu1  ;;  %v1115_v5 = vrot.slane %v1077_v8, 4  ;;  %v1664_v9 = vrot.slane %v1656_v25, %v7296_v13  ;;  %v7628_v51 = vld [vmem:[%s8443_s7 + $0x60] sm:$0xff]   ;;  %v7630_v47 = vor.u32 %v1944_v23, %v1941_v33 }
 0x11c   : > { %6355 = vmatprep.mubr.msk.bf16.mxu0 %vm1153_vm8, %v7607_v54  ;;  %v988_v39 = vadd.f32 %v6184_v46, %v7432_v31  ;;  %v979_v12 = vpop.f32.mrb[23].mxu1  ;;  %6385 = vmatprep.subr.bf16.mxu0 %v6819_v16  ;;  %v1960_v8 = vshll.u32 %v5511_v40, 16  ;;  %v8479_v59 = vrot.slane %v7536_v4, 4  ;;  %v1057_v54 = vmax.f32 %v985_v20, 0.0 }
 0x11d   : > { %v980_v19 = vadd.f32 %v7432_v31, %v979_v12  ;;  %v7633_v2 = vld [vmem:[#allocation2 + $0x28] sm:$0xff]  ;;  %v7635_v46 = vld [vmem:[#allocation2 + $0x30] sm:$0xff]  ;;  %v1118_v61 = vsel %vm1103_vm7, %v1115_v5, %v8454_v28  ;;  %v1055_v33 = vmax.f32 %v977_v53, 0.0  ;;  %v1244_v12 = vadd.f32 %v7432_v31, %v7522_v22 }
 0x11e   : > { %v1116_v25 = vsel %vm1103_vm7, %v8479_v59, %v1115_v5  ;;  %v1058_v55 = vmax.f32 %v988_v39, 0.0  ;;  %1160 = vst.msk [vmem:[#allocation2 + $0x40] sm:$0xff] %vm1153_vm8, %v1118_v61  ;;  %v2836_v40 = vrot.slane %v7633_v2, 4  ;;  %v7650_v4 = vsel %vm1839_vm6, %v7532_v42, %v1936_v30 }
 0x11f   : > { %1159 = vst.msk [vmem:[#allocation2 + $0x38] sm:$0xff] %vm1153_vm8, %v1116_v25  ;;  %v1056_v23 = vmax.f32 %v980_v19, 0.0  ;;  %6386 = vmatpush3.bf16.msra.mxu0 %v6819_v16  ;;  %v7654_v20 = vcombine.low %v1664_v9, %v1676_v49  ;;  %v2838_v5 = vrot.slane %v7635_v46, 4  ;;  %v1950_v61 = vrot.slane %v1948_v36, 4 }
 0x120   : > { %v7652_v59 = vpack.c.bf16 %v1058_v55, %v1057_v54  ;;  %6419 = vmatprep.subr.bf16.mxu0 %v7628_v51  ;;  %v1953_v53 = vrot.slane %v1951_v3, 5  ;;  %v8480_v25 = vrot.slane %v7584_v62, 4  ;;  %v7665_v42 = vsel %vm1839_vm6, %v1936_v30, %v7630_v47 }
 0x121   : > { %v1079_v39 = vpack.c.bf16 %v1056_v23, %v1055_v33  ;;  %v6187_v19 = vpop.f32.mrb[24].mxu1  ;;  %v7674_v36 = vsel %vm1103_vm7, %v2836_v40, %v2838_v5  ;;  %v1959_v3 = vrot.slane %v1957_v1, 4  ;;  %v1962_v49 = vrot.slane %v1960_v8, 5  ;;  %v1692_v23 = vpop.permute.xlu1 %1691 }
 0x122   : > { %v7661_v22 = vsel %vm1103_vm7, %v8480_v25, %v2836_v40  ;;  %v1001_v55 = vadd.f32 %v6187_v19, %v7432_v31  ;;  %v992_v54 = vpop.f32.mrb[25].mxu1  ;;  %8482 = vst [vmem:[#allocation14_spill] sm:$0xff] %v7674_v36  ;;  %v1250_v33 = vmax.f32 %v1244_v12, 0.0  ;;  %v1966_v19 = vshrl.u32 %v7654_v20, 16  ;;  %v1680_v40 = vpop.permute.xlu0 %1679 }
 0x123   : > { %8481 = vst [vmem:[#allocation13_spill] sm:$0xff] %v7661_v22  ;;  %6215 = vmatprep.mubr.msk.bf16.mxu1 %vm1153_vm8, %v7661_v22  ;;  %6356 = vmatmul.mubr.msk.bf16.gmra.mrb[8].mxu0 %vm1153_vm8, %v7661_v22  ;;  %v1119_v9 = vrot.slane %v1079_v39, 4  ;;  %v6188_v30 = vpop.f32.mrb[26].mxu1  ;;  %v993_v25 = vadd.f32 %v7432_v31, %v992_v54  ;;  %v1247_v1 = vadd.f32 %v7432_v31, %v7534_v57  ;;  %v8483_v8 = vrot.slane %v7593_v38, 4 }
 0x124   : > { %6216 = vmatmul.mubr.msk.bf16.gmra.mrb[44].mxu1 %vm1153_vm8, %v7674_v36  ;;  %6359 = vmatprep.mubr.msk.bf16.mxu0 %vm1153_vm8, %v7674_v36  ;;  %v1004_v16 = vadd.f32 %v6188_v30, %v7432_v31  ;;  %v995_v28 = vpop.f32.mrb[27].mxu1  ;;  %v8484_v39 = vrot.slane %v7652_v59, 4  ;;  %v1700_v22 = vrot.slane %v1692_v23, %v7296_v13  ;;  %v1688_v37 = vrot.slane %v1680_v40, %v7296_v13 }
 0x125   : > { %v1120_v12 = vsel %vm1103_vm7, %v8483_v8, %v1119_v9  ;;  %v1061_v54 = vmax.f32 %v1001_v55, 0.0  ;;  %v996_v57 = vadd.f32 %v7432_v31, %v995_v28  ;;  %v1251_v26 = vmax.f32 %v1247_v1, 0.0  ;;  %v7698_v8 = vld [vmem:[#allocation2 + $0x40] sm:$0xff] }
 0x126   : > { %v1122_v36 = vsel %vm1103_vm7, %v1119_v9, %v8484_v39  ;;  %1161 = vst.msk [vmem:[#allocation2 + $0x48] sm:$0xff] %vm1153_vm8, %v1120_v12  ;;  %v1062_v30 = vmax.f32 %v1004_v16, 0.0  ;;  %v7696_v38 = vld [vmem:[#allocation2 + $0x38] sm:$0xff]  ;;  %v1969_v10 = vshll.u32 %v7654_v20, 16  ;;  %v1253_v9 = vmul.f32 0.0, %v1250_v33 }
 0x127   : > { %1162 = vst.msk [vmem:[#allocation2 + $0x50] sm:$0xff] %vm1153_vm8, %v1122_v36  ;;  %v2840_v23 = vrot.slane %v7696_v38, 4  ;;  %v8457_v40 = vrot.slane %v7698_v8, 4  ;;  %v1954_v39 = vor.u32 %v1953_v53, %v1950_v61  ;;  %v1059_v12 = vmax.f32 %v993_v25, 0.0 }
 0x128   : > { %v7703_v60 = vpack.c.bf16 %v1062_v30, %v1061_v54  ;;  %v1060_v55 = vmax.f32 %v996_v57, 0.0  ;;  %v5513_v16 = vcombine.low %v1688_v37, %v1700_v22  ;;  %v1254_v36 = vmul.f32 0.0, %v1251_v26  ;;  %v1716_v54 = vpop.permute.xlu1 %1715  ;;  %v1704_v30 = vpop.permute.xlu0 %1703 }
 0x129   : > { %v6191_v28 = vpop.f32.mrb[28].mxu1  ;;  %v7706_v1 = vsel %vm1103_vm7, %v2838_v5, %v2840_v23  ;;  %v7711_v20 = vsel %vm1103_vm7, %v2840_v23, %v8457_v40  ;;  %v7715_v33 = vmul.bf16 %v7347_v11, %v7582_v18  ;;  %v1963_v61 = vor.u32 %v1962_v49, %v1959_v3 }
 0x12a   : > { %8485 = vst [vmem:[#allocation15_spill] sm:$0xff] %v7706_v1  ;;  %8486 = vst [vmem:[#allocation16_spill] sm:$0xff] %v7711_v20  ;;  %v8459_v53 = vrot.slane %v7703_v60, 4  ;;  %v1081_v25 = vpack.c.bf16 %v1060_v55, %v1059_v12  ;;  %6219 = vmatprep.mubr.msk.bf16.mxu1 %vm1153_vm8, %v7706_v1  ;;  %v1008_v26 = vpop.f32.mrb[29].mxu1  ;;  %v1968_v37 = vrot.slane %v1966_v19, 4  ;;  %v1971_v5 = vrot.slane %v1969_v10, 5 }
 0x12b   : > { %6360 = vmatmul.mubr.msk.bf16.gmra.mrb[12].mxu0 %vm1153_vm8, %v7706_v1  ;;  %v1255_v22 = vpack.c.bf16 %v1254_v36, %v1253_v9  ;;  %v1017_v57 = vadd.f32 %v6191_v28, %v7432_v31  ;;  %v6192_v11 = vpop.f32.mrb[30].mxu1  ;;  %v1724_v49 = vrot.slane %v1716_v54, %v7296_v13  ;;  %v1712_v23 = vrot.slane %v1704_v30, %v7296_v13 }
 0x12c   : > { %6220 = vmatmul.mubr.msk.bf16.gmra.mrb[48].mxu1 %vm1153_vm8, %v7711_v20  ;;  %6363 = vmatprep.mubr.msk.bf16.mxu0 %vm1153_vm8, %v7711_v20  ;;  %v1123_v3 = vrot.slane %v1081_v25, 4  ;;  %v1020_v12 = vadd.f32 %v6192_v11, %v7432_v31  ;;  %v1011_v19 = vpop.f32.mrb[31].mxu1  ;;  %v7732_v10 = vsel %vm1839_vm6, %v7630_v47, %v1954_v39  ;;  %v1975_v9 = vshrl.u32 %v5513_v16, 16  ;;  %v1740_v25 = vpop.permute.xlu1 %1739 }
 0x12d   : > { %v1257_v55 = vrot.slane %v1255_v22, 4  ;;  %v1009_v36 = vadd.f32 %v7432_v31, %v1008_v26  ;;  %v7735_v28 = vld [vmem:[#allocation2 + $0x48] sm:$0xff]  ;;  %v1978_v54 = vshll.u32 %v5513_v16, 16  ;;  %v8487_v30 = vrot.slane %v7652_v59, 4 }
 0x12e   : > { %v7737_v40 = vld [vmem:[#allocation2 + $0x50] sm:$0xff]  ;;  %v1126_v47 = vsel %vm1103_vm7, %v1123_v3, %v8459_v53  ;;  %v7746_v20 = vor.u32 %v1971_v5, %v1968_v37  ;;  %v1065_v26 = vmax.f32 %v1017_v57, 0.0  ;;  %v1066_v16 = vmax.f32 %v1020_v12, 0.0  ;;  %v1728_v53 = vpop.permute.xlu0 %1727 }
 0x12f   : > { %v1124_v11 = vsel %vm1103_vm7, %v8487_v30, %v1123_v3  ;;  %1164 = vst.msk [vmem:[#allocation2 + $0x60] sm:$0xff] %vm1153_vm8, %v1126_v47  ;;  %v1012_v59 = vadd.f32 %v7432_v31, %v1011_v19  ;;  %v7754_v22 = vsel %vm1839_vm6, %v1954_v39, %v1963_v61  ;;  %v5514_v30 = vcombine.low %v1712_v23, %v1724_v49 }
 0x130   : > { %1163 = vst.msk [vmem:[#allocation2 + $0x58] sm:$0xff] %vm1153_vm8, %v1124_v11  ;;  %8488 = vst [vmem:[#allocation17_spill] sm:$0xff] %v7754_v22  ;;  %v2844_v37 = vrot.slane %v7735_v28, 4  ;;  %v2846_v5 = vrot.slane %v7737_v40, 4  ;;  %v1977_v3 = vrot.slane %v1975_v9, 4  ;;  %v1063_v11 = vmax.f32 %v1009_v36, 0.0 }
 0x131   : > { %1259 = vst.msk [vmem:[#allocation2 + $0x88] sm:$0xf0] %vm530_vm2, %v1257_v55  ;;  %v7758_v47 = vpack.c.bf16 %v1066_v16, %v1065_v26  ;;  %v1064_v1 = vmax.f32 %v1012_v59, 0.0  ;;  %v1980_v57 = vrot.slane %v1978_v54, 5  ;;  %v8489_v19 = vrot.slane %v7698_v8, 4 }
 0x132   : > { %1260 = vst.msk [vmem:[#allocation2 + $0x90] sm:$0xf] %vm528_vm3, %v1257_v55  ;;  %v6195_v55 = vpop.f32.mrb[32].mxu1  ;;  %v7767_v23 = vsel %vm1103_vm7, %v2844_v37, %v2846_v5  ;;  %v7771_v9 = vsel %vm1839_vm6, %v1963_v61, %v7746_v20  ;;  %v1748_v26 = vrot.slane %v1740_v25, %v7296_v13  ;;  %v1984_v25 = vshrl.u32 %v5514_v30, 16 }
 0x133   : > { %v1033_v12 = vadd.f32 %v6195_v55, %v7432_v31  ;;  %v7764_v39 = vsel %vm1103_vm7, %v8489_v19, %v2844_v37  ;;  %v1024_v49 = vpop.f32.mrb[33].mxu1  ;;  %8491 = vst [vmem:[#allocation19_spill] sm:$0xff] %v7767_v23  ;;  %8492 = vst [vmem:[#allocation20_spill] sm:$0xff] %v7771_v9  ;;  %v1129_v36 = vrot.slane %v7758_v47, 4  ;;  %v1083_v54 = vpack.c.bf16 %v1064_v1, %v1063_v11 }
 0x134   : > { %8490 = vst [vmem:[#allocation18_spill] sm:$0xff] %v7764_v39  ;;  %6223 = vmatprep.mubr.msk.bf16.mxu1 %vm1153_vm8, %v7764_v39  ;;  %6364 = vmatmul.mubr.msk.bf16.gmra.mrb[16].mxu0 %vm1153_vm8, %v7764_v39  ;;  %v6196_v16 = vpop.f32.mrb[34].mxu1  ;;  %v1736_v37 = vrot.slane %v1728_v53, %v7296_v13  ;;  %v1025_v55 = vadd.f32 %v7432_v31, %v1024_v49  ;;  %v1987_v11 = vshll.u32 %v5514_v30, 16 }
 0x135   : > { %6224 = vmatmul.mubr.msk.bf16.gmra.mrb[52].mxu1 %vm1153_vm8, %v7767_v23  ;;  %6367 = vmatprep.mubr.msk.bf16.mxu0 %vm1153_vm8, %v7767_v23  ;;  %v1036_v1 = vadd.f32 %v6196_v16, %v7432_v31  ;;  %v1027_v61 = vpop.f32.mrb[35].mxu1  ;;  %v1127_v47 = vrot.slane %v1083_v54, 4  ;;  %v7788_v39 = vor.u32 %v1980_v57, %v1977_v3  ;;  %v1069_v59 = vmax.f32 %v1033_v12, 0.0 }
 0x136   : > { %v1028_v19 = vadd.f32 %v7432_v31, %v1027_v61  ;;  %v7792_v49 = vld [vmem:[#allocation2 + $0x60] sm:$0xff]  ;;  %v2021_v9 = vmul.bf16 %v7453_v15, %v7509_v35  ;;  %v8493_v23 = vrot.slane %v7703_v60, 4  ;;  %v1067_v54 = vmax.f32 %v1025_v55, 0.0 }
 0x137   : > { %v1070_v13 = vmax.f32 %v1036_v1, 0.0  ;;  %v7790_v53 = vld [vmem:[#allocation2 + $0x58] sm:$0xff]  ;;  %v1130_v30 = vsel %vm1103_vm7, %v1127_v47, %v1129_v36  ;;  %v5515_v31 = vcombine.low %v1736_v37, %v1748_v26  ;;  %v2850_v12 = vrot.slane %v7792_v49, 4 }
 0x138   : > { %v1128_v16 = vsel %vm1103_vm7, %v8493_v23, %v1127_v47  ;;  %v1068_v22 = vmax.f32 %v1028_v19, 0.0  ;;  %1166 = vst.msk [vmem:[#allocation2 + $0x70] sm:$0xff] %vm1153_vm8, %v1130_v30  ;;  %v2848_v57 = vrot.slane %v7790_v53, 4  ;;  %v1986_v1 = vrot.slane %v1984_v25, 4 }
 0x139   : > { %1165 = vst.msk [vmem:[#allocation2 + $0x68] sm:$0xff] %vm1153_vm8, %v1128_v16  ;;  %v1086_v3 = vpack.c.bf16 %v1070_v13, %v1069_v59  ;;  %v1989_v15 = vrot.slane %v1987_v11, 5  ;;  %v3085_v60 = vshll.u32 %v7567_v14, 16  ;;  %v2022_v37 = vmul.bf16 %v7461_v45, %v7518_v17 }
 0x13a   : > { %v1085_v61 = vpack.c.bf16 %v1068_v22, %v1067_v54  ;;  %v7806_v47 = vsel %vm1103_vm7, %v2846_v5, %v2848_v57  ;;  %v7809_v26 = vsel %vm1103_vm7, %v2848_v57, %v2850_v12  ;;  %v7816_v59 = vsel %vm1839_vm6, %v7746_v20, %v7788_v39 }
 0x13b   : > { %v1133_v23 = vrot.slane %v1086_v3, 4  ;;  %8494 = vst [vmem:[#allocation21_spill] sm:$0xff] %v7806_v47  ;;  %8495 = vst [vmem:[#allocation22_spill] sm:$0xff] %v7809_v26  ;;  %6227 = vmatprep.mubr.msk.bf16.mxu1 %vm1153_vm8, %v7806_v47  ;;  %v3090_v22 = vshrl.u32 %v2021_v9, 16  ;;  %v3093_v5 = vshll.u32 %v2021_v9, 16  ;;  %v1993_v25 = vshrl.u32 %v5515_v31, 16 }
 0x13c   : > { %v1131_v55 = vrot.slane %v1085_v61, 4  ;;  %6368 = vmatmul.mubr.msk.bf16.gmra.mrb[20].mxu0 %vm1153_vm8, %v7806_v47  ;;  %v8496_v45 = vshrl.u32 %v7567_v14, 16  ;;  %v2780_v11 = vmul.bf16 %v7336_v52, %v7509_v35  ;;  %v2781_v19 = vmul.bf16 %v7342_v63, %v7518_v17 }
 0x13d   : > { %1169 = vst.msk [vmem:[#allocation2 + $0x88] sm:$0xf] %vm528_vm3, %v1133_v23  ;;  %6228 = vmatmul.mubr.msk.bf16.gmra.mrb[56].mxu1 %vm1153_vm8, %v7809_v26  ;;  %6371 = vmatprep.mubr.msk.bf16.mxu0 %vm1153_vm8, %v7809_v26  ;;  %v1996_v9 = vshll.u32 %v5515_v31, 16  ;;  %v3087_v30 = vrot.slane %v3085_v60, 4  ;;  %v3099_v54 = vshrl.u32 %v2022_v37, 16  ;;  %v3092_v35 = vrot.slane %v3090_v22, 3 }
 0x13e   : > { %v7829_v20 = vrot.slane %v8496_v45, 3  ;;  %v1132_v13 = vsel %vm1103_vm7, %v1129_v36, %v1131_v55  ;;  %v1134_v16 = vsel %vm1103_vm7, %v1131_v55, %v1133_v23  ;;  %v3463_v14 = vshrl.u32 %v2780_v11, 16 }
 0x13f   : > { %1167 = vst.msk [vmem:[#allocation2 + $0x78] sm:$0xff] %vm1153_vm8, %v1132_v13  ;;  %1168 = vst.msk [vmem:[#allocation2 + $0x80] sm:$0xff] %vm1153_vm8, %v1134_v16  ;;  %v3466_v3 = vshll.u32 %v2780_v11, 16  ;;  %v3472_v57 = vshrl.u32 %v2781_v19, 16  ;;  %v7841_v52 = vld [vmem:[#allocation2 + $0x70] sm:$0xff]  ;;  %v3095_v63 = vrot.slane %v3093_v5, 4  ;;  %v2023_v55 = vmul.bf16 %v7490_v7, %v7582_v18 }
 0x140   : > { %v7839_v61 = vld [vmem:[#allocation2 + $0x68] sm:$0xff]  ;;  %v3102_v17 = vshll.u32 %v2022_v37, 16  ;;  %v3475_v31 = vshll.u32 %v2781_v19, 16  ;;  %v2854_v60 = vrot.slane %v7841_v52, 4  ;;  %v3465_v23 = vrot.slane %v3463_v14, 4 }
 0x141   : > { %v2852_v36 = vrot.slane %v7839_v61, 4  ;;  %v3468_v45 = vrot.slane %v3466_v3, 5  ;;  %v3474_v13 = vrot.slane %v3472_v57, 4  ;;  %v8497_v16 = vshrl.u32 %v7715_v33, 16 }
 0x142   : > { %v3477_v11 = vrot.slane %v3475_v31, 5  ;;  %v7849_v47 = vor.u32 %v1989_v15, %v1986_v1  ;;  %v3101_v5 = vrot.slane %v3099_v54, 3  ;;  %v3104_v7 = vrot.slane %v3102_v17, 4 }
 0x143   : > { %v3483_v26 = vrot.slane %v8497_v16, 4  ;;  %v7852_v22 = vsel %vm1103_vm7, %v2850_v12, %v2852_v36  ;;  %v7855_v37 = vsel %vm1103_vm7, %v2852_v36, %v2854_v60  ;;  %v7861_v18 = vor.u32 %v3468_v45, %v3465_v23 }
 0x144   : > { %8498 = vst [vmem:[#allocation23_spill] sm:$0xff] %v7855_v37  ;;  %6231 = vmatprep.mubr.msk.bf16.mxu1 %vm1153_vm8, %v7852_v22  ;;  %6372 = vmatmul.mubr.msk.bf16.gmra.mrb[24].mxu0 %vm1153_vm8, %v7852_v22  ;;  %v3478_v19 = vor.u32 %v3477_v11, %v3474_v13  ;;  %v8499_v1 = vshll.u32 %v7715_v33, 16  ;;  %v1995_v14 = vrot.slane %v1993_v25, 4  ;;  %v1998_v12 = vrot.slane %v1996_v9, 5 }
 0x145   : > { %6232 = vmatmul.mubr.msk.bf16.gmra.mrb[60].mxu1 %vm1153_vm8, %v7855_v37  ;;  %6375 = vmatprep.mubr.msk.bf16.mxu0 %vm1153_vm8, %v7855_v37  ;;  %v3088_v54 = vor.u32 %v3087_v30, %v7829_v20  ;;  %v2783_v3 = vmul.bf16 %v7352_v24, %v7584_v62  ;;  %v3096_v31 = vor.u32 %v3095_v63, %v3092_v35  ;;  %v3108_v25 = vshrl.u32 %v2023_v55, 16 }
 0x146   : > { %v3486_v15 = vrot.slane %v8499_v1, 5  ;;  %v7872_v57 = vld [vmem:[#allocation2 + $0x78] sm:$0xff]  ;;  %v7874_v17 = vld [vmem:[#allocation2 + $0x80] sm:$0xff]  ;;  %v7878_v33 = vsel %vm1839_vm6, %v7861_v18, %v3478_v19  ;;  %v3111_v45 = vshll.u32 %v2023_v55, 16  ;;  %v7882_v30 = vor.u32 %v3104_v7, %v3101_v5 }
 0x147   : > { %v2856_v36 = vrot.slane %v7872_v57, 4  ;;  %v2858_v23 = vrot.slane %v7874_v17, 4  ;;  %v3490_v20 = vshrl.u32 %v2783_v3, 16  ;;  %v2024_v35 = vmul.bf16 %v7497_v41, %v7584_v62 }
 0x148   : > { %v3487_v9 = vor.u32 %v3486_v15, %v3483_v26  ;;  %v3493_v63 = vshll.u32 %v2783_v3, 16  ;;  %v7892_v13 = vsel %vm1839_vm6, %v7788_v39, %v7849_v47  ;;  %v2025_v55 = vmul.bf16 %v7501_v50, %v7633_v2  ;;  %v7913_v50 = vld [vmem:[#allocation2 + $0x88] sm:$0xff] }
 0x149   : > { %v7895_v26 = vsel %vm1103_vm7, %v2854_v60, %v2856_v36  ;;  %v3492_v11 = vrot.slane %v3490_v20, 4  ;;  %v7899_v16 = vor.u32 %v1998_v12, %v1995_v14  ;;  %v7904_v41 = vsel %vm1103_vm7, %v2856_v36, %v2858_v23 }
 0x14a   : > { %v7885_v24 = vsel %vm1839_vm6, %v3478_v19, %v3487_v9  ;;  %8500 = vst [vmem:[#allocation24_spill] sm:$0xff] %v7895_v26  ;;  %6235 = vmatprep.mubr.msk.bf16.mxu1 %vm1153_vm8, %v7895_v26  ;;  %8501 = vst [vmem:[#allocation25_spill] sm:$0xff] %v7904_v41  ;;  %v3097_v62 = vsel %vm2598_vm5, %v3088_v54, %v3096_v31  ;;  %v3495_v5 = vrot.slane %v3493_v63, 5  ;;  %v3110_v39 = vrot.slane %v3108_v25, 3 }
 0x14b   : > { %v3113_v7 = vrot.slane %v3111_v45, 4  ;;  %v2784_v60 = vmul.bf16 %v7357_v34, %v7633_v2  ;;  %v2785_v19 = vmul.bf16 %v7362_v44, %v7635_v46  ;;  %v7917_v1 = vsel %vm2598_vm5, %v3096_v31, %v7882_v30 }
 0x14c   : > { %6376 = vmatmul.mubr.msk.bf16.gmra.mrb[28].mxu0 %vm1153_vm8, %v7895_v26  ;;  %v3117_v15 = vshrl.u32 %v2024_v35, 16  ;;  %v3496_v14 = vor.u32 %v3495_v5, %v3492_v11  ;;  %v2026_v12 = vmul.bf16 %v7530_v0, %v7635_v46  ;;  %v3120_v34 = vshll.u32 %v2024_v35, 16 }
 0x14d   : > { %6236 = vmatmul.mubr.msk.bf16.gmra.mrb[64].mxu1 %vm1153_vm8, %v7904_v41  ;;  %6379 = vmatprep.mubr.msk.bf16.mxu0 %vm1153_vm8, %v7904_v41  ;;  %v3126_v44 = vshrl.u32 %v2025_v55, 16  ;;  %v3499_v2 = vshrl.u32 %v2784_v60, 16  ;;  %v3502_v54 = vshll.u32 %v2784_v60, 16  ;;  %v3129_v31 = vshll.u32 %v2025_v55, 16 }
 0x14e   : > { %6243 = vmatprep.mubr.msk.bf16.mxu1 %vm1153_vm8, %v3097_v62  ;;  %v7927_v3 = vsel %vm1839_vm6, %v3487_v9, %v3496_v14  ;;  %v3508_v25 = vshrl.u32 %v2785_v19, 16  ;;  %v3511_v36 = vshll.u32 %v2785_v19, 16  ;;  %v4090_v0 = vrot.slane %v7913_v50, 4 }
 0x14f   : > { %v3114_v46 = vor.u32 %v3113_v7, %v3110_v39  ;;  %v3501_v45 = vrot.slane %v3499_v2, 4  ;;  %v3504_v20 = vrot.slane %v3502_v54, 5  ;;  %v3135_v63 = vshrl.u32 %v2026_v12, 16 }
 0x150   : > { %v3138_v11 = vshll.u32 %v2026_v12, 16  ;;  %v3510_v5 = vrot.slane %v3508_v25, 4  ;;  %v3513_v35 = vrot.slane %v3511_v36, 5  ;;  %v3119_v41 = vrot.slane %v3117_v15, 3 }
 0x151   : > { %v3122_v26 = vrot.slane %v3120_v34, 4  ;;  %v3505_v60 = vor.u32 %v3504_v20, %v3501_v45  ;;  %v2786_v62 = vmul.bf16 %v7367_v58, %v7696_v38  ;;  %v3128_v9 = vrot.slane %v3126_v44, 3  ;;  %v6825_v58 = vld [vmem:[%s8443_s7 + $0x28] sm:$0xff]  }
 0x152   : > { %v3131_v37 = vrot.slane %v3129_v31, 4  ;;  %v3514_v55 = vor.u32 %v3513_v35, %v3510_v5  ;;  %v2787_v19 = vmul.bf16 %v7372_v6, %v7698_v8  ;;  %v7937_v39 = vsel %vm1103_vm7, %v2858_v23, %v4090_v0 }
 0x153   : > { %v7940_v7 = vsel %vm1839_vm6, %v3496_v14, %v3505_v60  ;;  %v2027_v15 = vmul.bf16 %v7546_v48, %v7696_v38  ;;  %v3517_v12 = vshrl.u32 %v2786_v62, 16  ;;  %v3137_v6 = vrot.slane %v3135_v63, 3 }
 0x154   : > { %6380 = vmatmul.mubr.msk.bf16.gmra.mrb[32].mxu0 %vm1153_vm8, %v7937_v39  ;;  %v3140_v34 = vrot.slane %v3138_v11, 4  ;;  %v7950_v44 = vsel %vm1839_vm6, %v3505_v60, %v3514_v55  ;;  %v3520_v23 = vshll.u32 %v2786_v62, 16  ;;  %v7958_v48 = vsel %vm2598_vm5, %v7882_v30, %v3114_v46 }
 0x155   : > { %6244 = vmatmul.mubr.msk.bf16.vlgmr.msra.gmra.mrb[36].mxu1 %vm1153_vm8, %v7917_v1  ;;  %6387 = vmatprep.mubr.msk.bf16.mxu0 %vm1153_vm8, %v7878_v33  ;;  %v3519_v38 = vrot.slane %v3517_v12, 4  ;;  %v3526_v14 = vshrl.u32 %v2787_v19, 16  ;;  %v3529_v2 = vshll.u32 %v2787_v19, 16  ;;  %v7963_v54 = vsel %vm1839_vm6, %v7849_v47, %v7899_v16  ;;  %v7973_v47 = vld [vmem:[%s8443_s7 + $0x30] sm:$0xff]  }
 0x156   : > { %6247 = vmatprep.mubr.msk.bf16.mxu1 %vm1153_vm8, %v7958_v48  ;;  %v3123_v31 = vor.u32 %v3122_v26, %v3119_v41  ;;  %v3132_v25 = vor.u32 %v3131_v37, %v3128_v9  ;;  %v3522_v36 = vrot.slane %v3520_v23, 5  ;;  %6276 = vmatpush3.bf16.msra.mxu1 %v7574_v56  ;;  %v3144_v45 = vshrl.u32 %v2027_v15, 16 }
 0x157   : > { %v3528_v20 = vrot.slane %v3526_v14, 4  ;;  %v3531_v30 = vrot.slane %v3529_v2, 5  ;;  %v2788_v63 = vmul.bf16 %v7377_v21, %v7735_v28  ;;  %6277 = vmatprep.subr.bf16.mxu1 %v6825_v58  ;;  %v7975_v11 = vor.u32 %v3140_v34, %v3137_v6 }
 0x158   : > { %v3147_v5 = vshll.u32 %v2027_v15, 16  ;;  %v3523_v26 = vor.u32 %v3522_v36, %v3519_v38  ;;  %v2028_v37 = vmul.bf16 %v7549_v29, %v7698_v8  ;;  %v2029_v41 = vmul.bf16 %v7562_v27, %v7735_v28 }
 0x159   : > { %v3532_v56 = vor.u32 %v3531_v30, %v3528_v20  ;;  %v3535_v35 = vshrl.u32 %v2788_v63, 16  ;;  %v3538_v60 = vshll.u32 %v2788_v63, 16  ;;  %v7982_v21 = vsel %vm2598_vm5, %v3114_v46, %v3123_v31  ;;  %v6823_v46 = vld [vmem:[%s8443_s7 + $0x68] sm:$0xff]  }
 0x15a   : > { %v7985_v62 = vsel %vm2598_vm5, %v3123_v31, %v3132_v25  ;;  %v7988_v9 = vsel %vm1839_vm6, %v3514_v55, %v3523_v26  ;;  %v2030_v19 = vmul.bf16 %v7650_v4, %v7737_v40  ;;  %6278 = vmatpush3.bf16.msra.mxu1 %v6825_v58  ;;  %v3146_v29 = vrot.slane %v3144_v45, 3 }
 0x15b   : > { %v7993_v8 = vsel %vm1839_vm6, %v3523_v26, %v3532_v56  ;;  %v3537_v27 = vrot.slane %v3535_v35, 4  ;;  %v3540_v28 = vrot.slane %v3538_v60, 5  ;;  %6311 = vmatprep.subr.bf16.mxu1 %v7973_v47  ;;  %v8003_v55 = vsel %vm2598_vm5, %v3132_v25, %v7975_v11 }
 0x15c   : > { %6388 = vmatmul.mubr.msk.bf16.vlgmr.msra.gmra.mrb[4].mxu0 %vm1153_vm8, %v7885_v24  ;;  %v3149_v4 = vrot.slane %v3147_v5, 4  ;;  %v3153_v15 = vshrl.u32 %v2028_v37, 16  ;;  %v2789_v12 = vmul.bf16 %v7382_v32, %v7737_v40  ;;  %v3156_v58 = vshll.u32 %v2028_v37, 16 }
 0x15d   : > { %6420 = vmatpush3.bf16.msra.mxu0 %v7628_v51  ;;  %6248 = vmatmul.mubr.msk.bf16.gmra.mrb[40].mxu1 %vm1153_vm8, %v7982_v21  ;;  %v3162_v6 = vshrl.u32 %v2029_v41, 16  ;;  %v3541_v34 = vor.u32 %v3540_v28, %v3537_v27  ;;  %v2790_v23 = vmul.bf16 %v7387_v43, %v7790_v53  ;;  %v3165_v38 = vshll.u32 %v2029_v41, 16  ;;  %v8019_v51 = vld [vmem:[%s8443_s7 + $0x70] sm:$0xff]  }
 0x15e   : > { %6391 = vmatprep.mubr.msk.bf16.mxu0 %vm1153_vm8, %v7927_v3  ;;  %6251 = vmatprep.mubr.msk.bf16.mxu1 %vm1153_vm8, %v7985_v62  ;;  %v3171_v14 = vshrl.u32 %v2030_v19, 16  ;;  %v3544_v32 = vshrl.u32 %v2789_v12, 16  ;;  %v3547_v40 = vshll.u32 %v2789_v12, 16  ;;  %v3174_v31 = vshll.u32 %v2030_v19, 16 }
 0x15f   : > { %v8022_v2 = vsel %vm1839_vm6, %v3532_v56, %v3541_v34  ;;  %v2031_v43 = vmul.bf16 %v7665_v42, %v7790_v53  ;;  %6421 = vmatprep.subr.bf16.mxu0 %v6823_v46  ;;  %v3553_v25 = vshrl.u32 %v2790_v23, 16  ;;  %v3150_v36 = vor.u32 %v3149_v4, %v3146_v29  ;;  %v8502_v53 = vld [vmem:[#allocation3_spill] sm:$0xff] }
 0x160   : > { %v3546_v45 = vrot.slane %v3544_v32, 4  ;;  %v3549_v20 = vrot.slane %v3547_v40, 5  ;;  %v3556_v30 = vshll.u32 %v2790_v23, 16  ;;  %v3155_v63 = vrot.slane %v3153_v15, 3  ;;  %v8503_v15 = vld [vmem:[#allocation4_spill] sm:$0xff] }
 0x161   : > { %v3158_v5 = vrot.slane %v3156_v58, 4  ;;  %v3164_v26 = vrot.slane %v3162_v6, 3  ;;  %v3555_v37 = vrot.slane %v3553_v25, 4  ;;  %6422 = vmatpush3.bf16.msra.mxu0 %v6823_v46  ;;  %v3167_v41 = vrot.slane %v3165_v38, 4  ;;  %v8504_v38 = vld [vmem:[#allocation17_spill] sm:$0xff] }
 0x162   : > { %v3173_v35 = vrot.slane %v3171_v14, 3  ;;  %v3550_v60 = vor.u32 %v3549_v20, %v3546_v45  ;;  %v3558_v56 = vrot.slane %v3556_v30, 5  ;;  %6455 = vmatprep.subr.bf16.mxu0 %v8019_v51  ;;  %v3176_v19 = vrot.slane %v3174_v31, 4 }
 0x163   : > { %v3180_v27 = vshrl.u32 %v2031_v43, 16  ;;  %v2032_v42 = vmul.bf16 %v7732_v10, %v7792_v49  ;;  %v2791_v29 = vmul.bf16 %v8502_v53, %v7792_v49  ;;  %v3183_v46 = vshll.u32 %v2031_v43, 16 }
 0x164   : > { %6392 = vmatmul.mubr.msk.bf16.gmra.mrb[8].mxu0 %vm1153_vm8, %v7940_v7  ;;  %v8034_v28 = vsel %vm1839_vm6, %v3541_v34, %v3550_v60  ;;  %v3559_v4 = vor.u32 %v3558_v56, %v3555_v37  ;;  %v2792_v12 = vmul.bf16 %v8503_v15, %v7839_v61  ;;  %v8044_v10 = vsel %vm2598_vm5, %v7975_v11, %v3150_v36 }
 0x165   : > { %6252 = vmatmul.mubr.msk.bf16.gmra.mrb[44].mxu1 %vm1153_vm8, %v8003_v55  ;;  %6395 = vmatprep.mubr.msk.bf16.mxu0 %vm1153_vm8, %v7950_v44  ;;  %v3159_v49 = vor.u32 %v3158_v5, %v3155_v63  ;;  %v3562_v58 = vshrl.u32 %v2791_v29, 16  ;;  %v3565_v6 = vshll.u32 %v2791_v29, 16  ;;  %v3168_v34 = vor.u32 %v3167_v41, %v3164_v26  ;;  %v8505_v26 = vld [vmem:[#allocation5_spill] sm:$0xff] }
 0x166   : > { %6255 = vmatprep.mubr.msk.bf16.mxu1 %vm1153_vm8, %v8044_v10  ;;  %v8049_v23 = vsel %vm1839_vm6, %v3550_v60, %v3559_v4  ;;  %v2033_v14 = vmul.bf16 %v8504_v38, %v7839_v61  ;;  %v3571_v32 = vshrl.u32 %v2792_v12, 16  ;;  %v3177_v40 = vor.u32 %v3176_v19, %v3173_v35  ;;  %v8506_v35 = vld [vmem:[#allocation6_spill] sm:$0xff] }
 0x167   : > { %v3564_v31 = vrot.slane %v3562_v58, 4  ;;  %v3567_v43 = vrot.slane %v3565_v6, 5  ;;  %v3574_v25 = vshll.u32 %v2792_v12, 16  ;;  %v3182_v11 = vrot.slane %v3180_v27, 3 }
 0x168   : > { %v3185_v45 = vrot.slane %v3183_v46, 4  ;;  %v3189_v20 = vshrl.u32 %v2032_v42, 16  ;;  %v3573_v30 = vrot.slane %v3571_v32, 4  ;;  %v3192_v63 = vshll.u32 %v2032_v42, 16 }
 0x169   : > { %v3568_v5 = vor.u32 %v3567_v43, %v3564_v31  ;;  %v3576_v37 = vrot.slane %v3574_v25, 5  ;;  %v2793_v41 = vmul.bf16 %v8505_v26, %v7841_v52  ;;  %v8056_v60 = vsel %vm2598_vm5, %v3150_v36, %v3159_v49  ;;  %v8507_v31 = vld [vmem:[#allocation20_spill] sm:$0xff] }
 0x16a   : > { %v3198_v56 = vshrl.u32 %v2033_v14, 16  ;;  %v3201_v61 = vshll.u32 %v2033_v14, 16  ;;  %v2794_v19 = vmul.bf16 %v8506_v35, %v7872_v57  ;;  %v8066_v42 = vsel %vm2598_vm5, %v3159_v49, %v3168_v34 }
 0x16b   : > { %v8061_v53 = vsel %vm1839_vm6, %v3559_v4, %v3568_v5  ;;  %v3577_v27 = vor.u32 %v3576_v37, %v3573_v30  ;;  %v3580_v29 = vshrl.u32 %v2793_v41, 16  ;;  %v3583_v46 = vshll.u32 %v2793_v41, 16  ;;  %v8509_v37 = vld [vmem:[#allocation10_spill] sm:$0xff] }
 0x16c   : > { %6396 = vmatmul.mubr.msk.bf16.gmra.mrb[12].mxu0 %vm1153_vm8, %v7988_v9  ;;  %v8069_v36 = vsel %vm2598_vm5, %v3168_v34, %v3177_v40  ;;  %v8071_v15 = vor.u32 %v3185_v45, %v3182_v11  ;;  %v3191_v12 = vrot.slane %v3189_v20, 3  ;;  %v3194_v4 = vrot.slane %v3192_v63, 4  ;;  %v8508_v45 = vld [vmem:[#allocation7_spill] sm:$0xff] }
 0x16d   : > { %6256 = vmatmul.mubr.msk.bf16.gmra.mrb[48].mxu1 %vm1153_vm8, %v8056_v60  ;;  %6399 = vmatprep.mubr.msk.bf16.mxu0 %vm1153_vm8, %v7993_v8  ;;  %v8078_v58 = vsel %vm1839_vm6, %v3568_v5, %v3577_v27  ;;  %v3582_v6 = vrot.slane %v3580_v29, 4  ;;  %v3585_v38 = vrot.slane %v3583_v46, 5  ;;  %v3200_v49 = vrot.slane %v3198_v56, 3 }
 0x16e   : > { %6259 = vmatprep.mubr.msk.bf16.mxu1 %vm1153_vm8, %v8066_v42  ;;  %v3203_v34 = vrot.slane %v3201_v61, 4  ;;  %v3589_v14 = vshrl.u32 %v2794_v19, 16  ;;  %v3592_v32 = vshll.u32 %v2794_v19, 16  ;;  %v2034_v43 = vmul.bf16 %v8507_v31, %v7841_v52 }
 0x16f   : > { %v3586_v25 = vor.u32 %v3585_v38, %v3582_v6  ;;  %v2036_v11 = vmul.bf16 %v7892_v13, %v7874_v17  ;;  %v2795_v20 = vmul.bf16 %v8508_v45, %v7874_v17  ;;  %v8090_v30 = vsel %vm2598_vm5, %v3177_v40, %v8071_v15  ;;  %v8510_v38 = vld [vmem:[#allocation9_spill] sm:$0xff] }
 0x170   : > { %v3591_v63 = vrot.slane %v3589_v14, 4  ;;  %v3594_v5 = vrot.slane %v3592_v32, 5  ;;  %v3455_v26 = vshrl.u32 %v8509_v37, 16  ;;  %v3195_v41 = vor.u32 %v3194_v4, %v3191_v12 }
 0x171   : > { %v8094_v56 = vsel %vm1839_vm6, %v3577_v27, %v3586_v25  ;;  %v3225_v52 = vshrl.u32 %v2036_v11, 16  ;;  %v3228_v61 = vshll.u32 %v2036_v11, 16  ;;  %v2035_v13 = vmul.bf16 %v7816_v59, %v7872_v57 }
 0x172   : > { %v3595_v35 = vor.u32 %v3594_v5, %v3591_v63  ;;  %v3598_v19 = vshrl.u32 %v2795_v20, 16  ;;  %v3601_v17 = vshll.u32 %v2795_v20, 16  ;;  %v3204_v29 = vor.u32 %v3203_v34, %v3200_v49 }
 0x173   : > { %v3207_v46 = vshrl.u32 %v2034_v43, 16  ;;  %v3457_v40 = vrot.slane %v3455_v26, 4  ;;  %v3458_v6 = vshll.u32 %v8509_v37, 16  ;;  %v2796_v14 = vmul.bf16 %v8510_v38, %v7913_v50 }
 0x174   : > { %6400 = vmatmul.mubr.msk.bf16.gmra.mrb[16].mxu0 %vm1153_vm8, %v8022_v2  ;;  %v8102_v12 = vsel %vm1839_vm6, %v3586_v25, %v3595_v35  ;;  %v3600_v27 = vrot.slane %v3598_v19, 4  ;;  %v3603_v4 = vrot.slane %v3601_v17, 5  ;;  %v3227_v59 = vrot.slane %v3225_v52, 3  ;;  %v8117_v19 = vld [vmem:[#allocation2 + $0x90] sm:$0xf] }
 0x175   : > { %6260 = vmatmul.mubr.msk.bf16.gmra.mrb[52].mxu1 %vm1153_vm8, %v8069_v36  ;;  %6403 = vmatprep.mubr.msk.bf16.mxu0 %vm1153_vm8, %v8034_v28  ;;  %v3230_v57 = vrot.slane %v3228_v61, 4  ;;  %v3460_v49 = vrot.slane %v3458_v6, 5  ;;  %v2037_v34 = vmul.bf16 %v7963_v54, %v7913_v50  ;;  %v3210_v32 = vshll.u32 %v2034_v43, 16 }
 0x176   : > { %6263 = vmatprep.mubr.msk.bf16.mxu1 %vm1153_vm8, %v8090_v30  ;;  %v3604_v31 = vor.u32 %v3603_v4, %v3600_v27  ;;  %v4301_v25 = vshrl.u32 %v2796_v14, 16  ;;  %v4304_v11 = vshll.u32 %v2796_v14, 16  ;;  %v3216_v45 = vshrl.u32 %v2035_v13, 16 }
 0x177   : > { %v3461_v20 = vor.u32 %v3460_v49, %v3457_v40  ;;  %v3873_v63 = vshrl.u32 %v2037_v34, 16  ;;  %v3876_v5 = vshll.u32 %v2037_v34, 16  ;;  %v3219_v37 = vshll.u32 %v2035_v13, 16 }
 0x178   : > { %v8115_v26 = vsel %vm1839_vm6, %v3595_v35, %v3604_v31  ;;  %v4303_v52 = vrot.slane %v4301_v25, 4  ;;  %v4306_v61 = vrot.slane %v4304_v11, 5  ;;  %v3231_v54 = vor.u32 %v3230_v57, %v3227_v59 }
 0x179   : > { %v3470_v17 = vsel %vm1839_vm6, %v3461_v20, %v7861_v18  ;;  %v3875_v43 = vrot.slane %v3873_v63, 3  ;;  %v3878_v6 = vrot.slane %v3876_v5, 4  ;;  %v4748_v40 = vrot.slane %v8117_v19, 4  ;;  %v8511_v20 = vld [vmem:[#allocation11_spill] sm:$0xff]  ;;  %v6831_v63 = vld [vmem:[%s8443_s7 + $0x88] sm:$0xff]  }
 0x17a   : > { %v8121_v27 = vor.u32 %v4306_v61, %v4303_v52  ;;  %v8126_v13 = vsel %vm2598_vm5, %v8071_v15, %v3195_v41  ;;  %v3209_v4 = vrot.slane %v3207_v46, 3  ;;  %v3212_v38 = vrot.slane %v3210_v32, 4  ;;  %v6827_v32 = vld [vmem:[%s8443_s7 + $0x78] sm:$0xff]   ;;  %v8513_v5 = vld [vmem:[#allocation13_spill] sm:$0xff] }
 0x17b   : > { %v8128_v35 = vor.u32 %v3878_v6, %v3875_v43  ;;  %v8139_v14 = vsel %vm1103_vm7, %v4090_v0, %v4748_v40  ;;  %v8146_v15 = vsel %vm2598_vm5, %v3195_v41, %v3204_v29  ;;  %v3218_v46 = vrot.slane %v3216_v45, 3 }
 0x17c   : > { %6404 = vmatmul.mubr.msk.bf16.gmra.mrb[20].mxu0 %vm1153_vm8, %v8049_v23  ;;  %v8134_v18 = vsel %vm1839_vm6, %v3604_v31, %v8121_v27  ;;  %v3221_v59 = vrot.slane %v3219_v37, 4  ;;  %v3213_v50 = vor.u32 %v3212_v38, %v3209_v4  ;;  %v8518_v37 = vld [vmem:[#allocation19_spill] sm:$0xff] }
 0x17d   : > { %6264 = vmatmul.mubr.msk.bf16.gmra.mrb[56].mxu1 %vm1153_vm8, %v8126_v13  ;;  %6407 = vmatprep.mubr.msk.bf16.mxu0 %vm1153_vm8, %v8061_v53  ;;  %v8150_v57 = vsel %vm2598_vm5, %v3231_v54, %v8128_v35 }
 0x17e   : > { %6267 = vmatprep.mubr.msk.bf16.mxu1 %vm1153_vm8, %v8146_v15  ;;  %v3222_v0 = vor.u32 %v3221_v59, %v3218_v46  ;;  %v8157_v49 = vsel %vm2598_vm5, %v3204_v29, %v3213_v50  ;;  %v6829_v29 = vld [vmem:[%s8443_s7 + $0x38] sm:$0xff]  }
 0x180   : > { %v8164_v41 = vsel %vm2598_vm5, %v3213_v50, %v3222_v0  ;;  %v8171_v34 = vsel %vm2598_vm5, %v3222_v0, %v3231_v54 }
 0x184   : > { %6408 = vmatmul.mubr.msk.bf16.gmra.mrb[24].mxu0 %vm1153_vm8, %v8078_v58 }
 0x185   : > { %6268 = vmatmul.mubr.msk.bf16.gmra.mrb[60].mxu1 %vm1153_vm8, %v8157_v49  ;;  %6411 = vmatprep.mubr.msk.bf16.mxu0 %vm1153_vm8, %v8094_v56 }
 0x186   : > { %6271 = vmatprep.mubr.msk.bf16.mxu1 %vm1153_vm8, %v8164_v41 }
 0x18c   : > { %6412 = vmatmul.mubr.msk.bf16.gmra.mrb[28].mxu0 %vm1153_vm8, %v8102_v12 }
 0x18d   : > { %6272 = vmatmul.mubr.msk.bf16.gmra.mrb[64].mxu1 %vm1153_vm8, %v8171_v34  ;;  %6415 = vmatprep.mubr.msk.bf16.mxu0 %vm1153_vm8, %v8115_v26 }
 0x18e   : > { %6279 = vmatprep.mubr.msk.bf16.mxu1 %vm1153_vm8, %v3470_v17 }
 0x194   : > { %6416 = vmatmul.mubr.msk.bf16.gmra.mrb[32].mxu0 %vm1153_vm8, %v8134_v18 }
 0x195   : > { %6280 = vmatmul.mubr.msk.bf16.vlgmr.msra.gmra.mrb[36].mxu1 %vm1153_vm8, %v7878_v33  ;;  %6423 = vmatprep.mubr.msk.bf16.mxu0 %vm1153_vm8, %v7958_v48  ;;  %v6830_v33 = vld [vmem:[%s8443_s7 + $0x80] sm:$0xff]  }
 0x196   : > { %6283 = vmatprep.mubr.msk.bf16.mxu1 %vm1153_vm8, %v7885_v24  ;;  %6312 = vmatpush3.bf16.msra.mxu1 %v7973_v47  ;;  %v2038_v47 = vmul.bf16 %v7899_v16, %v8117_v19 }
 0x197   : > { %6313 = vmatprep.subr.bf16.mxu1 %v6829_v29 }
 0x198   : > { %v4534_v31 = vshll.u32 %v2038_v47, 16 }
 0x19a   : > { %6314 = vmatpush3.bf16.msra.mxu1 %v6829_v29  ;;  %v4536_v25 = vrot.slane %v4534_v31, 4 }
 0x19c   : > { %6424 = vmatmul.mubr.msk.bf16.vlgmr.msra.gmra.mrb[4].mxu0 %vm1153_vm8, %v7982_v21 }
 0x19d   : > { %6456 = vmatpush3.bf16.msra.mxu0 %v8019_v51  ;;  %6284 = vmatmul.mubr.msk.bf16.gmra.mrb[40].mxu1 %vm1153_vm8, %v7927_v3  ;;  %v4531_v51 = vshrl.u32 %v2038_v47, 16 }
 0x19e   : > { %6427 = vmatprep.mubr.msk.bf16.mxu0 %vm1153_vm8, %v7985_v62  ;;  %6287 = vmatprep.mubr.msk.bf16.mxu1 %vm1153_vm8, %v7940_v7 }
 0x19f   : > { %6457 = vmatprep.subr.bf16.mxu0 %v6827_v32  ;;  %v4533_v16 = vrot.slane %v4531_v51, 3 }
 0x1a1   : > { %6458 = vmatpush3.bf16.msra.mxu0 %v6827_v32  ;;  %v4537_v11 = vor.u32 %v4536_v25, %v4533_v16 }
 0x1a2   : > { %6491 = vmatprep.subr.bf16.mxu0 %v6830_v33 }
 0x1a3   : > { %v4538_v45 = vsel %vm2598_vm5, %v8128_v35, %v4537_v11 }
 0x1a4   : > { %6428 = vmatmul.mubr.msk.bf16.gmra.mrb[8].mxu0 %vm1153_vm8, %v8003_v55 }
 0x1a5   : > { %6288 = vmatmul.mubr.msk.bf16.gmra.mrb[44].mxu1 %vm1153_vm8, %v7950_v44  ;;  %6431 = vmatprep.mubr.msk.bf16.mxu0 %vm1153_vm8, %v8044_v10 }
 0x1a6   : > { %6291 = vmatprep.mubr.msk.bf16.mxu1 %vm1153_vm8, %v7988_v9 }
 0x1ac   : > { %6432 = vmatmul.mubr.msk.bf16.gmra.mrb[12].mxu0 %vm1153_vm8, %v8056_v60 }
 0x1ad   : > { %6292 = vmatmul.mubr.msk.bf16.gmra.mrb[48].mxu1 %vm1153_vm8, %v7993_v8  ;;  %6435 = vmatprep.mubr.msk.bf16.mxu0 %vm1153_vm8, %v8066_v42 }
 0x1ae   : > { %6295 = vmatprep.mubr.msk.bf16.mxu1 %vm1153_vm8, %v8022_v2 }
 0x1b4   : > { %6436 = vmatmul.mubr.msk.bf16.gmra.mrb[16].mxu0 %vm1153_vm8, %v8069_v36 }
 0x1b5   : > { %6296 = vmatmul.mubr.msk.bf16.gmra.mrb[52].mxu1 %vm1153_vm8, %v8034_v28  ;;  %6439 = vmatprep.mubr.msk.bf16.mxu0 %vm1153_vm8, %v8090_v30 }
 0x1b6   : > { %6299 = vmatprep.mubr.msk.bf16.mxu1 %vm1153_vm8, %v8049_v23 }
 0x1bc   : > { %6440 = vmatmul.mubr.msk.bf16.gmra.mrb[20].mxu0 %vm1153_vm8, %v8126_v13 }
 0x1bd   : > { %6300 = vmatmul.mubr.msk.bf16.gmra.mrb[56].mxu1 %vm1153_vm8, %v8061_v53  ;;  %6443 = vmatprep.mubr.msk.bf16.mxu0 %vm1153_vm8, %v8146_v15 }
 0x1be   : > { %6303 = vmatprep.mubr.msk.bf16.mxu1 %vm1153_vm8, %v8078_v58 }
 0x1c4   : > { %6444 = vmatmul.mubr.msk.bf16.gmra.mrb[24].mxu0 %vm1153_vm8, %v8157_v49 }
 0x1c5   : > { %6304 = vmatmul.mubr.msk.bf16.gmra.mrb[60].mxu1 %vm1153_vm8, %v8094_v56  ;;  %6447 = vmatprep.mubr.msk.bf16.mxu0 %vm1153_vm8, %v8164_v41 }
 0x1c6   : > { %6307 = vmatprep.mubr.msk.bf16.mxu1 %vm1153_vm8, %v8102_v12 }
 0x1cc   : > { %6448 = vmatmul.mubr.msk.bf16.gmra.mrb[28].mxu0 %vm1153_vm8, %v8171_v34 }
 0x1cd   : > { %6308 = vmatmul.mubr.msk.bf16.gmra.mrb[64].mxu1 %vm1153_vm8, %v8115_v26  ;;  %6451 = vmatprep.mubr.msk.bf16.mxu0 %vm1153_vm8, %v8150_v57 }
 0x1ce   : > { %6315 = vmatprep.mubr.msk.bf16.mxu1 %vm1153_vm8, %v7917_v1  ;;  %v8512_v1 = vld [vmem:[#allocation12_spill] sm:$0xff] }
 0x1d4   : > { %6452 = vmatmul.mubr.msk.bf16.gmra.mrb[32].mxu0 %vm1153_vm8, %v4538_v45 }
 0x1d5   : > { %6316 = vmatmul.mubr.msk.bf16.vlgmr.msra.gmra.mrb[36].mxu1 %vm1153_vm8, %v7958_v48  ;;  %6459 = vmatprep.mubr.msk.bf16.mxu0 %vm1153_vm8, %v8511_v20  ;;  %v8514_v48 = vld [vmem:[#allocation14_spill] sm:$0xff] }
 0x1d6   : > { %6319 = vmatprep.mubr.msk.bf16.mxu1 %vm1153_vm8, %v7982_v21  ;;  %v8515_v21 = vld [vmem:[#allocation15_spill] sm:$0xff] }
 0x1dc   : > { %6460 = vmatmul.mubr.msk.bf16.vlgmr.msra.gmra.mrb[4].mxu0 %vm1153_vm8, %v8512_v1 }
 0x1dd   : > { %6492 = vmatpush3.bf16.msra.mxu0 %v6830_v33  ;;  %6320 = vmatmul.mubr.msk.bf16.gmra.mrb[40].mxu1 %vm1153_vm8, %v7985_v62  ;;  %v8516_v62 = vld [vmem:[#allocation16_spill] sm:$0xff] }
 0x1de   : > { %6463 = vmatprep.mubr.msk.bf16.mxu0 %vm1153_vm8, %v8513_v5  ;;  %6323 = vmatprep.mubr.msk.bf16.mxu1 %vm1153_vm8, %v8003_v55  ;;  %v8517_v55 = vld [vmem:[#allocation18_spill] sm:$0xff] }
 0x1df   : > { %6493 = vmatprep.subr.bf16.mxu0 %v6831_v63 }
 0x1e1   : > { %6494 = vmatpush3.bf16.msra.mxu0 %v6831_v63 }
 0x1e4   : > { %6464 = vmatmul.mubr.msk.bf16.gmra.mrb[8].mxu0 %vm1153_vm8, %v8514_v48 }
 0x1e5   : > { %6324 = vmatmul.mubr.msk.bf16.gmra.mrb[44].mxu1 %vm1153_vm8, %v8044_v10  ;;  %6467 = vmatprep.mubr.msk.bf16.mxu0 %vm1153_vm8, %v8515_v21  ;;  %v8519_v10 = vld [vmem:[#allocation21_spill] sm:$0xff] }
 0x1e6   : > { %6327 = vmatprep.mubr.msk.bf16.mxu1 %vm1153_vm8, %v8056_v60  ;;  %v8520_v60 = vld [vmem:[#allocation22_spill] sm:$0xff] }
 0x1ec   : > { %6468 = vmatmul.mubr.msk.bf16.gmra.mrb[12].mxu0 %vm1153_vm8, %v8516_v62 }
 0x1ed   : > { %6328 = vmatmul.mubr.msk.bf16.gmra.mrb[48].mxu1 %vm1153_vm8, %v8066_v42  ;;  %6471 = vmatprep.mubr.msk.bf16.mxu0 %vm1153_vm8, %v8517_v55  ;;  %v8521_v42 = vld [vmem:[#allocation23_spill] sm:$0xff] }
 0x1ee   : > { %6331 = vmatprep.mubr.msk.bf16.mxu1 %vm1153_vm8, %v8069_v36  ;;  %v8522_v36 = vld [vmem:[#allocation24_spill] sm:$0xff] }
 0x1f4   : > { %6472 = vmatmul.mubr.msk.bf16.gmra.mrb[16].mxu0 %vm1153_vm8, %v8518_v37 }
 0x1f5   : > { %6332 = vmatmul.mubr.msk.bf16.gmra.mrb[52].mxu1 %vm1153_vm8, %v8090_v30  ;;  %6475 = vmatprep.mubr.msk.bf16.mxu0 %vm1153_vm8, %v8519_v10  ;;  %v8523_v30 = vld [vmem:[#allocation25_spill] sm:$0xff] }
 0x1f6   : > { %6335 = vmatprep.mubr.msk.bf16.mxu1 %vm1153_vm8, %v8126_v13 }
 0x1fc   : > { %6476 = vmatmul.mubr.msk.bf16.gmra.mrb[20].mxu0 %vm1153_vm8, %v8520_v60 }
 0x1fd   : > { %6336 = vmatmul.mubr.msk.bf16.gmra.mrb[56].mxu1 %vm1153_vm8, %v8146_v15  ;;  %6479 = vmatprep.mubr.msk.bf16.mxu0 %vm1153_vm8, %v7852_v22  ;;  %v2039_v22 = vld [vmem:[#allocation2 + $0x90] sm:$0x1f] }
 0x1fe   : > { %6339 = vmatprep.mubr.msk.bf16.mxu1 %vm1153_vm8, %v8157_v49 }
 0x204   : > { %6480 = vmatmul.mubr.msk.bf16.gmra.mrb[24].mxu0 %vm1153_vm8, %v8521_v42 }
 0x205   : > { %6340 = vmatmul.mubr.msk.bf16.gmra.mrb[60].mxu1 %vm1153_vm8, %v8164_v41  ;;  %6483 = vmatprep.mubr.msk.bf16.mxu0 %vm1153_vm8, %v8522_v36 }
 0x206   : > { %6343 = vmatprep.mubr.msk.bf16.mxu1 %vm1153_vm8, %v8171_v34 }
 0x20c   : > { %6484 = vmatmul.mubr.msk.bf16.gmra.mrb[28].mxu0 %vm1153_vm8, %v8523_v30 }
 0x20d   : > { %6344 = vmatmul.mubr.msk.bf16.gmra.mrb[64].mxu1 %vm1153_vm8, %v8150_v57  ;;  %6487 = vmatprep.mubr.msk.bf16.mxu0 %vm1153_vm8, %v7937_v39 }
 0x214   : > { %6488 = vmatmul.mubr.msk.bf16.gmra.mrb[32].mxu0 %vm1153_vm8, %v8139_v14 }
 0x215   : > { %6495 = vmatprep.mubr.msk.bf16.mxu0 %vm1153_vm8, %v7885_v24  ;;  %v8524_v24 = vld [vmem:[#allocation8_spill] sm:$0xff] }
 0x21c   : > { %6496 = vmatmul.mubr.msk.bf16.vlgmr.msra.gmra.mrb[4].mxu0 %vm1153_vm8, %v7927_v3  ;;  %v2797_v3 = vmul.bf16 %v8524_v24, %v2039_v22 }
 0x21d   : > { %6499 = vmatprep.mubr.msk.bf16.mxu0 %vm1153_vm8, %v7940_v7 }
 0x21e   : > { %v4959_v39 = vshrl.u32 %v2797_v3, 16  ;;  %v4962_v7 = vshll.u32 %v2797_v3, 16 }
 0x224   : > { %6500 = vmatmul.mubr.msk.bf16.gmra.mrb[8].mxu0 %vm1153_vm8, %v7950_v44  ;;  %v4961_v44 = vrot.slane %v4959_v39, 4 }
 0x225   : > { %6503 = vmatprep.mubr.msk.bf16.mxu0 %vm1153_vm8, %v7988_v9  ;;  %v4964_v9 = vrot.slane %v4962_v7, 5 }
 0x22c   : > { %6504 = vmatmul.mubr.msk.bf16.gmra.mrb[12].mxu0 %vm1153_vm8, %v7993_v8  ;;  %v4965_v8 = vor.u32 %v4964_v9, %v4961_v44 }
 0x22d   : > { %6507 = vmatprep.mubr.msk.bf16.mxu0 %vm1153_vm8, %v8022_v2 }
 0x22e   : > { %v4966_v2 = vsel %vm1839_vm6, %v8121_v27, %v4965_v8 }
 0x234   : > { %6508 = vmatmul.mubr.msk.bf16.gmra.mrb[16].mxu0 %vm1153_vm8, %v8034_v28 }
 0x235   : > { %6511 = vmatprep.mubr.msk.bf16.mxu0 %vm1153_vm8, %v8049_v23 }
 0x23c   : > { %6512 = vmatmul.mubr.msk.bf16.gmra.mrb[20].mxu0 %vm1153_vm8, %v8061_v53 }
 0x23d   : > { %6515 = vmatprep.mubr.msk.bf16.mxu0 %vm1153_vm8, %v8078_v58 }
 0x244   : > { %6516 = vmatmul.mubr.msk.bf16.gmra.mrb[24].mxu0 %vm1153_vm8, %v8094_v56 }
 0x245   : > { %6519 = vmatprep.mubr.msk.bf16.mxu0 %vm1153_vm8, %v8102_v12 }
 0x24c   : > { %6520 = vmatmul.mubr.msk.bf16.gmra.mrb[28].mxu0 %vm1153_vm8, %v8115_v26 }
 0x24d   : > { %6523 = vmatprep.mubr.msk.bf16.mxu0 %vm1153_vm8, %v8134_v18 }
 0x254   : > { %6524 = vmatmul.mubr.msk.bf16.gmra.mrb[32].mxu0 %vm1153_vm8, %v4966_v2 }
 0x2a8   : > { %v6317_v28 = vpop.f32.mrb[36].mxu1 }
 0x2a9   : > { %v3930_v23 = vpop.f32.mrb[37].mxu1 }
 0x2aa   : > { %v6318_v53 = vpop.f32.mrb[38].mxu1 }
 0x2ab   : > { %v3933_v58 = vpop.f32.mrb[39].mxu1 }
 0x2b0   : > { %v6321_v56 = vpop.f32.mrb[40].mxu1 }
 0x2b1   : > { %v3946_v12 = vpop.f32.mrb[41].mxu1 }
 0x2b2   : > { %v6322_v52 = vpop.f32.mrb[42].mxu1 }
 0x2b3   : > { %v3949_v61 = vpop.f32.mrb[43].mxu1 }
 0x2b8   : > { %v6325_v26 = vpop.f32.mrb[44].mxu1 }
 0x2b9   : > { %v3962_v19 = vpop.f32.mrb[45].mxu1 }
 0x2ba   : > { %v6326_v54 = vpop.f32.mrb[46].mxu1 }
 0x2bb   : > { %v3965_v17 = vpop.f32.mrb[47].mxu1 }
 0x2c0   : > { %v6329_v43 = vpop.f32.mrb[48].mxu1 }
 0x2c1   : > { %v3978_v6 = vpop.f32.mrb[49].mxu1 }
 0x2c2   : > { %v6330_v40 = vpop.f32.mrb[50].mxu1 }
 0x2c3   : > { %v3981_v13 = vpop.f32.mrb[51].mxu1 }
 0x2c8   : > { %v8357_v35 = vpop.f32.mrb[52].mxu1 }
 0x2c9   : > { %v8359_v27 = vpop.f32.mrb[53].mxu1 }
 0x2ca   : > { %v8361_v4 = vpop.f32.mrb[54].mxu1 }
 0x2cb   : > { %v8363_v38 = vpop.f32.mrb[55].mxu1 }
 0x2d0   : > { %v8365_v18 = vpop.f32.mrb[56].mxu1 }
 0x2d1   : > { %v8367_v14 = vpop.f32.mrb[57].mxu1 }
 0x2d2   : > { %v8369_v15 = vpop.f32.mrb[58].mxu1 }
 0x2d3   : > { %v8371_v46 = vpop.f32.mrb[59].mxu1 }
 0x2d8   : > { %v8373_v59 = vpop.f32.mrb[60].mxu1 }
 0x2d9   : > { %v8375_v57 = vpop.f32.mrb[61].mxu1 }
 0x2da   : > { %v8377_v50 = vpop.f32.mrb[62].mxu1 }
 0x2db   : > { %v8379_v0 = vpop.f32.mrb[63].mxu1 }
 0x2e0   : > { %v8381_v49 = vpop.f32.mrb[64].mxu1 }
 0x2e1   : > { %v8383_v41 = vpop.f32.mrb[65].mxu1 }
 0x2e2   : > { %v8385_v34 = vpop.f32.mrb[66].mxu1 }
 0x2e3   : > { %v8387_v29 = vpop.f32.mrb[67].mxu1 }
 0x2ef   : > { %v6497_v32 = vpop.f32.mrb[4].mxu0 }
 0x2f0   : > { %v6527_v33 = vadd.f32 %v6497_v32, %v6317_v28  ;;  %v5016_v47 = vpop.f32.mrb[5].mxu0 }
 0x2f1   : > { %v6528_v51 = vadd.f32 %v5016_v47, %v3930_v23  ;;  %v6498_v31 = vpop.f32.mrb[6].mxu0 }
 0x2f2   : > { %v6529_v16 = vadd.f32 %v6498_v31, %v6318_v53  ;;  %v5019_v25 = vpop.f32.mrb[7].mxu0 }
 0x2f3   : > { %v6530_v11 = vadd.f32 %v5019_v25, %v3933_v58 }
 0x2f4   : > { %v5871_v45 = vpack.c.bf16 %v6529_v16, %v6527_v33 }
 0x2f5   : > { %v5866_v20 = vpack.c.bf16 %v6530_v11, %v6528_v51 }
 0x2f6   : > { %5959 = vst [vmem:[%s8393_s13 + $0x8] sm:$0xff] %v5871_v45  }
 0x2f7   : > { %5867 = vst [vmem:[%s8393_s13] sm:$0xff] %v5866_v20   ;;  %v6501_v63 = vpop.f32.mrb[8].mxu0 }
 0x2f8   : > { %v6531_v1 = vadd.f32 %v6501_v63, %v6321_v56  ;;  %v5032_v5 = vpop.f32.mrb[9].mxu0 }
 0x2f9   : > { %v6532_v48 = vadd.f32 %v5032_v5, %v3946_v12  ;;  %v6502_v21 = vpop.f32.mrb[10].mxu0 }
 0x2fa   : > { %v6533_v62 = vadd.f32 %v6502_v21, %v6322_v52  ;;  %v5035_v55 = vpop.f32.mrb[11].mxu0 }
 0x2fb   : > { %v6534_v37 = vadd.f32 %v5035_v55, %v3949_v61 }
 0x2fc   : > { %v5881_v10 = vpack.c.bf16 %v6533_v62, %v6531_v1 }
 0x2fd   : > { %v5876_v60 = vpack.c.bf16 %v6534_v37, %v6532_v48 }
 0x2fe   : > { %5961 = vst [vmem:[%s8393_s13 + $0x18] sm:$0xff] %v5881_v10  }
 0x2ff   : > { %5960 = vst [vmem:[%s8393_s13 + $0x10] sm:$0xff] %v5876_v60   ;;  %v6505_v42 = vpop.f32.mrb[12].mxu0 }
 0x300   : > { %v6535_v36 = vadd.f32 %v6505_v42, %v6325_v26  ;;  %v5048_v30 = vpop.f32.mrb[13].mxu0 }
 0x301   : > { %v6536_v22 = vadd.f32 %v5048_v30, %v3962_v19  ;;  %v6506_v24 = vpop.f32.mrb[14].mxu0 }
 0x302   : > { %v6537_v3 = vadd.f32 %v6506_v24, %v6326_v54  ;;  %v5051_v39 = vpop.f32.mrb[15].mxu0 }
 0x303   : > { %v6538_v7 = vadd.f32 %v5051_v39, %v3965_v17 }
 0x304   : > { %v5891_v44 = vpack.c.bf16 %v6537_v3, %v6535_v36 }
 0x305   : > { %v5886_v9 = vpack.c.bf16 %v6538_v7, %v6536_v22 }
 0x306   : > { %5963 = vst [vmem:[%s8393_s13 + $0x28] sm:$0xff] %v5891_v44  }
 0x307   : > { %5962 = vst [vmem:[%s8393_s13 + $0x20] sm:$0xff] %v5886_v9   ;;  %v6509_v8 = vpop.f32.mrb[16].mxu0 }
 0x308   : > { %v6539_v2 = vadd.f32 %v6509_v8, %v6329_v43  ;;  %v5064_v28 = vpop.f32.mrb[17].mxu0 }
 0x309   : > { %v6540_v23 = vadd.f32 %v5064_v28, %v3978_v6  ;;  %v6510_v53 = vpop.f32.mrb[18].mxu0 }
 0x30a   : > { %v6541_v58 = vadd.f32 %v6510_v53, %v6330_v40  ;;  %v5067_v56 = vpop.f32.mrb[19].mxu0 }
 0x30b   : > { %v6542_v12 = vadd.f32 %v5067_v56, %v3981_v13 }
 0x30c   : > { %v5901_v52 = vpack.c.bf16 %v6541_v58, %v6539_v2 }
 0x30d   : > { %v5896_v61 = vpack.c.bf16 %v6542_v12, %v6540_v23 }
 0x30e   : > { %5965 = vst [vmem:[%s8393_s13 + $0x38] sm:$0xff] %v5901_v52  }
 0x30f   : > { %5964 = vst [vmem:[%s8393_s13 + $0x30] sm:$0xff] %v5896_v61   ;;  %v6513_v26 = vpop.f32.mrb[20].mxu0 }
 0x310   : > { %v6543_v19 = vadd.f32 %v6513_v26, %v8357_v35  ;;  %v5080_v54 = vpop.f32.mrb[21].mxu0 }
 0x311   : > { %v6544_v17 = vadd.f32 %v5080_v54, %v8359_v27  ;;  %v6514_v32 = vpop.f32.mrb[22].mxu0 }
 0x312   : > { %v6545_v43 = vadd.f32 %v6514_v32, %v8361_v4  ;;  %v5083_v6 = vpop.f32.mrb[23].mxu0 }
 0x313   : > { %v6546_v40 = vadd.f32 %v5083_v6, %v8363_v38 }
 0x314   : > { %v5911_v13 = vpack.c.bf16 %v6545_v43, %v6543_v19 }
 0x315   : > { %v5906_v33 = vpack.c.bf16 %v6546_v40, %v6544_v17 }
 0x316   : > { %5967 = vst [vmem:[%s8393_s13 + $0x48] sm:$0xff] %v5911_v13  }
 0x317   : > { %5966 = vst [vmem:[%s8393_s13 + $0x40] sm:$0xff] %v5906_v33   ;;  %v6517_v47 = vpop.f32.mrb[24].mxu0 }
 0x318   : > { %v6547_v51 = vadd.f32 %v6517_v47, %v8365_v18  ;;  %v5096_v31 = vpop.f32.mrb[25].mxu0 }
 0x319   : > { %v6548_v35 = vadd.f32 %v5096_v31, %v8367_v14  ;;  %v6518_v16 = vpop.f32.mrb[26].mxu0 }
 0x31a   : > { %v6549_v27 = vadd.f32 %v6518_v16, %v8369_v15  ;;  %v5099_v25 = vpop.f32.mrb[27].mxu0 }
 0x31b   : > { %v6550_v4 = vadd.f32 %v5099_v25, %v8371_v46 }
 0x31c   : > { %v5921_v38 = vpack.c.bf16 %v6549_v27, %v6547_v51 }
 0x31d   : > { %v5916_v11 = vpack.c.bf16 %v6550_v4, %v6548_v35 }
 0x31e   : > { %5969 = vst [vmem:[%s8393_s13 + $0x58] sm:$0xff] %v5921_v38  }
 0x31f   : > { %5968 = vst [vmem:[%s8393_s13 + $0x50] sm:$0xff] %v5916_v11   ;;  %v6521_v45 = vpop.f32.mrb[28].mxu0 }
 0x320   : > { %v6551_v20 = vadd.f32 %v6521_v45, %v8373_v59  ;;  %v5112_v63 = vpop.f32.mrb[29].mxu0 }
 0x321   : > { %v6552_v18 = vadd.f32 %v5112_v63, %v8375_v57  ;;  %v6522_v1 = vpop.f32.mrb[30].mxu0 }
 0x322   : > { %v6553_v14 = vadd.f32 %v6522_v1, %v8377_v50  ;;  %v5115_v5 = vpop.f32.mrb[31].mxu0 }
 0x323   : > { %v6554_v15 = vadd.f32 %v5115_v5, %v8379_v0 }
 0x324   : > { %v5931_v46 = vpack.c.bf16 %v6553_v14, %v6551_v20 }
 0x325   : > { %v5926_v48 = vpack.c.bf16 %v6554_v15, %v6552_v18 }
 0x326   : > { %5971 = vst [vmem:[%s8393_s13 + $0x68] sm:$0xff] %v5931_v46  }
 0x327   : > { %5970 = vst [vmem:[%s8393_s13 + $0x60] sm:$0xff] %v5926_v48   ;;  %v6525_v21 = vpop.f32.mrb[32].mxu0 }
 0x328   : > { %v6555_v62 = vadd.f32 %v6525_v21, %v8381_v49  ;;  %v5128_v55 = vpop.f32.mrb[33].mxu0 }
 0x329   : > { %v6556_v59 = vadd.f32 %v5128_v55, %v8383_v41  ;;  %v6526_v37 = vpop.f32.mrb[34].mxu0 }
 0x32a   : > { %v6557_v57 = vadd.f32 %v6526_v37, %v8385_v34  ;;  %v5131_v10 = vpop.f32.mrb[35].mxu0 }
 0x32b   : > { %v6558_v50 = vadd.f32 %v5131_v10, %v8387_v29 }
 0x32c   : > { %v5941_v60 = vpack.c.bf16 %v6557_v57, %v6555_v62 }
 0x32d   : > { %v5936_v42 = vpack.c.bf16 %v6558_v50, %v6556_v59 }
 0x32e   : > { %5973 = vst [vmem:[%s8393_s13 + $0x78] sm:$0xff] %v5941_v60  }
 0x32f   : > { %5972 = vst [vmem:[%s8393_s13 + $0x70] sm:$0xff] %v5936_v42  }
 0x330 PF: > { %s20_s15 = sadd.s32 1, %s6854_s15   ;;  %s8525_s13 = smov %s6850_s14 }
 0x331   : > { %p17_p5 = scmp.ge.s32.totalorder %s20_s15, 4   ;;  %s8526_s14 = smov %s8528_s16 }
 0x333   :  { %19 = sbr.rel (!%p17_p5) target bundleno = 2 (0x2), region = 98 }

</bundles_post_ra>
